<compile_context>
chip_gen: v7x
topology: tpu7x:2x2x1
jax: 0.10.0
libtpu: 0.0.40
codegen_flags: <defaults>
</compile_context>

<pallas_src>
import functools

import numpy as np
import jax
import jax.numpy as jnp
from jax.experimental import pallas as pl
from jax.experimental.pallas import tpu as pltpu

OUT_SIZE = 512
F32 = jnp.float32
BF16 = jnp.bfloat16


# ----------------------------- host-side constant matrices -----------------------------

def _dft_shift_matrices(n):
    """Return (A, B) with  fft(fftshift(x)) == A @ x  and  ifftshift(ifft(y)) == B @ y."""
    k = np.arange(n)
    d = np.exp(-2j * np.pi * np.outer(k, k) / n)            # forward DFT
    dinv = np.exp(2j * np.pi * np.outer(k, k) / n) / n      # inverse DFT
    a = np.roll(d, -(n // 2), axis=1)                       # column roll == fftshift on input
    b = np.roll(dinv, -(n // 2), axis=0)                    # row roll    == ifftshift on output
    return a, b


def _bilinear_matrix(in_size, out_size):
    """F.interpolate(mode='bilinear', align_corners=False) along one axis as a matrix."""
    scale = in_size / out_size
    dst = np.arange(out_size, dtype=np.float64)
    src = np.maximum((dst + 0.5) * scale - 0.5, 0.0)        # PyTorch clamps negative coords
    i0 = np.minimum(np.floor(src).astype(np.int64), in_size - 1)
    i1 = np.minimum(i0 + 1, in_size - 1)
    w1 = np.clip(src - i0, 0.0, 1.0)
    m = np.zeros((out_size, in_size), dtype=np.float64)
    m[np.arange(out_size), i0] += 1.0 - w1
    m[np.arange(out_size), i1] += w1
    return m


def _physical_vmem_bytes():
    try:
        info = pltpu.get_tpu_info()
        for name in ("vmem_capacity_bytes", "vmem_bytes", "vmem_size_bytes"):
            v = getattr(info, name, None)
            if v:
                return int(v)
    except Exception:
        pass
    return 64 * 2 ** 20          # conservative fallback (v7x per-core VMEM)


# ----------------------------- Kernel A: deconv + crop + resize -----------------------------

def _deconv_interp_kernel(x_ref,                       # (1, n_ch, H, W) f32
                          arh_ref, aih_ref,            # (H, H) f32     A_h real / imag
                          awr_ref, awi_ref,            # (W, W) f32     A_w^T real / imag
                          cr_ref, ci_ref,              # (H, W) f32     Wiener filter real / imag
                          bhr_ref, bhi_ref,            # (512, H) bf16  BH' real / imag
                          bwr_ref, bwi_ref,            # (W, 512) bf16  BW' real / imag
                          out_ref,                     # (1, 512, 512) f32
                          stats_ref,                   # (1, 8, 128) f32
                          *, n_ch, h_major):
    def dot(a, b):
        return jnp.dot(a, b, preferred_element_type=F32)

    # Channel mean (folded into the kernel when VMEM allows; otherwise n_ch == 1).
    xm = x_ref[0, 0]
    for ch in range(1, n_ch):
        xm = xm + x_ref[0, ch]
    if n_ch > 1:
        xm = xm * (1.0 / n_ch)

    # ---- forward DFT with fftshift folded in (f32, separate real/imag dots) ----
    ar, ai = arh_ref[...], aih_ref[...]
    awr, awi = awr_ref[...], awi_ref[...]
    if h_major:                                  # H >= W: apply the H-side transform first
        tr, ti = dot(ar, xm), dot(ai, xm)
        xre = dot(tr, awr) - dot(ti, awi)
        xim = dot(tr, awi) + dot(ti, awr)
    else:                                        # W > H: apply the W-side transform first
        sr, si = dot(xm, awr), dot(xm, awi)
        xre = dot(ar, sr) - dot(ai, si)
        xim = dot(ar, si) + dot(ai, sr)

    # ---- fused Wiener filter C = conj(Hs)/(|Hs|^2 + gamma) (complex, elementwise, f32) ----
    cr, ci = cr_ref[...], ci_ref[...]
    yr = (cr * xre - ci * xim).astype(BF16)
    yi = (cr * xim + ci * xre).astype(BF16)

    # ---- inverse DFT + ifftshift + crop + bilinear resize + flips (bf16 MXU, f32 acc) ----
    bhr, bhi = bhr_ref[...], bhi_ref[...]
    bwr, bwi = bwr_ref[...], bwi_ref[...]
    if h_major:                                  # 512-reducing BH' applied to the larger dim first
        ur = (dot(bhr, yr) - dot(bhi, yi)).astype(BF16)
        ui = (dot(bhr, yi) + dot(bhi, yr)).astype(BF16)
        interp = dot(ur, bwr) - dot(ui, bwi)
    else:                                        # 512-reducing BW' applied to the larger dim first
        vr = (dot(yr, bwr) - dot(yi, bwi)).astype(BF16)
        vi = (dot(yr, bwi) + dot(yi, bwr)).astype(BF16)
        interp = dot(bhr, vr) - dot(bhi, vi)

    out_ref[0] = interp

    # Per-image (min, max) in an (8,128)-aligned tile: sublanes 0-3 = min, 4-7 = max.
    mn = jnp.min(interp)
    mx = jnp.max(interp)
    row = jax.lax.broadcasted_iota(jnp.int32, (8, 128), 0)
    stats_ref[0] = jnp.where(row < 4, mn, mx)


# ----------------------------- Kernel B: normalize + 3-channel broadcast -----------------------------

def _finalize_kernel(x_ref, sb_ref, out_ref):
    # sb_ref (SMEM): [scale, bias];  y = x * scale + bias, then broadcast to 3 channels.
    y = x_ref[0] * sb_ref[0] + sb_ref[1]              # (512, 512)
    out_ref[0, 0] = y
    out_ref[0, 1] = y
    out_ref[0, 2] = y


# ----------------------------- wrapper -----------------------------

def fft_layer_forward(x, psf, normalizer, gamm_l2=10000.0, crop_area=None):
    if crop_area is None:
        crop_area = [618, 437, 200, 200]
    b, c, h, w = x.shape
    x_start, y_start, crop_w_, crop_h_ = crop_area

    # ---- host precompute (float64) ----------------------------------------------------
    a_h, b_h = _dft_shift_matrices(h)
    a_w, b_w = _dft_shift_matrices(w)

    # Bilinear resize matrices with the final flips folded in.
    ih = _bilinear_matrix(crop_h_, OUT_SIZE)[::-1, :]              # (512, crop_h)  flip dim -2
    iwt = _bilinear_matrix(crop_w_, OUT_SIZE)[::-1, :].T           # (crop_w, 512)  flip dim -1

    # Inverse DFT (ifftshift folded) with crop + resize + flips folded in.
    bh_c = ih @ b_h[y_start:y_start + crop_h_, :]                  # (512, H) complex
    bw_c = b_w.T[:, x_start:x_start + crop_w_] @ iwt               # (W, 512) complex

    # Forward DFT + Wiener filter stay in f32 (precision-sensitive); the inverse /
    # crop / resize stage (bilinear weights) is cast to bf16 for the bf16-native MXU.
    arh = jnp.asarray(a_h.real, F32)
    aih = jnp.asarray(a_h.imag, F32)
    awr = jnp.asarray(a_w.real.T, F32)
    awi = jnp.asarray(a_w.imag.T, F32)
    bhr = jnp.asarray(bh_c.real, BF16)
    bhi = jnp.asarray(bh_c.imag, BF16)
    bwr = jnp.asarray(bw_c.real, BF16)
    bwi = jnp.asarray(bw_c.imag, BF16)

    # ---- combined Wiener filter C = conj(Hs)/(|Hs|^2 + gamma),  Hs = fft2(fftshift(psf)) ----
    psf2d = jnp.asarray(psf[0, 0], F32)
    tr = arh @ psf2d
    ti = aih @ psf2d
    hsr = tr @ awr - ti @ awi
    hsi = tr @ awi + ti @ awr
    m = 1.0 / (hsr * hsr + hsi * hsi + jnp.asarray(gamm_l2, F32))
    cr = (hsr * m).astype(F32)
    ci = (-hsi * m).astype(F32)

    # ---- VMEM plan derived from the physical VMEM of the attached chip ----------------
    phys_vmem = _physical_vmem_bytes()
    fold_mean = (phys_vmem >= 96 * 2 ** 20) and c > 1   # v5e/v6e: fold channel mean into Kernel A

    if fold_mean:
        x_in = x.astype(F32)                                        # (B, C, H, W)
        n_ch = c
    else:
        x_in = jnp.mean(x.astype(F32), axis=1, keepdims=True)       # (B, 1, H, W)
        n_ch = 1

    const_bytes = 4 * (2 * h * h + 2 * w * w + 2 * h * w) \
        + 2 * (2 * OUT_SIZE * h + 2 * w * OUT_SIZE)
    io_bytes = 2 * 4 * (n_ch * h * w + OUT_SIZE * OUT_SIZE + 8 * 128)       # double-buffered blocks
    tmp_bytes = 4 * (6 * h * w) + 2 * (2 * h * w) \
        + (4 + 2) * (2 * OUT_SIZE * max(h, w)) + 4 * OUT_SIZE * OUT_SIZE    # live temporaries
    vmem_limit = max(32 * 2 ** 20,
                     min(int(0.85 * phys_vmem),
                         int(1.3 * (const_bytes + io_bytes + tmp_bytes))))

    # Grid-invariant constants: whole-array VMEM placement -> single-buffered.
    const_spec = pl.BlockSpec(memory_space=pltpu.MemorySpace.VMEM)

    kernel_a = functools.partial(_deconv_interp_kernel, n_ch=n_ch, h_major=(h >= w))

    interp, stats = pl.pallas_call(
        kernel_a,
        grid=(b,),
        in_specs=[pl.BlockSpec((1, n_ch, h, w), lambda i: (i, 0, 0, 0))] + [const_spec] * 10,
        out_specs=[
            pl.BlockSpec((1, OUT_SIZE, OUT_SIZE), lambda i: (i, 0, 0)),
            pl.BlockSpec((1, 8, 128), lambda i: (i, 0, 0)),
        ],
        out_shape=(
            jax.ShapeDtypeStruct((b, OUT_SIZE, OUT_SIZE), F32),
            jax.ShapeDtypeStruct((b, 8, 128), F32),
        ),
        compiler_params=pltpu.CompilerParams(
            dimension_semantics=("parallel",),
            vmem_limit_bytes=vmem_limit),
    )(x_in, arh, aih, awr, awi, cr, ci, bhr, bhi, bwr, bwi)

    # Global min/max over the whole batch (matches torch .min()/.max()); fold the
    # learnable normalizer into a single scale/bias FMA.
    g_min = jnp.min(stats[:, 0, 0])
    g_max = jnp.max(stats[:, 7, 0])
    nrm = jnp.reshape(normalizer, ()).astype(F32)
    scale = nrm / (g_max - g_min)          # no epsilon: matches PyTorch exactly
    bias = -g_min * scale
    sb = jnp.stack([scale, bias]).astype(F32)        # (2,)

    out = pl.pallas_call(
        _finalize_kernel,
        grid=(b,),
        in_specs=[
            pl.BlockSpec((1, OUT_SIZE, OUT_SIZE), lambda i: (i, 0, 0)),
            pl.BlockSpec(memory_space=pltpu.MemorySpace.SMEM),
        ],
        out_specs=pl.BlockSpec((1, 3, OUT_SIZE, OUT_SIZE), lambda i: (i, 0, 0, 0)),
        out_shape=jax.ShapeDtypeStruct((b, 3, OUT_SIZE, OUT_SIZE), F32),
        compiler_params=pltpu.CompilerParams(
            dimension_semantics=("parallel",),
            vmem_limit_bytes=32 * 2 ** 20),
    )(interp, sb)
    return out


if __name__ == "__main__":
    key = jax.random.PRNGKey(0)
    kx, kp = jax.random.split(key)

    B, H, W = 2, 32, 32
    x = jax.random.normal(kx, (B, 3, H, W), dtype=jnp.float32)

    # TODO(synk): the real module loads the PSF from a grayscale image file (PIL + ToTensor);
    # a deterministic synthetic PSF in [0, 1] stands in for it here.
    psf = jax.random.uniform(kp, (1, 1, H, W), dtype=jnp.float32)
    normalizer = jnp.ones((1, 1, 1, 1), dtype=jnp.float32)

    # crop_area = [x_start, y_start, crop_width, crop_height], sized for the small test image.
    crop_area = [10, 8, 16, 16]

    out = fft_layer_forward(x, psf, normalizer, gamm_l2=10000.0, crop_area=crop_area)
    out = jax.block_until_ready(out)
    assert out.shape == (B, 3, OUT_SIZE, OUT_SIZE), out.shape
    assert bool(jnp.all(jnp.isfinite(out))), "non-finite output"
    print("KERNEL_OK")
</pallas_src>

<mosaic_0001>
module attributes {stable_mosaic.version = 11 : i64} {
  func.func @_deconv_interp_kernel(%arg0: i32, %arg1: memref<1x1x32x32xf32, #tpu.memory_space<vmem>>, %arg2: memref<32x32xf32, #tpu.memory_space<vmem>>, %arg3: memref<32x32xf32, #tpu.memory_space<vmem>>, %arg4: memref<32x32xf32, #tpu.memory_space<vmem>>, %arg5: memref<32x32xf32, #tpu.memory_space<vmem>>, %arg6: memref<32x32xf32, #tpu.memory_space<vmem>>, %arg7: memref<32x32xf32, #tpu.memory_space<vmem>>, %arg8: memref<512x32xbf16, #tpu.memory_space<vmem>>, %arg9: memref<512x32xbf16, #tpu.memory_space<vmem>>, %arg10: memref<32x512xbf16, #tpu.memory_space<vmem>>, %arg11: memref<32x512xbf16, #tpu.memory_space<vmem>>, %arg12: memref<1x512x512xf32, #tpu.memory_space<vmem>>, %arg13: memref<1x8x128xf32, #tpu.memory_space<vmem>>) attributes {dimension_semantics = [#tpu.dimension_semantics<parallel>], iteration_bounds = array<i64: 2>, scalar_prefetch = 0 : i64, scratch_operands = 0 : i64, tpu.core_type = #tpu.core_type<tc>, window_params = [{transform_indices = @transform_0, window_bounds = array<i64: 1, 1, 32, 32>}, {pipeline_mode = #tpu.pipeline_mode<synchronous>, transform_indices = @transform_1, window_bounds = array<i64: 32, 32>}, {pipeline_mode = #tpu.pipeline_mode<synchronous>, transform_indices = @transform_2, window_bounds = array<i64: 32, 32>}, {pipeline_mode = #tpu.pipeline_mode<synchronous>, transform_indices = @transform_3, window_bounds = array<i64: 32, 32>}, {pipeline_mode = #tpu.pipeline_mode<synchronous>, transform_indices = @transform_4, window_bounds = array<i64: 32, 32>}, {pipeline_mode = #tpu.pipeline_mode<synchronous>, transform_indices = @transform_5, window_bounds = array<i64: 32, 32>}, {pipeline_mode = #tpu.pipeline_mode<synchronous>, transform_indices = @transform_6, window_bounds = array<i64: 32, 32>}, {pipeline_mode = #tpu.pipeline_mode<synchronous>, transform_indices = @transform_7, window_bounds = array<i64: 512, 32>}, {pipeline_mode = #tpu.pipeline_mode<synchronous>, transform_indices = @transform_8, window_bounds = array<i64: 512, 32>}, {pipeline_mode = #tpu.pipeline_mode<synchronous>, transform_indices = @transform_9, window_bounds = array<i64: 32, 512>}, {pipeline_mode = #tpu.pipeline_mode<synchronous>, transform_indices = @transform_10, window_bounds = array<i64: 32, 512>}, {transform_indices = @transform_11, window_bounds = array<i64: 1, 512, 512>}, {transform_indices = @transform_12, window_bounds = array<i64: 1, 8, 128>}]} {
    %c0 = arith.constant 0 : index
    %c0_0 = arith.constant 0 : index
    %c0_1 = arith.constant 0 : index
    %c0_2 = arith.constant 0 : index
    %0 = vector.load %arg1[%c0, %c0_0, %c0_1, %c0_2] : memref<1x1x32x32xf32, #tpu.memory_space<vmem>>, vector<1x1x32x32xf32>
    %1 = vector.shape_cast %0 : vector<1x1x32x32xf32> to vector<32x32xf32>
    %c0_3 = arith.constant 0 : index
    %c0_4 = arith.constant 0 : index
    %2 = vector.load %arg2[%c0_3, %c0_4] : memref<32x32xf32, #tpu.memory_space<vmem>>, vector<32x32xf32>
    %c0_5 = arith.constant 0 : index
    %c0_6 = arith.constant 0 : index
    %3 = vector.load %arg3[%c0_5, %c0_6] : memref<32x32xf32, #tpu.memory_space<vmem>>, vector<32x32xf32>
    %c0_7 = arith.constant 0 : index
    %c0_8 = arith.constant 0 : index
    %4 = vector.load %arg4[%c0_7, %c0_8] : memref<32x32xf32, #tpu.memory_space<vmem>>, vector<32x32xf32>
    %c0_9 = arith.constant 0 : index
    %c0_10 = arith.constant 0 : index
    %5 = vector.load %arg5[%c0_9, %c0_10] : memref<32x32xf32, #tpu.memory_space<vmem>>, vector<32x32xf32>
    %cst = arith.constant dense<0.000000e+00> : vector<32x32xf32>
    %6 = tpu.matmul %2, %1, %cst {dimension_numbers = #tpu.dot_dimension_numbers<[1], [0], [0], [1], [0, 0, 1, 1], [], []>} : vector<32x32xf32>, vector<32x32xf32>, vector<32x32xf32> -> vector<32x32xf32>
    %cst_11 = arith.constant dense<0.000000e+00> : vector<32x32xf32>
    %7 = tpu.matmul %3, %1, %cst_11 {dimension_numbers = #tpu.dot_dimension_numbers<[1], [0], [0], [1], [0, 0, 1, 1], [], []>} : vector<32x32xf32>, vector<32x32xf32>, vector<32x32xf32> -> vector<32x32xf32>
    %cst_12 = arith.constant dense<0.000000e+00> : vector<32x32xf32>
    %8 = tpu.matmul %6, %4, %cst_12 {dimension_numbers = #tpu.dot_dimension_numbers<[1], [0], [0], [1], [0, 0, 1, 1], [], []>} : vector<32x32xf32>, vector<32x32xf32>, vector<32x32xf32> -> vector<32x32xf32>
    %cst_13 = arith.constant dense<0.000000e+00> : vector<32x32xf32>
    %9 = tpu.matmul %7, %5, %cst_13 {dimension_numbers = #tpu.dot_dimension_numbers<[1], [0], [0], [1], [0, 0, 1, 1], [], []>} : vector<32x32xf32>, vector<32x32xf32>, vector<32x32xf32> -> vector<32x32xf32>
    %10 = arith.subf %8, %9 : vector<32x32xf32>
    %cst_14 = arith.constant dense<0.000000e+00> : vector<32x32xf32>
    %11 = tpu.matmul %6, %5, %cst_14 {dimension_numbers = #tpu.dot_dimension_numbers<[1], [0], [0], [1], [0, 0, 1, 1], [], []>} : vector<32x32xf32>, vector<32x32xf32>, vector<32x32xf32> -> vector<32x32xf32>
    %cst_15 = arith.constant dense<0.000000e+00> : vector<32x32xf32>
    %12 = tpu.matmul %7, %4, %cst_15 {dimension_numbers = #tpu.dot_dimension_numbers<[1], [0], [0], [1], [0, 0, 1, 1], [], []>} : vector<32x32xf32>, vector<32x32xf32>, vector<32x32xf32> -> vector<32x32xf32>
    %13 = arith.addf %11, %12 : vector<32x32xf32>
    %c0_16 = arith.constant 0 : index
    %c0_17 = arith.constant 0 : index
    %14 = vector.load %arg6[%c0_16, %c0_17] : memref<32x32xf32, #tpu.memory_space<vmem>>, vector<32x32xf32>
    %c0_18 = arith.constant 0 : index
    %c0_19 = arith.constant 0 : index
    %15 = vector.load %arg7[%c0_18, %c0_19] : memref<32x32xf32, #tpu.memory_space<vmem>>, vector<32x32xf32>
    %16 = arith.mulf %14, %10 : vector<32x32xf32>
    %17 = arith.mulf %15, %13 : vector<32x32xf32>
    %18 = arith.subf %16, %17 : vector<32x32xf32>
    %19 = arith.truncf %18 : vector<32x32xf32> to vector<32x32xbf16>
    %20 = arith.mulf %14, %13 : vector<32x32xf32>
    %21 = arith.mulf %15, %10 : vector<32x32xf32>
    %22 = arith.addf %20, %21 : vector<32x32xf32>
    %23 = arith.truncf %22 : vector<32x32xf32> to vector<32x32xbf16>
    %c0_20 = arith.constant 0 : index
    %c0_21 = arith.constant 0 : index
    %24 = vector.load %arg8[%c0_20, %c0_21] : memref<512x32xbf16, #tpu.memory_space<vmem>>, vector<512x32xbf16>
    %c0_22 = arith.constant 0 : index
    %c0_23 = arith.constant 0 : index
    %25 = vector.load %arg9[%c0_22, %c0_23] : memref<512x32xbf16, #tpu.memory_space<vmem>>, vector<512x32xbf16>
    %c0_24 = arith.constant 0 : index
    %c0_25 = arith.constant 0 : index
    %26 = vector.load %arg10[%c0_24, %c0_25] : memref<32x512xbf16, #tpu.memory_space<vmem>>, vector<32x512xbf16>
    %c0_26 = arith.constant 0 : index
    %c0_27 = arith.constant 0 : index
    %27 = vector.load %arg11[%c0_26, %c0_27] : memref<32x512xbf16, #tpu.memory_space<vmem>>, vector<32x512xbf16>
    %cst_28 = arith.constant dense<0.000000e+00> : vector<512x32xf32>
    %28 = tpu.matmul %24, %19, %cst_28 {dimension_numbers = #tpu.dot_dimension_numbers<[1], [0], [0], [1], [0, 0, 1, 1], [], []>} : vector<512x32xbf16>, vector<32x32xbf16>, vector<512x32xf32> -> vector<512x32xf32>
    %cst_29 = arith.constant dense<0.000000e+00> : vector<512x32xf32>
    %29 = tpu.matmul %25, %23, %cst_29 {dimension_numbers = #tpu.dot_dimension_numbers<[1], [0], [0], [1], [0, 0, 1, 1], [], []>} : vector<512x32xbf16>, vector<32x32xbf16>, vector<512x32xf32> -> vector<512x32xf32>
    %30 = arith.subf %28, %29 : vector<512x32xf32>
    %31 = arith.truncf %30 : vector<512x32xf32> to vector<512x32xbf16>
    %cst_30 = arith.constant dense<0.000000e+00> : vector<512x32xf32>
    %32 = tpu.matmul %24, %23, %cst_30 {dimension_numbers = #tpu.dot_dimension_numbers<[1], [0], [0], [1], [0, 0, 1, 1], [], []>} : vector<512x32xbf16>, vector<32x32xbf16>, vector<512x32xf32> -> vector<512x32xf32>
    %cst_31 = arith.constant dense<0.000000e+00> : vector<512x32xf32>
    %33 = tpu.matmul %25, %19, %cst_31 {dimension_numbers = #tpu.dot_dimension_numbers<[1], [0], [0], [1], [0, 0, 1, 1], [], []>} : vector<512x32xbf16>, vector<32x32xbf16>, vector<512x32xf32> -> vector<512x32xf32>
    %34 = arith.addf %32, %33 : vector<512x32xf32>
    %35 = arith.truncf %34 : vector<512x32xf32> to vector<512x32xbf16>
    %cst_32 = arith.constant dense<0.000000e+00> : vector<512x512xf32>
    %36 = tpu.matmul %31, %26, %cst_32 {dimension_numbers = #tpu.dot_dimension_numbers<[1], [0], [0], [1], [0, 0, 1, 1], [], []>} : vector<512x32xbf16>, vector<32x512xbf16>, vector<512x512xf32> -> vector<512x512xf32>
    %cst_33 = arith.constant dense<0.000000e+00> : vector<512x512xf32>
    %37 = tpu.matmul %35, %27, %cst_33 {dimension_numbers = #tpu.dot_dimension_numbers<[1], [0], [0], [1], [0, 0, 1, 1], [], []>} : vector<512x32xbf16>, vector<32x512xbf16>, vector<512x512xf32> -> vector<512x512xf32>
    %38 = arith.subf %36, %37 : vector<512x512xf32>
    %c0_34 = arith.constant 0 : index
    %c0_35 = arith.constant 0 : index
    %c0_36 = arith.constant 0 : index
    %39 = vector.load %arg12[%c0_34, %c0_35, %c0_36] : memref<1x512x512xf32, #tpu.memory_space<vmem>>, vector<1x512x512xf32>
    %40 = vector.shape_cast %39 : vector<1x512x512xf32> to vector<512x512xf32>
    %41 = vector.shape_cast %38 : vector<512x512xf32> to vector<1x512x512xf32>
    tpu.vector_store %arg12[%c0_34, %c0_35, %c0_36], %41 {strides = array<i32>} : memref<1x512x512xf32, #tpu.memory_space<vmem>>, vector<1x512x512xf32>,
    %42 = vector.shape_cast %38 : vector<512x512xf32> to vector<1x512x512xf32>
    %cst_37 = arith.constant dense<0x7F800000> : vector<1xf32>
    %43 = vector.multi_reduction <minimumf>, %42, %cst_37 [1, 2] : vector<1x512x512xf32> to vector<1xf32>
    %44 = vector.shape_cast %43 : vector<1xf32> to vector<1x1x1xf32>
    %45 = vector.extract %44[0, 0, 0] : f32 from vector<1x1x1xf32>
    %46 = vector.shape_cast %38 : vector<512x512xf32> to vector<1x512x512xf32>
    %cst_38 = arith.constant dense<0xFF800000> : vector<1xf32>
    %47 = vector.multi_reduction <maximumf>, %46, %cst_38 [1, 2] : vector<1x512x512xf32> to vector<1xf32>
    %48 = vector.shape_cast %47 : vector<1xf32> to vector<1x1x1xf32>
    %49 = vector.extract %48[0, 0, 0] : f32 from vector<1x1x1xf32>
    %50 = tpu.iota {dimensions = array<i32: 0>} : vector<8x128xi32>
    %c4_i32 = arith.constant 4 : i32
    %51 = vector.broadcast %c4_i32 : i32 to vector<8x128xi32>
    %52 = arith.cmpi slt, %50, %51 : vector<8x128xi32>
    %53 = vector.broadcast %45 : f32 to vector<8x128xf32>
    %54 = vector.broadcast %49 : f32 to vector<8x128xf32>
    %55 = arith.select %52, %53, %54 : vector<8x128xi1>, vector<8x128xf32>
    %c0_39 = arith.constant 0 : index
    %c0_40 = arith.constant 0 : index
    %c0_41 = arith.constant 0 : index
    %56 = vector.load %arg13[%c0_39, %c0_40, %c0_41] : memref<1x8x128xf32, #tpu.memory_space<vmem>>, vector<1x8x128xf32>
    %57 = vector.shape_cast %56 : vector<1x8x128xf32> to vector<8x128xf32>
    %58 = vector.shape_cast %55 : vector<8x128xf32> to vector<1x8x128xf32>
    tpu.vector_store %arg13[%c0_39, %c0_40, %c0_41], %58 {strides = array<i32>} : memref<1x8x128xf32, #tpu.memory_space<vmem>>, vector<1x8x128xf32>,
    return
  }
  func.func @transform_0(%arg0: i32) -> (i32, i32, i32, i32) {
    %c0_i32 = arith.constant 0 : i32
    %c0_i32_0 = arith.constant 0 : i32
    %c0_i32_1 = arith.constant 0 : i32
    %c0_i32_2 = arith.constant 0 : i32
    return %arg0, %c0_i32, %c0_i32_0, %c0_i32_1 : i32, i32, i32, i32
  }
  func.func @transform_1(%arg0: i32) -> (i32, i32) {
    %c0_i32 = arith.constant 0 : i32
    %c0_i32_0 = arith.constant 0 : i32
    %c0_i32_1 = arith.constant 0 : i32
    return %c0_i32, %c0_i32_0 : i32, i32
  }
  func.func @transform_2(%arg0: i32) -> (i32, i32) {
    %c0_i32 = arith.constant 0 : i32
    %c0_i32_0 = arith.constant 0 : i32
    %c0_i32_1 = arith.constant 0 : i32
    return %c0_i32, %c0_i32_0 : i32, i32
  }
  func.func @transform_3(%arg0: i32) -> (i32, i32) {
    %c0_i32 = arith.constant 0 : i32
    %c0_i32_0 = arith.constant 0 : i32
    %c0_i32_1 = arith.constant 0 : i32
    return %c0_i32, %c0_i32_0 : i32, i32
  }
  func.func @transform_4(%arg0: i32) -> (i32, i32) {
    %c0_i32 = arith.constant 0 : i32
    %c0_i32_0 = arith.constant 0 : i32
    %c0_i32_1 = arith.constant 0 : i32
    return %c0_i32, %c0_i32_0 : i32, i32
  }
  func.func @transform_5(%arg0: i32) -> (i32, i32) {
    %c0_i32 = arith.constant 0 : i32
    %c0_i32_0 = arith.constant 0 : i32
    %c0_i32_1 = arith.constant 0 : i32
    return %c0_i32, %c0_i32_0 : i32, i32
  }
  func.func @transform_6(%arg0: i32) -> (i32, i32) {
    %c0_i32 = arith.constant 0 : i32
    %c0_i32_0 = arith.constant 0 : i32
    %c0_i32_1 = arith.constant 0 : i32
    return %c0_i32, %c0_i32_0 : i32, i32
  }
  func.func @transform_7(%arg0: i32) -> (i32, i32) {
    %c0_i32 = arith.constant 0 : i32
    %c0_i32_0 = arith.constant 0 : i32
    %c0_i32_1 = arith.constant 0 : i32
    return %c0_i32, %c0_i32_0 : i32, i32
  }
  func.func @transform_8(%arg0: i32) -> (i32, i32) {
    %c0_i32 = arith.constant 0 : i32
    %c0_i32_0 = arith.constant 0 : i32
    %c0_i32_1 = arith.constant 0 : i32
    return %c0_i32, %c0_i32_0 : i32, i32
  }
  func.func @transform_9(%arg0: i32) -> (i32, i32) {
    %c0_i32 = arith.constant 0 : i32
    %c0_i32_0 = arith.constant 0 : i32
    %c0_i32_1 = arith.constant 0 : i32
    return %c0_i32, %c0_i32_0 : i32, i32
  }
  func.func @transform_10(%arg0: i32) -> (i32, i32) {
    %c0_i32 = arith.constant 0 : i32
    %c0_i32_0 = arith.constant 0 : i32
    %c0_i32_1 = arith.constant 0 : i32
    return %c0_i32, %c0_i32_0 : i32, i32
  }
  func.func @transform_11(%arg0: i32) -> (i32, i32, i32) {
    %c0_i32 = arith.constant 0 : i32
    %c0_i32_0 = arith.constant 0 : i32
    %c0_i32_1 = arith.constant 0 : i32
    return %arg0, %c0_i32, %c0_i32_0 : i32, i32, i32
  }
  func.func @transform_12(%arg0: i32) -> (i32, i32, i32) {
    %c0_i32 = arith.constant 0 : i32
    %c0_i32_0 = arith.constant 0 : i32
    %c0_i32_1 = arith.constant 0 : i32
    return %arg0, %c0_i32, %c0_i32_0 : i32, i32, i32
  }
}

</mosaic_0001>

<bundles_post_ra>
// kernel: tpu_custom_call.1
= control target key start
LH: loop header
LB: loop body
LE: loop exit
PB: predicated region body
PF: predicated region fallthrough
CT: control target
= control target key end

     0   :  { %s10551_s0 = inlined_call_operand.hbm [shape: f32[2,1,32,32], index: 0, kind: input, shape index: {}]   ;;  %s10552_s1 = inlined_call_operand.hbm [shape: f32[32,32], index: 1, kind: input, shape index: {}]   ;;  %s10553_s2 = inlined_call_operand.hbm [shape: f32[32,32], index: 2, kind: input, shape index: {}]   ;;  %s10554_s3 = inlined_call_operand.hbm [shape: f32[32,32], index: 3, kind: input, shape index: {}]   ;;  %s10555_s4 = inlined_call_operand.hbm [shape: f32[32,32], index: 4, kind: input, shape index: {}]   ;;  %s10556_s5 = inlined_call_operand.hbm [shape: f32[32,32], index: 5, kind: input, shape index: {}]   ;;  %s10557_s6 = inlined_call_operand.hbm [shape: f32[32,32], index: 6, kind: input, shape index: {}]   ;;  %s10558_s7 = inlined_call_operand.vmem [shape: bf16[512,32], index: 7, kind: input, shape index: {}]   ;;  %s10559_s8 = inlined_call_operand.vmem [shape: bf16[512,32], index: 8, kind: input, shape index: {}]   ;;  %s10560_s9 = inlined_call_operand.hbm [shape: bf16[32,512], index: 9, kind: input, shape index: {}]   ;;  %s10561_s10 = inlined_call_operand.hbm [shape: bf16[32,512], index: 10, kind: input, shape index: {}]   ;;  %s10562_s11 = inlined_call_operand.hbm [shape: f32[2,512,512], index: 11, kind: output, shape index: {0}]   ;;  %s10563_s12 = inlined_call_operand.hbm [shape: f32[2,8,128], index: 12, kind: output, shape index: {1}]  }
   0x1   :  { %10582 = sst [smem:[#allocation238_spill]] %s10552_s1 }
   0x2   :  { %10583 = sst [smem:[#allocation239_spill]] %s10553_s2 }
   0x3   :  { %10584 = sst [smem:[#allocation240_spill]] %s10558_s7 }
   0x4   :  { %10585 = sst [smem:[#allocation241_spill]] %s10559_s8 }
   0x5   :  { %10586 = sst [smem:[#allocation242_spill]] %s10562_s11 }
   0x6   :  { %10587 = sst [smem:[#allocation243_spill]] %s10563_s12 }
   0x7   :  { %18 = vsyncpa [#allocation3], 0 }
   0x8   :  { %20 = vsyncpa [#allocation3 + $0x1], 0 }
   0x9   :  { %21 = vsyncpa [#allocation6], 0 }
   0xa   :  { %22 = vsyncpa [#allocation9], 0 }
   0xb   :  { %23 = vsyncpa [#allocation12], 0 }
   0xc   :  { %24 = vsyncpa [#allocation15], 0 }
   0xd   :  { %25 = vsyncpa [#allocation4], 0 }
   0xe   :  { %27 = vsyncpa [#allocation4 + $0x1], 0 }
   0xf   :  { %28 = vsyncpa [#allocation19], 0 }
  0x10   :  { %30 = vsyncpa [#allocation19 + $0x1], 0  ;;  %s7802_s21 = smov 0   ;;  %s7804_s22 = smov 0  }
  0x11   :  { %s7806_s23 = smov 0   ;;  %s7808_s24 = smov 0  }
  0x12 LB: > { %s7719_s25 = smov [#allocation5]   ;;  %s7823_s27 = sadd.s32 4294967295, %s7717_s24   ;;  %s7717_s24 = sphi %s7808_s24, %s11073_s24   ;;  %s7713_s23 = sphi %s7806_s23, %s11072_s23   ;;  %s7709_s22 = sphi %s7804_s22, %s11071_s22   ;;  %s7705_s21 = sphi %s7802_s21, %s11070_s21  }
  0x13   : > { %s341_s26 = sshll.u32 %s7719_s25, 4  ;;  %p6064_p0 = scmp.ge.s32.totalorder %s7717_s24, 1  ;;  %s7828_s26 = int_to_ptr.vmem [resolvable:$true] %s341_s26 }
  0x14   : > { %p10568_p1 = scmp.eq.s32.totalorder %s7823_s27, 0  ;;  %p329_p2 = scmp.lt.s32.totalorder %s7717_s24, 3 }
  0x15   : > { %s7720_s29 = smov [#allocation8]   ;;  %s7721_s14 = smov [#allocation11]  }
  0x16   : > { %p7830_p3 = pnand %p6064_p0, %p329_p2  ;;  %s367_s30 = sshll.u32 %s7720_s29, 4  ;;  %s7843_s30 = int_to_ptr.vmem [resolvable:$true] %s367_s30 }
  0x17   : > { %s393_s15 = sshll.u32 %s7721_s14, 4  ;;  %s10590_s1 = sld [smem:[#allocation238_spill]]  ;;  %s7845_s15 = int_to_ptr.vmem [resolvable:$true] %s393_s15 }
  0x18   : > { %s10588_s28 = scalar_select %p7830_p3, 1, 0 }
  0x19   : > { %p7160_p5 = pneg %p7830_p3 }
  0x1b   : > { %p7839_p6 = pnand %p7160_p5, %p10568_p1 }
  0x1d   : > { %s7349_s18 = scalar_lea.hbm %s10590_s1, 512  ;;  %p7855_p8 = pneg %p7839_p6 }
  0x1e   : > { %p7350_p7 = scmp.ne.s32.totalorder %s10590_s1, %s7349_s18  ;;  %p7356_p11 = scmp.lt.u32.totalorder %s7349_s18, %s10590_s1 }
  0x20   : > { %p7352_p9 = pnand %p7855_p8, %p7350_p7 }
  0x22   : > { %p7353_p10 = pneg %p7352_p9 }
  0x24   : > { %p7358_p12 = pnand %p7356_p11, %p7353_p10 }
  0x26   : > { %7361 = shalt.err (!%p7358_p12)
}
  0x27   : > { %s7362_s16 = scalar_lea.vmem %s7828_s26, 512  ;;  %p7370_p5 = scmp.lt.s32.totalorder %s7828_s26, %s7828_s26 }
  0x28   : > { %p7363_p13 = scmp.ne.s32.totalorder %s7828_s26, %s7362_s16  ;;  %p7371_p4 = scmp.lt.s32.totalorder %s7362_s16, %s7362_s16 }
  0x2a   : > { %p7365_p0 = pnand %p7363_p13, %p7855_p8  ;;  %p7372_p7 = por %p7371_p4, %p7370_p5 }
  0x2c   : > { %p7366_p2 = pneg %p7365_p0 }
  0x2e   : > { %p7373_p9 = pnand %p7372_p7, %p7366_p2 }
  0x30   : > { %7376 = shalt.err (!%p7373_p9)
}
  0x31   : > { %s10570_s17 = smov 128   ;;  %s10572_s18 = smov 8  }
  0x32   : > { %7163 = dma.hbm_to_vmem [thread:$0]  (!%p7839_p6), %s10590_s1, 512, %s7828_s26, [#allocation6], %s10570_s17, %s10570_s17, %s10572_s18  }
  0x33   : > { %s7377_s16 = scalar_lea.hbm %s10554_s3, 512 }
  0x34   : > { %p7378_p4 = scmp.ne.s32.totalorder %s10554_s3, %s7377_s16  ;;  %p7384_p12 = scmp.lt.u32.totalorder %s7377_s16, %s10554_s3 }
  0x36   : > { %p7380_p10 = pnand %p7378_p4, %p7855_p8 }
  0x38   : > { %p7381_p11 = pneg %p7380_p10 }
  0x3a   : > { %p7386_p13 = pnand %p7384_p12, %p7381_p11 }
  0x3c   : > { %7389 = shalt.err (!%p7386_p13)
}
  0x3d   : > { %s7390_s26 = scalar_lea.vmem %s7843_s30, 512  ;;  %p7398_p7 = scmp.lt.s32.totalorder %s7843_s30, %s7843_s30 }
  0x3e   : > { %p7391_p0 = scmp.ne.s32.totalorder %s7843_s30, %s7390_s26  ;;  %p7399_p9 = scmp.lt.s32.totalorder %s7390_s26, %s7390_s26 }
  0x40   : > { %p7393_p2 = pnand %p7391_p0, %p7855_p8  ;;  %p7400_p4 = por %p7399_p9, %p7398_p7 }
  0x42   : > { %p7394_p5 = pneg %p7393_p2 }
  0x44   : > { %p7401_p10 = pnand %p7400_p4, %p7394_p5 }
  0x46   : > { %7404 = shalt.err (!%p7401_p10)
}
  0x47   : > { %7169 = dma.hbm_to_vmem [thread:$0]  (!%p7839_p6), %s10554_s3, 512, %s7843_s30, [#allocation9], %s10570_s17, %s10570_s17, %s10572_s18  }
  0x48   : > { %s7405_s19 = scalar_lea.hbm %s10556_s5, 512 }
  0x49   : > { %p7406_p11 = scmp.ne.s32.totalorder %s10556_s5, %s7405_s19  ;;  %p7412_p0 = scmp.lt.u32.totalorder %s7405_s19, %s10556_s5 }
  0x4b   : > { %p7408_p12 = pnand %p7406_p11, %p7855_p8 }
  0x4d   : > { %p7409_p13 = pneg %p7408_p12 }
  0x4f   : > { %p7414_p2 = pnand %p7412_p0, %p7409_p13 }
  0x51   : > { %7417 = shalt.err (!%p7414_p2)
}
  0x52   : > { %s7418_s30 = scalar_lea.vmem %s7845_s15, 512  ;;  %p7426_p4 = scmp.lt.s32.totalorder %s7845_s15, %s7845_s15 }
  0x53   : > { %p7419_p5 = scmp.ne.s32.totalorder %s7845_s15, %s7418_s30  ;;  %p7427_p10 = scmp.lt.s32.totalorder %s7418_s30, %s7418_s30 }
  0x55   : > { %p7421_p7 = pnand %p7419_p5, %p7855_p8  ;;  %p7428_p11 = por %p7427_p10, %p7426_p4 }
  0x57   : > { %p7422_p9 = pneg %p7421_p7 }
  0x59   : > { %p7429_p12 = pnand %p7428_p11, %p7422_p9 }
  0x5b   : > { %7432 = shalt.err (!%p7429_p12)
}
  0x5c   : > { %7175 = dma.hbm_to_vmem [thread:$0]  (!%p7839_p6), %s10556_s5, 512, %s7845_s15, [#allocation12], %s10570_s17, %s10570_s17, %s10572_s18  }
  0x5d   : > { %s7724_s8 = smov [#allocation14]   ;;  %s7433_s20 = scalar_lea.hbm %s10560_s9, 1024 }
  0x5e   : > { %s425_s11 = sshll.u32 %s7724_s8, 4  ;;  %p7434_p13 = scmp.ne.s32.totalorder %s10560_s9, %s7433_s20  ;;  %s426_s11 = int_to_ptr.vmem [resolvable:$true] %s425_s11 }
  0x5f   : > { %p7440_p5 = scmp.lt.u32.totalorder %s7433_s20, %s10560_s9 }
  0x60   : > { %p7436_p0 = pnand %p7434_p13, %p7855_p8 }
  0x62   : > { %p7437_p2 = pneg %p7436_p0 }
  0x64   : > { %p7442_p7 = pnand %p7440_p5, %p7437_p2 }
  0x66   : > { %7445 = shalt.err (!%p7442_p7)
}
  0x67   : > { %s7446_s15 = scalar_lea.vmem %s426_s11, 1024  ;;  %p7454_p11 = scmp.lt.s32.totalorder %s426_s11, %s426_s11 }
  0x68   : > { %p7447_p9 = scmp.ne.s32.totalorder %s426_s11, %s7446_s15  ;;  %p7455_p12 = scmp.lt.s32.totalorder %s7446_s15, %s7446_s15 }
  0x6a   : > { %p7449_p4 = pnand %p7447_p9, %p7855_p8  ;;  %p7456_p1 = por %p7455_p12, %p7454_p11 }
  0x6c   : > { %p7450_p10 = pneg %p7449_p4 }
  0x6e   : > { %p7457_p3 = pnand %p7456_p1, %p7450_p10 }
  0x70   : > { %7460 = shalt.err (!%p7457_p3)
}
  0x71   : > { %s10574_s26 = smov 256   ;;  %s10575_s7 = smov 16  }
  0x72   : > { %7181 = dma.hbm_to_vmem [thread:$0]  (!%p7839_p6), %s10560_s9, 1024, %s426_s11, [#allocation15], %s10574_s26, %s10574_s26, %s10575_s7  }
  0x73   : > { %s7727_s19 = smov [#allocation7]   ;;  %s7728_s29 = smov [#allocation10]  }
  0x74   : > { %s354_s20 = sshll.u32 %s7727_s19, 4  ;;  %s380_s14 = sshll.u32 %s7728_s29, 4  ;;  %s355_s20 = int_to_ptr.vmem [resolvable:$true] %s354_s20  ;;  %s7952_s14 = int_to_ptr.vmem [resolvable:$true] %s380_s14 }
  0x75   : > { %s10592_s2 = sld [smem:[#allocation239_spill]] }
  0x7b   : > { %s7461_s15 = scalar_lea.hbm %s10592_s2, 512 }
  0x7c   : > { %p7462_p1 = scmp.ne.s32.totalorder %s10592_s2, %s7461_s15  ;;  %p7468_p0 = scmp.lt.u32.totalorder %s7461_s15, %s10592_s2 }
  0x7e   : > { %p7464_p3 = pnand %p7462_p1, %p7855_p8 }
  0x80   : > { %p7465_p13 = pneg %p7464_p3 }
  0x82   : > { %p7470_p2 = pnand %p7468_p0, %p7465_p13 }
  0x84   : > { %7473 = shalt.err (!%p7470_p2)
}
  0x85   : > { %s7474_s12 = scalar_lea.vmem %s355_s20, 512  ;;  %p7482_p4 = scmp.lt.s32.totalorder %s355_s20, %s355_s20 }
  0x86   : > { %p7475_p5 = scmp.ne.s32.totalorder %s355_s20, %s7474_s12  ;;  %p7483_p10 = scmp.lt.s32.totalorder %s7474_s12, %s7474_s12 }
  0x88   : > { %p7477_p7 = pnand %p7475_p5, %p7855_p8  ;;  %p7484_p11 = por %p7483_p10, %p7482_p4 }
  0x8a   : > { %p7478_p9 = pneg %p7477_p7 }
  0x8c   : > { %p7485_p12 = pnand %p7484_p11, %p7478_p9 }
  0x8e   : > { %7488 = shalt.err (!%p7485_p12)
}
  0x8f   : > { %s10593_s17 = smov 8   ;;  %s10594_s18 = smov 128  }
  0x90   : > { %7166 = dma.hbm_to_vmem [thread:$0]  (!%p7839_p6), %s10592_s2, 512, %s355_s20, [#allocation6], %s10594_s18, %s10594_s18, %s10593_s17  }
  0x91   : > { %s7489_s15 = scalar_lea.hbm %s10555_s4, 512 }
  0x92   : > { %p7490_p1 = scmp.ne.s32.totalorder %s10555_s4, %s7489_s15  ;;  %p7496_p0 = scmp.lt.u32.totalorder %s7489_s15, %s10555_s4 }
  0x94   : > { %p7492_p3 = pnand %p7490_p1, %p7855_p8 }
  0x96   : > { %p7493_p13 = pneg %p7492_p3 }
  0x98   : > { %p7498_p2 = pnand %p7496_p0, %p7493_p13 }
  0x9a   : > { %7501 = shalt.err (!%p7498_p2)
}
  0x9b   : > { %s7502_s20 = scalar_lea.vmem %s7952_s14, 512  ;;  %p7510_p4 = scmp.lt.s32.totalorder %s7952_s14, %s7952_s14 }
  0x9c   : > { %p7503_p5 = scmp.ne.s32.totalorder %s7952_s14, %s7502_s20  ;;  %p7511_p10 = scmp.lt.s32.totalorder %s7502_s20, %s7502_s20 }
  0x9e   : > { %p7505_p7 = pnand %p7503_p5, %p7855_p8  ;;  %p7512_p11 = por %p7511_p10, %p7510_p4 }
  0xa0   : > { %p7506_p9 = pneg %p7505_p7 }
  0xa2   : > { %p7513_p12 = pnand %p7512_p11, %p7506_p9 }
  0xa4   : > { %7516 = shalt.err (!%p7513_p12)
}
  0xa5   : > { %7172 = dma.hbm_to_vmem [thread:$0]  (!%p7839_p6), %s10555_s4, 512, %s7952_s14, [#allocation9], %s10594_s18, %s10594_s18, %s10593_s17  }
  0xa6   : > { %s7729_s29 = smov [#allocation13]   ;;  %s7730_s30 = smov [#allocation16]  }
  0xa7   : > { %s406_s16 = sshll.u32 %s7729_s29, 4  ;;  %s438_s15 = sshll.u32 %s7730_s30, 4  ;;  %s407_s16 = int_to_ptr.vmem [resolvable:$true] %s406_s16  ;;  %s8001_s15 = int_to_ptr.vmem [resolvable:$true] %s438_s15 }
  0xa8   : > { %s7517_s12 = scalar_lea.hbm %s10557_s6, 512 }
  0xa9   : > { %p7518_p1 = scmp.ne.s32.totalorder %s10557_s6, %s7517_s12  ;;  %p7524_p0 = scmp.lt.u32.totalorder %s7517_s12, %s10557_s6 }
  0xab   : > { %p7520_p3 = pnand %p7518_p1, %p7855_p8 }
  0xad   : > { %p7521_p13 = pneg %p7520_p3 }
  0xaf   : > { %p7526_p2 = pnand %p7524_p0, %p7521_p13 }
  0xb1   : > { %7529 = shalt.err (!%p7526_p2)
}
  0xb2   : > { %s7530_s19 = scalar_lea.vmem %s407_s16, 512  ;;  %p7538_p4 = scmp.lt.s32.totalorder %s407_s16, %s407_s16 }
  0xb3   : > { %p7531_p5 = scmp.ne.s32.totalorder %s407_s16, %s7530_s19  ;;  %p7539_p10 = scmp.lt.s32.totalorder %s7530_s19, %s7530_s19 }
  0xb5   : > { %p7533_p7 = pnand %p7531_p5, %p7855_p8  ;;  %p7540_p11 = por %p7539_p10, %p7538_p4 }
  0xb7   : > { %p7534_p9 = pneg %p7533_p7 }
  0xb9   : > { %p7541_p12 = pnand %p7540_p11, %p7534_p9 }
  0xbb   : > { %7544 = shalt.err (!%p7541_p12)
}
  0xbc   : > { %7178 = dma.hbm_to_vmem [thread:$0]  (!%p7839_p6), %s10557_s6, 512, %s407_s16, [#allocation12], %s10594_s18, %s10594_s18, %s10593_s17  }
  0xbd   : > { %s7545_s11 = scalar_lea.hbm %s10561_s10, 1024 }
  0xbe   : > { %p7546_p1 = scmp.ne.s32.totalorder %s10561_s10, %s7545_s11  ;;  %p7552_p0 = scmp.lt.u32.totalorder %s7545_s11, %s10561_s10 }
  0xc0   : > { %p7548_p3 = pnand %p7546_p1, %p7855_p8 }
  0xc2   : > { %p7549_p13 = pneg %p7548_p3 }
  0xc4   : > { %p7554_p2 = pnand %p7552_p0, %p7549_p13 }
  0xc6   : > { %7557 = shalt.err (!%p7554_p2)
}
  0xc7   : > { %s7558_s16 = scalar_lea.vmem %s8001_s15, 1024  ;;  %p7566_p4 = scmp.lt.s32.totalorder %s8001_s15, %s8001_s15 }
  0xc8   : > { %p7559_p5 = scmp.ne.s32.totalorder %s8001_s15, %s7558_s16  ;;  %p7567_p10 = scmp.lt.s32.totalorder %s7558_s16, %s7558_s16 }
  0xca   : > { %p7561_p7 = pnand %p7559_p5, %p7855_p8  ;;  %p7568_p11 = por %p7567_p10, %p7566_p4 }
  0xcc   : > { %p7562_p9 = pneg %p7561_p7 }
  0xce   : > { %p7569_p12 = pnand %p7568_p11, %p7562_p9 }
  0xd0   : > { %7572 = shalt.err (!%p7569_p12)
}
  0xd1   : > { %s10595_s19 = smov 16   ;;  %s10596_s7 = smov 256  }
  0xd2   : > { %7184 = dma.hbm_to_vmem [thread:$0]  (!%p7839_p6), %s10561_s10, 1024, %s8001_s15, [#allocation15], %s10596_s7, %s10596_s7, %s10595_s19  }
  0xd3   : > { %s6063_s13 = sadd.s32 4294967294, %s7717_s24   ;;  %s8052_s25 = sadd.s32 1, %s7717_s24  }
  0xd4   : > { %s40_s8 = ssub.s32 %s7717_s24, %s8052_s25  ;;  %s43_s11 = sadd.s32 1, %s7713_s23 }
  0xd5   : > { %p41_p8 = scmp.eq.s32.totalorder %s40_s8, 0  ;;  %p50_p1 = scmp.ne.s32.totalorder %s7713_s23, %s7709_s22 }
  0xd6   : > { %p51_p3 = scmp.eq.s32.totalorder %s7717_s24, 0  ;;  %p56_p13 = scmp.ne.s32.totalorder %s7709_s22, %s7705_s21 }
  0xd7   : > { %s8063_s12 = scalar_select %p41_p8, %s7713_s23, %s43_s11  }
  0xd8   : > { %p8065_p0 = por %p51_p3, %p50_p1  ;;  %p10598_p2 = scmp.eq.s32.totalorder %s7823_s27, 0 }
  0xd9   : > { %p290_p5 = scmp.eq.s32.totalorder %s7823_s27, 1  ;;  %p296_p7 = scmp.eq.s32.totalorder %s6063_s13, 1 }
  0xda   : > { %p8071_p6 = por %p10598_p2, %p56_p13  ;;  %p7204_p9 = scmp.lt.s32.totalorder %s7717_s24, 2 }
  0xdb   : > { %s452_s26 = sand.u32 1, %s7713_s23   ;;  %p8078_p4 = por %p290_p5, %p50_p1 }
  0xdc   : > { %p8082_p10 = por %p296_p7, %p56_p13  ;;  %s6074_s19 = sshll.u32 %s452_s26, 5 }
  0xdd   : > { %s10600_s14 = scalar_select %p8078_p4, 1, 0 }
  0xde   : > { %s10601_s16 = scalar_select %p8082_p10, 1, 0 }
  0xdf   : > { %s6456_s7 = sshll.u32 %s7717_s24, 9  ;;  %s456_s13 = scalar_lea.vmem [#allocation2], %s6074_s19 }
  0xe0   : > { %s8090_s8 = scalar_lea.hbm %s10551_s0, %s6456_s7  ;;  %s463_s11 = sshll.u32 %s456_s13, 4  ;;  %s8092_s11 = int_to_ptr.vmem [resolvable:$true] %s463_s11 }
  0xe1   : > { %p8096_p11 = pnand %p7204_p9, %p8065_p0  ;;  %s8100_s2 = scalar_lea.sflag [#allocation3], %s452_s26 }
  0xe2   : > { %s7573_s29 = scalar_lea.hbm %s8090_s8, 512  ;;  %s7578_s20 = scalar_lea.hbm %s10551_s0, 1024 }
  0xe3   : > { %p7574_p12 = scmp.ne.s32.totalorder %s8090_s8, %s7573_s29  ;;  %p7575_p8 = pneg %p8096_p11 }
  0xe4   : > { %p7579_p13 = scmp.lt.u32.totalorder %s8090_s8, %s10551_s0  ;;  %p7580_p0 = scmp.lt.u32.totalorder %s7578_s20, %s7573_s29 }
  0xe5   : > { %p7576_p1 = pnand %p7575_p8, %p7574_p12  ;;  %p7582_p5 = scmp.lt.u32.totalorder %s7573_s29, %s8090_s8 }
  0xe6   : > { %p7581_p2 = por %p7580_p0, %p7579_p13 }
  0xe7   : > { %p7577_p3 = pneg %p7576_p1 }
  0xe8   : > { %p7583_p7 = por %p7582_p5, %p7581_p2 }
  0xea   : > { %p7584_p9 = pnand %p7583_p7, %p7577_p3 }
  0xec   : > { %7587 = shalt.err (!%p7584_p9)
}
  0xed   : > { %s7588_s26 = scalar_lea.vmem %s8092_s11, 512  ;;  %s7731_s19 = smov [#allocation2]  }
  0xee   : > { %p7589_p12 = scmp.ne.s32.totalorder %s8092_s11, %s7588_s26  ;;  %s7593_s7 = sshll.u32 %s7731_s19, 4  ;;  %s7594_s7 = int_to_ptr.vmem [resolvable:$false] %s7593_s7 }
  0xef   : > { %s7595_s30 = scalar_lea.vmem %s7594_s7, 1024  ;;  %p7596_p4 = scmp.lt.s32.totalorder %s8092_s11, %s7594_s7 }
  0xf0   : > { %p7591_p1 = pnand %p7589_p12, %p7575_p8  ;;  %p7597_p13 = scmp.lt.s32.totalorder %s7595_s30, %s7588_s26 }
  0xf2   : > { %p7592_p10 = pneg %p7591_p1  ;;  %p7598_p0 = por %p7597_p13, %p7596_p4 }
  0xf4   : > { %p7599_p2 = pnand %p7598_p0, %p7592_p10 }
  0xf6   : > { %7602 = shalt.err (!%p7599_p2)
}
  0xf7   : > { %7188 = dma.hbm_to_vmem [thread:$0]  (!%p8096_p11), %s8090_s8, 512, %s8092_s11, %s8100_s2, %s10594_s18, %s10594_s18, %s10593_s17  }
  0xf8   : > { %p10603_p8 = scmp.ne.s32.totalorder %s10588_s28, 0 }
  0xfa   : > { %475 = sbr.rel (%p10603_p8) target bundleno = 2039 (0x7f7), region = 64 }
 0x101   : > { %s8134_s29 = sand.u32 1, %s7709_s22  }
 0x102   : > { %s6078_s20 = sshll.u32 %s8134_s29, 5  ;;  %s478_s13 = scalar_lea.sflag [#allocation3], %s8134_s29 }
 0x103   : > { %s481_s26 = scalar_lea.vmem [#allocation2], %s6078_s20 }
 0x104   : > { %7676 = dma.done.wait (%p8071_p6), %s478_s13, 512  }
 0x105   : > { %7678 = vsyncadd (%p8071_p6), %s478_s13, 4294966784  ;;  %p10604_p4 = scmp.eq.s32.totalorder %s7823_s27, 0 }
 0x107   : > { %7680 = dma.done.wait (%p10604_p4), [#allocation6], 1024   ;;  %p10605_p10 = pmov %p10604_p4 }
 0x108   : > { %p10606_p11 = pmov %p10604_p4 }
 0x109   : > { %7682 = vsyncadd (%p10605_p10), [#allocation6], 4294966272 }
 0x10a   : > { %7684 = dma.done.wait (%p10606_p11), [#allocation9], 1024   ;;  %p10607_p3 = pmov %p10604_p4 }
 0x10c   : > { %7686 = vsyncadd (%p10607_p3), [#allocation9], 4294966272  ;;  %p10608_p5 = pmov %p10607_p3 }
 0x10d   : > { %p10609_p7 = pmov %p10607_p3 }
 0x10e   : > { %7688 = dma.done.wait (%p10608_p5), [#allocation12], 1024  }
 0x10f   : > { %7690 = vsyncadd (%p10609_p7), [#allocation12], 4294966272  ;;  %p10610_p6 = pmov %p10607_p3 }
 0x110   : > { %p10611_p9 = pmov %p10607_p3 }
 0x111   : > { %7692 = dma.done.wait (%p10610_p6), [#allocation15], 2048  }
 0x112   : > { %7694 = vsyncadd (%p10611_p9), [#allocation15], 4294965248  ;;  %vm580_vm0 = vcmask 261120   ;;  %v560_v0 = vld [vmem:[%s481_s26] sm:$0xff]  ;;  %v561_v1 = vld [vmem:[%s481_s26 + $0x8] sm:$0xff]  ;;  %s10612_s28 = sld [smem:[#allocation240_spill]] }
 0x113   : > { %v562_v2 = vld [vmem:[%s481_s26 + $0x10] sm:$0xff]  ;;  %v6998_v3 = vpack.c.bf16 %v561_v1, %v560_v0  ;;  %v563_v4 = vld [vmem:[%s481_s26 + $0x18] sm:$0xff]  ;;  %v564_v5 = vld [vmem:[#allocation5] sm:$0xff]  ;;  %s10613_s26 = sld [smem:[#allocation241_spill]]  ;;  %s6087_s7 = sshll.u32 %s8134_s29, 11 }
 0x114   : > { %v568_v6 = vld [vmem:[#allocation7] sm:$0xff]  ;;  %v7002_v7 = vpack.c.bf16 %v563_v4, %v562_v2  ;;  %6650 = vmatprep.mubr.msk.f32.mxu0 %vm580_vm0, %v564_v5  ;;  %v573_v9 = vld [vmem:[#allocation8 + $0x8] sm:$0xff]  ;;  %v574_v13 = vld [vmem:[#allocation8 + $0x10] sm:$0xff]  ;;  %s9931_s30 = scalar_lea.vmem [#allocation17], %s6087_s7  ;;  %s6457_s20 = sshll.u32 %s7823_s27, 15 }
 0x115   : > { %6664 = vmatprep.mubr.msk.f32.mxu1 %vm580_vm0, %v568_v6  ;;  %6999 = vmatprep.subr.bf16.mxu0 %v6998_v3  ;;  %v572_v8 = vld [vmem:[#allocation8] sm:$0xff]  ;;  %v577_v12 = vld [vmem:[#allocation10 + $0x8] sm:$0xff]  ;;  %v575_v14 = vld [vmem:[#allocation8 + $0x18] sm:$0xff]  ;;  %s11065_s2 = sld [smem:[#allocation242_spill]]  ;;  %s5869_s18 = sshll.u32 %s9931_s30, 4  ;;  %s10476_s18 = int_to_ptr.vmem [resolvable:$true] %s5869_s18 }
 0x116   : > { %7007 = vmatprep.subr.bf16.mxu1 %v6998_v3  ;;  %7001 = vmatpush3.bf16.msra.mxu0 %v6998_v3  ;;  %v576_v10 = vld [vmem:[#allocation10] sm:$0xff]  ;;  %v7014_v11 = vpack.c.bf16 %v573_v9, %v572_v8  ;;  %v565_v15 = vld [vmem:[#allocation5 + $0x8] sm:$0xff]  ;;  %v578_v18 = vld [vmem:[#allocation10 + $0x10] sm:$0xff]  ;;  %v7018_v24 = vpack.c.bf16 %v575_v14, %v574_v13  ;;  %s5851_s15 = scalar_lea.sflag [#allocation4], %s8134_s29  ;;  %s7603_s8 = scalar_lea.vmem %s10476_s18, 32768 }
 0x117   : > { %7009 = vmatpush3.bf16.msra.mxu1 %v6998_v3  ;;  %7003 = vmatprep.subr.bf16.mxu0 %v7002_v7  ;;  %v569_v16 = vld [vmem:[#allocation7 + $0x8] sm:$0xff]  ;;  %v7022_v17 = vpack.c.bf16 %v577_v12, %v576_v10  ;;  %v579_v19 = vld [vmem:[#allocation10 + $0x18] sm:$0xff]  ;;  %v566_v20 = vld [vmem:[#allocation5 + $0x10] sm:$0xff]  ;;  %p7604_p12 = scmp.ne.s32.totalorder %s10476_s18, %s7603_s8  ;;  %p11066_p1 = scmp.ne.s32.totalorder %s10600_s14, 0 }
 0x118   : > { %7011 = vmatprep.subr.bf16.mxu1 %v7002_v7  ;;  %v570_v21 = vld [vmem:[#allocation7 + $0x10] sm:$0xff]  ;;  %v567_v22 = vld [vmem:[#allocation5 + $0x18] sm:$0xff]  ;;  %v7026_v25 = vpack.c.bf16 %v579_v19, %v578_v18  ;;  %v8185_v34 = vld [vmem:[%s10612_s28] sm:$0xff]   ;;  %s7733_s11 = smov [#allocation17]  }
 0x119   : > { %v571_v23 = vld [vmem:[#allocation7 + $0x18] sm:$0xff]  ;;  %v8190_v35 = vld [vmem:[%s10612_s28 + $0xf0] sm:$0xff]   ;;  %v1144_v48 = vld [vmem:[#allocation11 + $0x8] sm:$0xff]  ;;  %p7605_p13 = pnand %p7604_p12, %p11066_p1  ;;  %s7607_s19 = sshll.u32 %s7733_s11, 4  ;;  %s7608_s19 = int_to_ptr.vmem [resolvable:$false] %s7607_s19 }
 0x11a   : > { %7005 = vmatpush3.bf16.msra.mxu0 %v7002_v7  ;;  %v1148_v49 = vld [vmem:[#allocation13 + $0x8] sm:$0xff]  ;;  %v1143_v50 = vld [vmem:[#allocation11] sm:$0xff]  ;;  %v1146_v55 = vld [vmem:[#allocation11 + $0x18] sm:$0xff]  ;;  %s7609_s7 = scalar_lea.vmem %s7608_s19, 65536  ;;  %p7610_p2 = scmp.lt.s32.totalorder %s10476_s18, %s7608_s19 }
 0x11b   : > { %7013 = vmatpush3.bf16.msra.mxu1 %v7002_v7  ;;  %7015 = vmatprep.subr.bf16.mxu0 %v7014_v11  ;;  %v1147_v51 = vld [vmem:[#allocation13] sm:$0xff]  ;;  %v1150_v56 = vld [vmem:[#allocation13 + $0x18] sm:$0xff]  ;;  %v1145_v62 = vld [vmem:[#allocation11 + $0x10] sm:$0xff]  ;;  %s10473_s17 = scalar_lea.hbm %s11065_s2, %s6457_s20  ;;  %p7606_p0 = pneg %p7605_p13 }
 0x11c   : > { %7023 = vmatprep.subr.bf16.mxu1 %v7022_v17  ;;  %v1149_v63 = vld [vmem:[#allocation13 + $0x10] sm:$0xff]  ;;  %p7611_p8 = scmp.lt.s32.totalorder %s7609_s7, %s7603_s8 }
 0x11d   : > { %6651 = vmatmul.mubr.msk.f32.vlgmr.msra.gmra.mrb[0].mxu0 %vm580_vm0, %v565_v15 }
 0x11e   : > { %6665 = vmatmul.mubr.msk.f32.vlgmr.msra.gmra.mrb[0].mxu1 %vm580_vm0, %v569_v16  ;;  %6653 = vmatprep.mubr.msk.f32.mxu0 %vm580_vm0, %v566_v20  ;;  %p7612_p4 = por %p7611_p8, %p7610_p2 }
 0x11f   : > { %6667 = vmatprep.mubr.msk.f32.mxu1 %vm580_vm0, %v570_v21  ;;  %7017 = vmatpush3.bf16.msra.mxu0 %v7014_v11 }
 0x120   : > { %7025 = vmatpush3.bf16.msra.mxu1 %v7022_v17  ;;  %7019 = vmatprep.subr.bf16.mxu0 %v7018_v24  ;;  %p7613_p10 = pnand %p7612_p4, %p7606_p0 }
 0x121   : > { %7027 = vmatprep.subr.bf16.mxu1 %v7026_v25  ;;  %6654 = vmatmul.mubr.msk.f32.gmra.mrb[2].mxu0 %vm580_vm0, %v567_v22 }
 0x122   : > { %6668 = vmatmul.mubr.msk.f32.gmra.mrb[2].mxu1 %vm580_vm0, %v571_v23 }
 0x123   : > { %7021 = vmatpush3.bf16.msra.mxu0 %v7018_v24 }
 0x124   : > { %7029 = vmatpush3.bf16.msra.mxu1 %v7026_v25  ;;  %7031 = vmatprep.subr.bf16.mxu0 %v7014_v11 }
 0x1f0   : > { %v6652_v26 = vpop.f32.mrb[0].mxu0 }
 0x1f1   : > { %v6666_v27 = vpop.f32.mrb[0].mxu1  ;;  %v659_v28 = vpop.f32.mrb[1].mxu0 }
 0x1f2   : > { %v756_v29 = vpop.f32.mrb[1].mxu1  ;;  %6678 = vmatprep.mubr.msk.f32.mxu0 %vm580_vm0, %v659_v28 }
 0x1f3   : > { %6692 = vmatprep.mubr.msk.f32.mxu1 %vm580_vm0, %v756_v29  ;;  %6679 = vmatmul.mubr.msk.f32.vlgmr.msra.gmra.mrb[4].mxu0 %vm580_vm0, %v6652_v26 }
 0x1f4   : > { %6693 = vmatmul.mubr.msk.f32.vlgmr.msra.gmra.mrb[4].mxu1 %vm580_vm0, %v6666_v27  ;;  %v6655_v30 = vpop.f32.mrb[2].mxu0  ;;  %7033 = vmatpush3.bf16.msra.mxu0 %v7014_v11 }
 0x1f5   : > { %v6669_v31 = vpop.f32.mrb[2].mxu1  ;;  %v669_v32 = vpop.f32.mrb[3].mxu0  ;;  %7035 = vmatprep.subr.bf16.mxu0 %v7018_v24 }
 0x1f6   : > { %v766_v33 = vpop.f32.mrb[3].mxu1  ;;  %6681 = vmatprep.mubr.msk.f32.mxu0 %vm580_vm0, %v669_v32 }
 0x1f7   : > { %6695 = vmatprep.mubr.msk.f32.mxu1 %vm580_vm0, %v766_v33  ;;  %6682 = vmatmul.mubr.msk.f32.gmra.mrb[6].mxu0 %vm580_vm0, %v6655_v30 }
 0x1f8   : > { %6696 = vmatmul.mubr.msk.f32.gmra.mrb[6].mxu1 %vm580_vm0, %v6669_v31  ;;  %7037 = vmatpush3.bf16.msra.mxu0 %v7018_v24  ;;  %v8199_v24 = vld [vmem:[%s10612_s28 + $0x8] sm:$0xff]  }
 0x1f9   : > { %6706 = vmatprep.mubr.msk.f32.mxu0 %vm580_vm0, %v756_v29  ;;  %7039 = vmatprep.subr.bf16.mxu0 %v7022_v17  ;;  %v8232_v29 = vld [vmem:[%s10613_s26 + $0x8] sm:$0xff]  }
 0x1fa   : > { %6790 = vmatprep.mubr.msk.bf16.mxu1 %vm580_vm0, %v8190_v35 }
 0x1fb   : > { %6707 = vmatmul.mubr.msk.f32.vlgmr.msra.gmra.mrb[8].mxu0 %vm580_vm0, %v6666_v27  ;;  %v8214_v27 = vld [vmem:[%s10613_s26] sm:$0xff]  }
 0x1fc   : > { %7041 = vmatpush3.bf16.msra.mxu0 %v7022_v17  ;;  %6709 = vmatprep.mubr.msk.f32.mxu0 %vm580_vm0, %v766_v33  ;;  %v8260_v33 = vld [vmem:[%s10613_s26 + $0x18] sm:$0xff]  }
 0x1fd   : > { %7043 = vmatprep.subr.bf16.mxu0 %v7026_v25 }
 0x1ff   : > { %6710 = vmatmul.mubr.msk.f32.gmra.mrb[10].mxu0 %vm580_vm0, %v6669_v31  ;;  %v8242_v31 = vld [vmem:[%s10613_s26 + $0x10] sm:$0xff]  }
 0x200   : > { %7045 = vmatpush3.bf16.msra.mxu0 %v7026_v25  ;;  %6720 = vmatprep.mubr.msk.f32.mxu0 %vm580_vm0, %v659_v28  ;;  %v8204_v25 = vld [vmem:[%s10612_s28 + $0xf8] sm:$0xff]  }
 0x201   : > { %v8227_v28 = vld [vmem:[%s10612_s28 + $0x18] sm:$0xff]  }
 0x203   : > { %6721 = vmatmul.mubr.msk.f32.vlgmr.msra.gmra.mrb[8].mxu0 %vm580_vm0, %v6652_v26  ;;  %v8209_v26 = vld [vmem:[%s10612_s28 + $0x10] sm:$0xff]  }
 0x204   : > { %6723 = vmatprep.mubr.msk.f32.mxu0 %vm580_vm0, %v669_v32  ;;  %v8255_v32 = vld [vmem:[%s10612_s28 + $0x28] sm:$0xff]  }
 0x207   : > { %6724 = vmatmul.mubr.msk.f32.gmra.mrb[10].mxu0 %vm580_vm0, %v6655_v30  ;;  %v8237_v30 = vld [vmem:[%s10612_s28 + $0x20] sm:$0xff]  }
 0x208   : > { %6730 = vmatprep.mubr.msk.bf16.mxu0 %vm580_vm0, %v8185_v34 }
 0x2c6   : > { %v6680_v36 = vpop.f32.mrb[4].mxu0 }
 0x2c7   : > { %v6694_v37 = vpop.f32.mrb[4].mxu1  ;;  %v853_v39 = vpop.f32.mrb[5].mxu0 }
 0x2c8   : > { %v970_v38 = vsub.f32 %v6680_v36, %v6694_v37  ;;  %v950_v40 = vpop.f32.mrb[5].mxu1  ;;  %v8265_v36 = vld [vmem:[%s10612_s28 + $0x30] sm:$0xff]   ;;  %v8270_v37 = vld [vmem:[%s10613_s26 + $0x20] sm:$0xff]  }
 0x2c9   : > { %v969_v41 = vsub.f32 %v853_v39, %v950_v40  ;;  %v8288_v39 = vld [vmem:[%s10613_s26 + $0x28] sm:$0xff]   ;;  %v8293_v40 = vld [vmem:[%s10612_s28 + $0x40] sm:$0xff]  }
 0x2ca   : > { %v6683_v42 = vpop.f32.mrb[6].mxu0  ;;  %v1152_v53 = vmul.f32 %v1144_v48, %v970_v38  ;;  %v1170_v54 = vmul.f32 %v1148_v49, %v970_v38  ;;  %v8283_v38 = vld [vmem:[%s10612_s28 + $0x38] sm:$0xff]  }
 0x2cb   : > { %v6697_v43 = vpop.f32.mrb[6].mxu1  ;;  %v863_v45 = vpop.f32.mrb[7].mxu0  ;;  %v1151_v60 = vmul.f32 %v1143_v50, %v969_v41  ;;  %v1169_v61 = vmul.f32 %v1147_v51, %v969_v41  ;;  %v8298_v41 = vld [vmem:[%s10613_s26 + $0x30] sm:$0xff]  }
 0x2cc   : > { %v972_v44 = vsub.f32 %v6683_v42, %v6697_v43  ;;  %v960_v46 = vpop.f32.mrb[7].mxu1  ;;  %v8311_v42 = vld [vmem:[%s10612_s28 + $0x48] sm:$0xff]   ;;  %v8316_v43 = vld [vmem:[%s10613_s26 + $0x38] sm:$0xff]  }
 0x2cd   : > { %v971_v47 = vsub.f32 %v863_v45, %v960_v46  ;;  %v8326_v45 = vld [vmem:[%s10613_s26 + $0x40] sm:$0xff]   ;;  %v8339_v46 = vld [vmem:[%s10612_s28 + $0x58] sm:$0xff]  }
 0x2ce   : > { %v1154_v4 = vmul.f32 %v1146_v55, %v972_v44  ;;  %v1172_v5 = vmul.f32 %v1150_v56, %v972_v44  ;;  %v8321_v44 = vld [vmem:[%s10612_s28 + $0x50] sm:$0xff]  }
 0x2cf   : > { %v1153_v9 = vmul.f32 %v1145_v62, %v971_v47  ;;  %v1171_v10 = vmul.f32 %v1149_v63, %v971_v47  ;;  %v8344_v47 = vld [vmem:[%s10613_s26 + $0x48] sm:$0xff]  }
 0x2d6   : > { %v6722_v52 = vpop.f32.mrb[8].mxu0 }
 0x2d7   : > { %v1156_v57 = vmul.f32 %v6722_v52, %v1148_v49  ;;  %v1166_v58 = vmul.f32 %v6722_v52, %v1144_v48  ;;  %v1124_v59 = vpop.f32.mrb[9].mxu0  ;;  %v8349_v48 = vld [vmem:[%s10612_s28 + $0x60] sm:$0xff]   ;;  %v8354_v49 = vld [vmem:[%s10613_s26 + $0x50] sm:$0xff]  }
 0x2d8   : > { %v1155_v0 = vmul.f32 %v1147_v51, %v1124_v59  ;;  %v1165_v1 = vmul.f32 %v1143_v50, %v1124_v59  ;;  %v8367_v50 = vld [vmem:[%s10612_s28 + $0x68] sm:$0xff]   ;;  %v8372_v51 = vld [vmem:[%s10613_s26 + $0x58] sm:$0xff]   ;;  %v8377_v52 = vld [vmem:[%s10612_s28 + $0x70] sm:$0xff]  }
 0x2d9   : > { %v1160_v2 = vsub.f32 %v1152_v53, %v1156_v57  ;;  %v1174_v3 = vadd.f32 %v1170_v54, %v1166_v58  ;;  %v8382_v53 = vld [vmem:[%s10613_s26 + $0x60] sm:$0xff]   ;;  %v8395_v54 = vld [vmem:[%s10612_s28 + $0x78] sm:$0xff]   ;;  %v8410_v57 = vld [vmem:[%s10613_s26 + $0x70] sm:$0xff]  }
 0x2da   : > { %v1159_v6 = vsub.f32 %v1151_v60, %v1155_v0  ;;  %v1173_v7 = vadd.f32 %v1169_v61, %v1165_v1  ;;  %v6725_v8 = vpop.f32.mrb[10].mxu0  ;;  %v8423_v58 = vld [vmem:[%s10612_s28 + $0x88] sm:$0xff]   ;;  %v8428_v59 = vld [vmem:[%s10613_s26 + $0x78] sm:$0xff]   ;;  %v8433_v60 = vld [vmem:[%s10612_s28 + $0x90] sm:$0xff]  }
 0x2db   : > { %v1158_v11 = vmul.f32 %v6725_v8, %v1150_v56  ;;  %v1168_v12 = vmul.f32 %v6725_v8, %v1146_v55  ;;  %v1134_v13 = vpop.f32.mrb[11].mxu0  ;;  %v8400_v55 = vld [vmem:[%s10613_s26 + $0x68] sm:$0xff]   ;;  %v8405_v56 = vld [vmem:[%s10612_s28 + $0x80] sm:$0xff]   ;;  %v8466_v1 = vld [vmem:[%s10613_s26 + $0x90] sm:$0xff]  }
 0x2dc   : > { %v1163_v14 = vpack.c.bf16 %v1160_v2, %v1159_v6  ;;  %v1157_v15 = vmul.f32 %v1149_v63, %v1134_v13  ;;  %v1167_v16 = vmul.f32 %v1145_v62, %v1134_v13  ;;  %v1177_v17 = vpack.c.bf16 %v1174_v3, %v1173_v7  ;;  %v8438_v61 = vld [vmem:[%s10613_s26 + $0x80] sm:$0xff]   ;;  %v8451_v62 = vld [vmem:[%s10612_s28 + $0x98] sm:$0xff]   ;;  %v8456_v63 = vld [vmem:[%s10613_s26 + $0x88] sm:$0xff]  }
 0x2dd   : > { %v1162_v18 = vsub.f32 %v1154_v4, %v1158_v11  ;;  %v1176_v19 = vadd.f32 %v1172_v5, %v1168_v12  ;;  %v8461_v0 = vld [vmem:[%s10612_s28 + $0xa0] sm:$0xff]   ;;  %v8479_v2 = vld [vmem:[%s10612_s28 + $0xa8] sm:$0xff]   ;;  %v8484_v3 = vld [vmem:[%s10613_s26 + $0x98] sm:$0xff]  }
 0x2de   : > { %v1161_v20 = vsub.f32 %v1153_v9, %v1157_v15  ;;  %v1175_v21 = vadd.f32 %v1171_v10, %v1167_v16  ;;  %6726 = vmatprep.subr.bf16.mxu0 %v1163_v14  ;;  %7046 = vmatprep.subr.bf16.mxu1 %v1163_v14  ;;  %v8489_v4 = vld [vmem:[%s10612_s28 + $0xb0] sm:$0xff]   ;;  %v8494_v5 = vld [vmem:[%s10613_s26 + $0xa0] sm:$0xff]   ;;  %v8507_v7 = vld [vmem:[%s10612_s28 + $0xb8] sm:$0xff]  }
 0x2df   : > { %6727 = vmatpush3.bf16.msra.mxu0 %v1163_v14  ;;  %7048 = vmatpush3.bf16.msra.mxu1 %v1163_v14  ;;  %v7327_v6 = vld [vmem:[#allocation14 + $0x4] ss:$16 sps:$4 sm:$0xff]   ;;  %v8512_v8 = vld [vmem:[%s10613_s26 + $0xa8] sm:$0xff]   ;;  %v8540_v13 = vld [vmem:[%s10613_s26 + $0xb8] sm:$0xff]  }
 0x2e0   : > { %v1164_v22 = vpack.c.bf16 %v1162_v18, %v1161_v20  ;;  %v1178_v23 = vpack.c.bf16 %v1176_v19, %v1175_v21  ;;  %v7330_v9 = vld [vmem:[#allocation14 + $0xc] ss:$16 sps:$4 sm:$0xff]   ;;  %v8517_v10 = vld [vmem:[%s10612_s28 + $0xc0] sm:$0xff]   ;;  %v8522_v11 = vld [vmem:[%s10613_s26 + $0xb0] sm:$0xff]  }
 0x2e1   : > { %v8535_v12 = vld [vmem:[%s10612_s28 + $0xc8] sm:$0xff]   ;;  %v8550_v15 = vld [vmem:[%s10613_s26 + $0xc0] sm:$0xff]   ;;  %v8563_v16 = vld [vmem:[%s10612_s28 + $0xd8] sm:$0xff]  }
 0x2e2   : > { %6728 = vmatprep.subr.bf16.mxu0 %v1164_v22  ;;  %7047 = vmatprep.subr.bf16.mxu1 %v1164_v22  ;;  %v8573_v18 = vld [vmem:[%s10612_s28 + $0xe0] sm:$0xff]   ;;  %v8578_v19 = vld [vmem:[%s10613_s26 + $0xd0] sm:$0xff]   ;;  %v8591_v20 = vld [vmem:[%s10612_s28 + $0xe8] sm:$0xff]  }
 0x2e3   : > { %6729 = vmatpush3.bf16.msra.mxu0 %v1164_v22  ;;  %7049 = vmatpush3.bf16.msra.mxu1 %v1164_v22  ;;  %v8596_v21 = vld [vmem:[%s10613_s26 + $0xd8] sm:$0xff]  }
 0x2e4   : > { %6794 = vmatprep.subr.bf16.mxu0 %v1177_v17  ;;  %6862 = vmatprep.subr.bf16.mxu1 %v1163_v14 }
 0x2e6   : > { %6731 = vmatmul.mubr.msk.bf16.vlgmr.msra.gmra.mrb[12].mxu0 %vm580_vm0, %v8199_v24  ;;  %6791 = vmatmul.mubr.msk.bf16.vlgmr.msra.gmra.mrb[8].mxu1 %vm580_vm0, %v8204_v25 }
 0x2e7   : > { %6795 = vmatpush3.bf16.msra.mxu0 %v1177_v17  ;;  %6863 = vmatpush3.bf16.msra.mxu1 %v1163_v14  ;;  %v8545_v14 = vld [vmem:[%s10612_s28 + $0xd0] sm:$0xff]  }
 0x2e8   : > { %6796 = vmatprep.subr.bf16.mxu0 %v1178_v23  ;;  %6864 = vmatprep.subr.bf16.mxu1 %v1164_v22 }
 0x2e9   : > { %6734 = vmatprep.mubr.msk.bf16.mxu0 %vm580_vm0, %v8209_v26  ;;  %6866 = vmatprep.mubr.msk.bf16.mxu1 %vm580_vm0, %v8214_v27 }
 0x2eb   : > { %6797 = vmatpush3.bf16.msra.mxu0 %v1178_v23  ;;  %6865 = vmatpush3.bf16.msra.mxu1 %v1164_v22  ;;  %v8601_v22 = vld [vmem:[%s10613_s26 + $0xe0] sm:$0xff]  }
 0x2ec   : > { %6930 = vmatprep.subr.bf16.mxu1 %v1177_v17  ;;  %3255 = vmatprep.subr.bf16.mxu0 %v7327_v6  ;;  %v8619_v6 = vld [vmem:[%s10613_s26 + $0xf0] sm:$0xff]  }
 0x2ee   : > { %6735 = vmatmul.mubr.msk.bf16.gmra.mrb[16].mxu0 %vm580_vm0, %v8227_v28  ;;  %6867 = vmatmul.mubr.msk.bf16.vlgmr.msra.gmra.mrb[12].mxu1 %vm580_vm0, %v8232_v29 }
 0x2ef   : > { %6931 = vmatpush3.bf16.msra.mxu1 %v1177_v17  ;;  %6738 = vmatprep.mubr.msk.bf16.mxu0 %vm580_vm0, %v8237_v30  ;;  %v8568_v17 = vld [vmem:[%s10613_s26 + $0xc8] sm:$0xff]  }
 0x2f0   : > { %6932 = vmatprep.subr.bf16.mxu1 %v1178_v23  ;;  %6870 = vmatprep.mubr.msk.bf16.mxu1 %vm580_vm0, %v8242_v31 }
 0x2f3   : > { %6933 = vmatpush3.bf16.msra.mxu1 %v1178_v23  ;;  %v8614_v23 = vld [vmem:[%s10613_s26 + $0xe8] sm:$0xff]  }
 0x2f4   : > { %3608 = vmatprep.subr.bf16.mxu1 %v7330_v9  ;;  %v7325_v9 = vld [vmem:[#allocation14] ss:$16 sps:$4 sm:$0xff]  }
 0x2f6   : > { %6739 = vmatmul.mubr.msk.bf16.gmra.mrb[20].mxu0 %vm580_vm0, %v8255_v32  ;;  %6871 = vmatmul.mubr.msk.bf16.gmra.mrb[16].mxu1 %vm580_vm0, %v8260_v33 }
 0x2f7   : > { %6742 = vmatprep.mubr.msk.bf16.mxu0 %vm580_vm0, %v8265_v36  ;;  %6874 = vmatprep.mubr.msk.bf16.mxu1 %vm580_vm0, %v8270_v37 }
 0x2fe   : > { %6743 = vmatmul.mubr.msk.bf16.gmra.mrb[24].mxu0 %vm580_vm0, %v8283_v38  ;;  %6875 = vmatmul.mubr.msk.bf16.gmra.mrb[20].mxu1 %vm580_vm0, %v8288_v39 }
 0x2ff   : > { %6746 = vmatprep.mubr.msk.bf16.mxu0 %vm580_vm0, %v8293_v40  ;;  %6878 = vmatprep.mubr.msk.bf16.mxu1 %vm580_vm0, %v8298_v41 }
 0x306   : > { %6747 = vmatmul.mubr.msk.bf16.gmra.mrb[28].mxu0 %vm580_vm0, %v8311_v42  ;;  %6879 = vmatmul.mubr.msk.bf16.gmra.mrb[24].mxu1 %vm580_vm0, %v8316_v43 }
 0x307   : > { %6750 = vmatprep.mubr.msk.bf16.mxu0 %vm580_vm0, %v8321_v44  ;;  %6882 = vmatprep.mubr.msk.bf16.mxu1 %vm580_vm0, %v8326_v45 }
 0x30e   : > { %6751 = vmatmul.mubr.msk.bf16.gmra.mrb[32].mxu0 %vm580_vm0, %v8339_v46  ;;  %6883 = vmatmul.mubr.msk.bf16.gmra.mrb[28].mxu1 %vm580_vm0, %v8344_v47 }
 0x30f   : > { %6754 = vmatprep.mubr.msk.bf16.mxu0 %vm580_vm0, %v8349_v48  ;;  %6886 = vmatprep.mubr.msk.bf16.mxu1 %vm580_vm0, %v8354_v49 }
 0x316   : > { %6755 = vmatmul.mubr.msk.bf16.gmra.mrb[36].mxu0 %vm580_vm0, %v8367_v50  ;;  %6887 = vmatmul.mubr.msk.bf16.gmra.mrb[32].mxu1 %vm580_vm0, %v8372_v51 }
 0x317   : > { %6758 = vmatprep.mubr.msk.bf16.mxu0 %vm580_vm0, %v8377_v52  ;;  %6890 = vmatprep.mubr.msk.bf16.mxu1 %vm580_vm0, %v8382_v53 }
 0x31e   : > { %6759 = vmatmul.mubr.msk.bf16.gmra.mrb[40].mxu0 %vm580_vm0, %v8395_v54  ;;  %6891 = vmatmul.mubr.msk.bf16.gmra.mrb[36].mxu1 %vm580_vm0, %v8400_v55 }
 0x31f   : > { %6762 = vmatprep.mubr.msk.bf16.mxu0 %vm580_vm0, %v8405_v56  ;;  %6894 = vmatprep.mubr.msk.bf16.mxu1 %vm580_vm0, %v8410_v57 }
 0x326   : > { %6763 = vmatmul.mubr.msk.bf16.gmra.mrb[44].mxu0 %vm580_vm0, %v8423_v58  ;;  %6895 = vmatmul.mubr.msk.bf16.gmra.mrb[40].mxu1 %vm580_vm0, %v8428_v59 }
 0x327   : > { %6766 = vmatprep.mubr.msk.bf16.mxu0 %vm580_vm0, %v8433_v60  ;;  %6898 = vmatprep.mubr.msk.bf16.mxu1 %vm580_vm0, %v8438_v61 }
 0x32e   : > { %6767 = vmatmul.mubr.msk.bf16.gmra.mrb[48].mxu0 %vm580_vm0, %v8451_v62  ;;  %6899 = vmatmul.mubr.msk.bf16.gmra.mrb[44].mxu1 %vm580_vm0, %v8456_v63 }
 0x32f   : > { %6770 = vmatprep.mubr.msk.bf16.mxu0 %vm580_vm0, %v8461_v0  ;;  %6902 = vmatprep.mubr.msk.bf16.mxu1 %vm580_vm0, %v8466_v1 }
 0x336   : > { %6771 = vmatmul.mubr.msk.bf16.gmra.mrb[52].mxu0 %vm580_vm0, %v8479_v2  ;;  %6903 = vmatmul.mubr.msk.bf16.gmra.mrb[48].mxu1 %vm580_vm0, %v8484_v3 }
 0x337   : > { %6774 = vmatprep.mubr.msk.bf16.mxu0 %vm580_vm0, %v8489_v4  ;;  %6906 = vmatprep.mubr.msk.bf16.mxu1 %vm580_vm0, %v8494_v5 }
 0x33e   : > { %6775 = vmatmul.mubr.msk.bf16.gmra.mrb[56].mxu0 %vm580_vm0, %v8507_v7  ;;  %6907 = vmatmul.mubr.msk.bf16.gmra.mrb[52].mxu1 %vm580_vm0, %v8512_v8 }
 0x33f   : > { %6778 = vmatprep.mubr.msk.bf16.mxu0 %vm580_vm0, %v8517_v10  ;;  %6910 = vmatprep.mubr.msk.bf16.mxu1 %vm580_vm0, %v8522_v11 }
 0x346   : > { %6779 = vmatmul.mubr.msk.bf16.gmra.mrb[60].mxu0 %vm580_vm0, %v8535_v12  ;;  %6911 = vmatmul.mubr.msk.bf16.gmra.mrb[56].mxu1 %vm580_vm0, %v8540_v13 }
 0x347   : > { %6782 = vmatprep.mubr.msk.bf16.mxu0 %vm580_vm0, %v8545_v14  ;;  %6914 = vmatprep.mubr.msk.bf16.mxu1 %vm580_vm0, %v8550_v15 }
 0x34e   : > { %6783 = vmatmul.mubr.msk.bf16.gmra.mrb[64].mxu0 %vm580_vm0, %v8563_v16  ;;  %6915 = vmatmul.mubr.msk.bf16.gmra.mrb[60].mxu1 %vm580_vm0, %v8568_v17 }
 0x34f   : > { %6786 = vmatprep.mubr.msk.bf16.mxu0 %vm580_vm0, %v8573_v18  ;;  %6918 = vmatprep.mubr.msk.bf16.mxu1 %vm580_vm0, %v8578_v19 }
 0x356   : > { %6787 = vmatmul.mubr.msk.bf16.gmra.mrb[68].mxu0 %vm580_vm0, %v8591_v20  ;;  %6919 = vmatmul.mubr.msk.bf16.gmra.mrb[64].mxu1 %vm580_vm0, %v8596_v21 }
 0x357   : > { %6798 = vmatprep.mubr.msk.bf16.mxu0 %vm580_vm0, %v8214_v27  ;;  %6922 = vmatprep.mubr.msk.bf16.mxu1 %vm580_vm0, %v8601_v22  ;;  %v8632_v27 = vld [vmem:[%s10613_s26 + $0xf8] sm:$0xff]  }
 0x35e   : > { %6799 = vmatmul.mubr.msk.bf16.vlgmr.msra.gmra.mrb[72].mxu0 %vm580_vm0, %v8232_v29  ;;  %6923 = vmatmul.mubr.msk.bf16.gmra.mrb[68].mxu1 %vm580_vm0, %v8614_v23  ;;  %v7328_v29 = vld [vmem:[#allocation14 + $0x8] ss:$16 sps:$4 sm:$0xff]  }
 0x35f   : > { %6802 = vmatprep.mubr.msk.bf16.mxu0 %vm580_vm0, %v8242_v31  ;;  %6926 = vmatprep.mubr.msk.bf16.mxu1 %vm580_vm0, %v8619_v6  ;;  %v7334_v31 = vld [vmem:[#allocation14 + $0x28] ss:$16 sps:$4 sm:$0xff]  }
 0x360   : > { %3256 = vmatpush1.bf16.msra.mxu0 %v7325_v9 }
 0x366   : > { %6803 = vmatmul.mubr.msk.bf16.gmra.mrb[76].mxu0 %vm580_vm0, %v8260_v33  ;;  %6927 = vmatmul.mubr.msk.bf16.gmra.mrb[72].mxu1 %vm580_vm0, %v8632_v27  ;;  %v7336_v33 = vld [vmem:[#allocation14 + $0x2c] ss:$16 sps:$4 sm:$0xff]  }
 0x367   : > { %6806 = vmatprep.mubr.msk.bf16.mxu0 %vm580_vm0, %v8270_v37  ;;  %6934 = vmatprep.mubr.msk.bf16.mxu1 %vm580_vm0, %v8185_v34  ;;  %v7331_v34 = vld [vmem:[#allocation14 + $0x20] ss:$16 sps:$4 sm:$0xff]  }
 0x36e   : > { %6807 = vmatmul.mubr.msk.bf16.gmra.mrb[80].mxu0 %vm580_vm0, %v8288_v39  ;;  %6935 = vmatmul.mubr.msk.bf16.vlgmr.msra.gmra.mrb[12].mxu1 %vm580_vm0, %v8199_v24  ;;  %v7333_v24 = vld [vmem:[#allocation14 + $0x24] ss:$16 sps:$4 sm:$0xff]   ;;  %v7342_v39 = vld [vmem:[#allocation16 + $0xc] ss:$16 sps:$4 sm:$0xff]  }
 0x36f   : > { %6810 = vmatprep.mubr.msk.bf16.mxu0 %vm580_vm0, %v8298_v41  ;;  %6938 = vmatprep.mubr.msk.bf16.mxu1 %vm580_vm0, %v8209_v26 }
 0x370   : > { %3609 = vmatpush1.bf16.msra.mxu1 %v7328_v29  ;;  %3257 = vmatprep.subr.bf16.mxu0 %v7333_v24 }
 0x371   : > { %3610 = vmatprep.subr.bf16.mxu1 %v7336_v33  ;;  %3258 = vmatpush1.bf16.msra.mxu0 %v7331_v34 }
 0x374   : > { %3611 = vmatpush1.bf16.msra.mxu1 %v7334_v31 }
 0x375   : > { %4450 = vmatprep.subr.bf16.mxu1 %v7342_v39 }
 0x376   : > { %6811 = vmatmul.mubr.msk.bf16.gmra.mrb[84].mxu0 %vm580_vm0, %v8316_v43  ;;  %6939 = vmatmul.mubr.msk.bf16.gmra.mrb[16].mxu1 %vm580_vm0, %v8227_v28 }
 0x377   : > { %6814 = vmatprep.mubr.msk.bf16.mxu0 %vm580_vm0, %v8326_v45  ;;  %6942 = vmatprep.mubr.msk.bf16.mxu1 %vm580_vm0, %v8237_v30 }
 0x37e   : > { %6815 = vmatmul.mubr.msk.bf16.gmra.mrb[88].mxu0 %vm580_vm0, %v8344_v47  ;;  %6943 = vmatmul.mubr.msk.bf16.gmra.mrb[20].mxu1 %vm580_vm0, %v8255_v32 }
 0x37f   : > { %6818 = vmatprep.mubr.msk.bf16.mxu0 %vm580_vm0, %v8354_v49  ;;  %6946 = vmatprep.mubr.msk.bf16.mxu1 %vm580_vm0, %v8265_v36  ;;  %v7339_v36 = vld [vmem:[#allocation16 + $0x4] ss:$16 sps:$4 sm:$0xff]  }
 0x380   : > { %4097 = vmatprep.subr.bf16.mxu0 %v7339_v36 }
 0x386   : > { %6819 = vmatmul.mubr.msk.bf16.gmra.mrb[92].mxu0 %vm580_vm0, %v8372_v51  ;;  %6947 = vmatmul.mubr.msk.bf16.gmra.mrb[24].mxu1 %vm580_vm0, %v8283_v38 }
 0x387   : > { %6822 = vmatprep.mubr.msk.bf16.mxu0 %vm580_vm0, %v8382_v53  ;;  %6950 = vmatprep.mubr.msk.bf16.mxu1 %vm580_vm0, %v8293_v40 }
 0x38e   : > { %6823 = vmatmul.mubr.msk.bf16.gmra.mrb[96].mxu0 %vm580_vm0, %v8400_v55  ;;  %6951 = vmatmul.mubr.msk.bf16.gmra.mrb[28].mxu1 %vm580_vm0, %v8311_v42 }
 0x38f   : > { %6826 = vmatprep.mubr.msk.bf16.mxu0 %vm580_vm0, %v8410_v57  ;;  %6954 = vmatprep.mubr.msk.bf16.mxu1 %vm580_vm0, %v8321_v44 }
 0x396   : > { %6827 = vmatmul.mubr.msk.bf16.gmra.mrb[100].mxu0 %vm580_vm0, %v8428_v59  ;;  %6955 = vmatmul.mubr.msk.bf16.gmra.mrb[32].mxu1 %vm580_vm0, %v8339_v46 }
 0x397   : > { %6830 = vmatprep.mubr.msk.bf16.mxu0 %vm580_vm0, %v8438_v61  ;;  %6958 = vmatprep.mubr.msk.bf16.mxu1 %vm580_vm0, %v8349_v48 }
 0x39e   : > { %6831 = vmatmul.mubr.msk.bf16.gmra.mrb[104].mxu0 %vm580_vm0, %v8456_v63  ;;  %6959 = vmatmul.mubr.msk.bf16.gmra.mrb[36].mxu1 %vm580_vm0, %v8367_v50 }
 0x39f   : > { %6834 = vmatprep.mubr.msk.bf16.mxu0 %vm580_vm0, %v8466_v1  ;;  %6962 = vmatprep.mubr.msk.bf16.mxu1 %vm580_vm0, %v8377_v52 }
 0x3a6   : > { %6835 = vmatmul.mubr.msk.bf16.gmra.mrb[108].mxu0 %vm580_vm0, %v8484_v3  ;;  %6963 = vmatmul.mubr.msk.bf16.gmra.mrb[40].mxu1 %vm580_vm0, %v8395_v54  ;;  %v10577_v54 = vmov 0  }
 0x3a7   : > { %6838 = vmatprep.mubr.msk.bf16.mxu0 %vm580_vm0, %v8494_v5  ;;  %6966 = vmatprep.mubr.msk.bf16.mxu1 %vm580_vm0, %v8405_v56 }
 0x3ae   : > { %6839 = vmatmul.mubr.msk.bf16.gmra.mrb[112].mxu0 %vm580_vm0, %v8512_v8  ;;  %6967 = vmatmul.mubr.msk.bf16.gmra.mrb[44].mxu1 %vm580_vm0, %v8423_v58 }
 0x3af   : > { %6842 = vmatprep.mubr.msk.bf16.mxu0 %vm580_vm0, %v8522_v11  ;;  %6970 = vmatprep.mubr.msk.bf16.mxu1 %vm580_vm0, %v8433_v60 }
 0x3b6   : > { %6843 = vmatmul.mubr.msk.bf16.gmra.mrb[116].mxu0 %vm580_vm0, %v8540_v13  ;;  %6971 = vmatmul.mubr.msk.bf16.gmra.mrb[48].mxu1 %vm580_vm0, %v8451_v62 }
 0x3b7   : > { %6846 = vmatprep.mubr.msk.bf16.mxu0 %vm580_vm0, %v8550_v15  ;;  %6974 = vmatprep.mubr.msk.bf16.mxu1 %vm580_vm0, %v8461_v0 }
 0x3b9   : > { %v8722_v26 = vpop.f32.mrb[12].mxu0  ;;  %v8724_v28 = vpop.f32.mrb[8].mxu1 }
 0x3ba   : > { %10614 = vst [vmem:[#allocation27_spill] sm:$0xff] %v8724_v28  ;;  %v8726_v30 = vpop.f32.mrb[13].mxu0  ;;  %v8728_v32 = vpop.f32.mrb[9].mxu1 }
 0x3bb   : > { %10615 = vst [vmem:[#allocation28_spill] sm:$0xff] %v8728_v32  ;;  %v8730_v37 = vpop.f32.mrb[14].mxu0  ;;  %v8732_v38 = vpop.f32.mrb[10].mxu1 }
 0x3bc   : > { %10616 = vst [vmem:[#allocation29_spill] sm:$0xff] %v8732_v38  ;;  %v8734_v40 = vpop.f32.mrb[15].mxu0  ;;  %v8736_v41 = vpop.f32.mrb[11].mxu1 }
 0x3bd   : > { %10617 = vst [vmem:[#allocation30_spill] sm:$0xff] %v8736_v41 }
 0x3be   : > { %6847 = vmatmul.mubr.msk.bf16.gmra.mrb[120].mxu0 %vm580_vm0, %v8568_v17  ;;  %6975 = vmatmul.mubr.msk.bf16.gmra.mrb[52].mxu1 %vm580_vm0, %v8479_v2 }
 0x3bf   : > { %6850 = vmatprep.mubr.msk.bf16.mxu0 %vm580_vm0, %v8578_v19  ;;  %6978 = vmatprep.mubr.msk.bf16.mxu1 %vm580_vm0, %v8489_v4 }
 0x3c1   : > { %v8746_v42 = vpop.f32.mrb[16].mxu0 }
 0x3c2   : > { %v8748_v43 = vpop.f32.mrb[17].mxu0 }
 0x3c3   : > { %v8750_v44 = vpop.f32.mrb[18].mxu0 }
 0x3c4   : > { %v8752_v45 = vpop.f32.mrb[19].mxu0 }
 0x3c6   : > { %6851 = vmatmul.mubr.msk.bf16.gmra.mrb[124].mxu0 %vm580_vm0, %v8596_v21  ;;  %6979 = vmatmul.mubr.msk.bf16.gmra.mrb[56].mxu1 %vm580_vm0, %v8507_v7 }
 0x3c7   : > { %6854 = vmatprep.mubr.msk.bf16.mxu0 %vm580_vm0, %v8601_v22  ;;  %6982 = vmatprep.mubr.msk.bf16.mxu1 %vm580_vm0, %v8517_v10 }
 0x3c9   : > { %v8762_v46 = vpop.f32.mrb[20].mxu0 }
 0x3ca   : > { %v8764_v47 = vpop.f32.mrb[21].mxu0 }
 0x3cb   : > { %v8766_v48 = vpop.f32.mrb[22].mxu0 }
 0x3cc   : > { %v8768_v49 = vpop.f32.mrb[23].mxu0 }
 0x3ce   : > { %6855 = vmatmul.mubr.msk.bf16.gmra.mrb[128].mxu0 %vm580_vm0, %v8614_v23  ;;  %6983 = vmatmul.mubr.msk.bf16.gmra.mrb[60].mxu1 %vm580_vm0, %v8535_v12 }
 0x3cf   : > { %6858 = vmatprep.mubr.msk.bf16.mxu0 %vm580_vm0, %v8619_v6  ;;  %6986 = vmatprep.mubr.msk.bf16.mxu1 %vm580_vm0, %v8545_v14 }
 0x3d1   : > { %v8778_v50 = vpop.f32.mrb[24].mxu0 }
 0x3d2   : > { %v8780_v51 = vpop.f32.mrb[25].mxu0 }
 0x3d3   : > { %v8782_v52 = vpop.f32.mrb[26].mxu0 }
 0x3d4   : > { %v8784_v53 = vpop.f32.mrb[27].mxu0 }
 0x3d6   : > { %6859 = vmatmul.mubr.msk.bf16.gmra.mrb[132].mxu0 %vm580_vm0, %v8632_v27  ;;  %6987 = vmatmul.mubr.msk.bf16.gmra.mrb[64].mxu1 %vm580_vm0, %v8563_v16 }
 0x3d7   : > { %6990 = vmatprep.mubr.msk.bf16.mxu1 %vm580_vm0, %v8573_v18  ;;  %3287 = vmatprep.mubr.bf16.mxu0 %v10577_v54 }
 0x3d9   : > { %v8793_v55 = vpop.f32.mrb[28].mxu0 }
 0x3da   : > { %v8795_v56 = vpop.f32.mrb[29].mxu0 }
 0x3db   : > { %v8797_v57 = vpop.f32.mrb[30].mxu0 }
 0x3dc   : > { %v8799_v58 = vpop.f32.mrb[31].mxu0 }
 0x3de   : > { %6991 = vmatmul.mubr.msk.bf16.gmra.mrb[68].mxu1 %vm580_vm0, %v8591_v20 }
 0x3df   : > { %6994 = vmatprep.mubr.msk.bf16.mxu1 %vm580_vm0, %v8190_v35 }
 0x3e1   : > { %v8805_v59 = vpop.f32.mrb[32].mxu0 }
 0x3e2   : > { %v8807_v60 = vpop.f32.mrb[33].mxu0 }
 0x3e3   : > { %v8809_v61 = vpop.f32.mrb[34].mxu0 }
 0x3e4   : > { %v8811_v62 = vpop.f32.mrb[35].mxu0 }
 0x3e6   : > { %6995 = vmatmul.mubr.msk.bf16.gmra.mrb[72].mxu1 %vm580_vm0, %v8204_v25 }
 0x3e7   : > { %3640 = vmatprep.mubr.bf16.mxu1 %v10577_v54 }
 0x3e9   : > { %v8816_v63 = vpop.f32.mrb[36].mxu0 }
 0x3ea   : > { %v8818_v0 = vpop.f32.mrb[37].mxu0 }
 0x3eb   : > { %v8820_v1 = vpop.f32.mrb[38].mxu0 }
 0x3ec   : > { %v8822_v35 = vpop.f32.mrb[39].mxu0 }
 0x3f1   : > { %v8824_v2 = vpop.f32.mrb[40].mxu0 }
 0x3f2   : > { %v8826_v3 = vpop.f32.mrb[41].mxu0 }
 0x3f3   : > { %v8828_v4 = vpop.f32.mrb[42].mxu0 }
 0x3f4   : > { %v8830_v5 = vpop.f32.mrb[43].mxu0 }
 0x3f9   : > { %v8832_v7 = vpop.f32.mrb[44].mxu0 }
 0x3fa   : > { %v8834_v25 = vpop.f32.mrb[45].mxu0 }
 0x3fb   : > { %v8836_v8 = vpop.f32.mrb[46].mxu0 }
 0x3fc   : > { %v8838_v10 = vpop.f32.mrb[47].mxu0 }
 0x401   : > { %v8840_v11 = vpop.f32.mrb[48].mxu0 }
 0x402   : > { %v8842_v12 = vpop.f32.mrb[49].mxu0 }
 0x403   : > { %v8844_v13 = vpop.f32.mrb[50].mxu0 }
 0x404   : > { %v8846_v14 = vpop.f32.mrb[51].mxu0 }
 0x409   : > { %v8848_v15 = vpop.f32.mrb[52].mxu0 }
 0x40a   : > { %v8850_v16 = vpop.f32.mrb[53].mxu0 }
 0x40b   : > { %v8852_v17 = vpop.f32.mrb[54].mxu0 }
 0x40c   : > { %v8854_v18 = vpop.f32.mrb[55].mxu0 }
 0x411   : > { %v8856_v19 = vpop.f32.mrb[56].mxu0 }
 0x412   : > { %v8858_v20 = vpop.f32.mrb[57].mxu0 }
 0x413   : > { %v8860_v21 = vpop.f32.mrb[58].mxu0 }
 0x414   : > { %v8862_v22 = vpop.f32.mrb[59].mxu0 }
 0x419   : > { %v8864_v23 = vpop.f32.mrb[60].mxu0 }
 0x41a   : > { %v8866_v6 = vpop.f32.mrb[61].mxu0 }
 0x41b   : > { %10618 = vst [vmem:[#allocation31_spill] sm:$0xff] %v8866_v6  ;;  %v8868_v9 = vpop.f32.mrb[62].mxu0 }
 0x41c   : > { %10619 = vst [vmem:[#allocation32_spill] sm:$0xff] %v8868_v9  ;;  %v8870_v27 = vpop.f32.mrb[63].mxu0  ;;  %v7340_v9 = vld [vmem:[#allocation16 + $0x8] ss:$16 sps:$4 sm:$0xff]  }
 0x41d   : > { %10620 = vst [vmem:[#allocation33_spill] sm:$0xff] %v8870_v27 }
 0x421   : > { %v8872_v29 = vpop.f32.mrb[64].mxu0 }
 0x422   : > { %10621 = vst [vmem:[#allocation34_spill] sm:$0xff] %v8872_v29  ;;  %v8874_v34 = vpop.f32.mrb[65].mxu0 }
 0x423   : > { %10622 = vst [vmem:[#allocation35_spill] sm:$0xff] %v8874_v34  ;;  %v8876_v24 = vpop.f32.mrb[66].mxu0 }
 0x424   : > { %10623 = vst [vmem:[#allocation36_spill] sm:$0xff] %v8876_v24  ;;  %v8878_v31 = vpop.f32.mrb[67].mxu0 }
 0x425   : > { %10624 = vst [vmem:[#allocation37_spill] sm:$0xff] %v8878_v31 }
 0x429   : > { %v8880_v33 = vpop.f32.mrb[68].mxu0 }
 0x42a   : > { %10625 = vst [vmem:[#allocation38_spill] sm:$0xff] %v8880_v33  ;;  %v8882_v36 = vpop.f32.mrb[69].mxu0  ;;  %v7337_v33 = vld [vmem:[#allocation16] ss:$16 sps:$4 sm:$0xff]  }
 0x42b   : > { %10626 = vst [vmem:[#allocation39_spill] sm:$0xff] %v8882_v36  ;;  %v8884_v39 = vpop.f32.mrb[70].mxu0 }
 0x42c   : > { %v8886_v54 = vpop.f32.mrb[71].mxu0 }
 0x42d   : > { %10627 = vst [vmem:[#allocation40_spill] sm:$0xff] %v8886_v54  ;;  %v7343_v54 = vld [vmem:[#allocation16 + $0x20] ss:$16 sps:$4 sm:$0xff]  }
 0x431   : > { %v6800_v41 = vpop.f32.mrb[72].mxu0 }
 0x432   : > { %v2415_v38 = vsub.f32 %v8722_v26, %v6800_v41  ;;  %v2158_v32 = vpop.f32.mrb[73].mxu0  ;;  %v7345_v26 = vld [vmem:[#allocation16 + $0x24] ss:$16 sps:$4 sm:$0xff]  }
 0x433   : > { %v2413_v28 = vsub.f32 %v8726_v30, %v2158_v32  ;;  %v6801_v29 = vpop.f32.mrb[74].mxu0  ;;  %v7346_v32 = vld [vmem:[#allocation16 + $0x28] ss:$16 sps:$4 sm:$0xff]  }
 0x434   : > { %v2416_v34 = vsub.f32 %v8730_v37, %v6801_v29  ;;  %v2161_v24 = vpop.f32.mrb[75].mxu0  ;;  %v7348_v37 = vld [vmem:[#allocation16 + $0x2c] ss:$16 sps:$4 sm:$0xff]   ;;  %v10628_v29 = vmov 0  }
 0x435   : > { %v2414_v31 = vsub.f32 %v8734_v40, %v2161_v24 }
 0x436   : > { %v2478_v27 = vpack.c.bf16 %v2416_v34, %v2415_v38 }
 0x437   : > { %v2477_v36 = vpack.c.bf16 %v2414_v31, %v2413_v28 }
 0x439   : > { %v6804_v6 = vpop.f32.mrb[76].mxu0  ;;  %6313 = vmatmul.mubr.msk.bf16.vlgmr.msra.gmra.mrb[136].mxu0 %vm580_vm0, %v2477_v36  ;;  %6345 = vmatmul.mubr.msk.bf16.vlgmr.msra.gmra.mrb[76].mxu1 %vm580_vm0, %v2477_v36 }
 0x43a   : > { %v2419_v41 = vsub.f32 %v8746_v42, %v6804_v6  ;;  %v2174_v30 = vpop.f32.mrb[77].mxu0  ;;  %4098 = vmatpush1.bf16.msra.mxu0 %v7337_v33  ;;  %4451 = vmatpush1.bf16.msra.mxu1 %v7340_v9 }
 0x43b   : > { %v2417_v40 = vsub.f32 %v8748_v43, %v2174_v30  ;;  %v6805_v38 = vpop.f32.mrb[78].mxu0  ;;  %3297 = vmatprep.mubr.bf16.mxu0 %v10628_v29  ;;  %3650 = vmatprep.mubr.bf16.mxu1 %v10628_v29 }
 0x43c   : > { %v2420_v28 = vsub.f32 %v8750_v44, %v6805_v38  ;;  %v2177_v34 = vpop.f32.mrb[79].mxu0  ;;  %4099 = vmatprep.subr.bf16.mxu0 %v7345_v26  ;;  %4452 = vmatprep.subr.bf16.mxu1 %v7348_v37 }
 0x43d   : > { %v2418_v24 = vsub.f32 %v8752_v45, %v2177_v34 }
 0x43e   : > { %v2480_v42 = vpack.c.bf16 %v2420_v28, %v2419_v41  ;;  %4100 = vmatpush1.bf16.msra.mxu0 %v7343_v54  ;;  %4453 = vmatpush1.bf16.msra.mxu1 %v7346_v32 }
 0x43f   : > { %v2479_v6 = vpack.c.bf16 %v2418_v24, %v2417_v40 }
 0x441   : > { %v6808_v9 = vpop.f32.mrb[80].mxu0  ;;  %v6936_v31 = vpop.f32.mrb[12].mxu1  ;;  %6314 = vmatmul.mubr.msk.bf16.gmra.mrb[140].mxu0 %vm580_vm0, %v2478_v27  ;;  %6346 = vmatmul.mubr.msk.bf16.gmra.mrb[80].mxu1 %vm580_vm0, %v2478_v27 }
 0x442   : > { %v2423_v43 = vsub.f32 %v8762_v46, %v6808_v9  ;;  %v2190_v33 = vpop.f32.mrb[81].mxu0  ;;  %v2832_v36 = vpop.f32.mrb[13].mxu1  ;;  %3307 = vmatprep.mubr.bf16.mxu0 %v10628_v29  ;;  %3660 = vmatprep.mubr.bf16.mxu1 %v10628_v29 }
 0x443   : > { %v2421_v44 = vsub.f32 %v8764_v47, %v2190_v33  ;;  %v6809_v45 = vpop.f32.mrb[82].mxu0  ;;  %v6937_v54 = vpop.f32.mrb[14].mxu1 }
 0x444   : > { %v2424_v26 = vsub.f32 %v8766_v48, %v6809_v45  ;;  %v8907_v41 = vpack.c.bf16 %v6937_v54, %v6936_v31  ;;  %v2193_v30 = vpop.f32.mrb[83].mxu0  ;;  %v2835_v32 = vpop.f32.mrb[15].mxu1 }
 0x445   : > { %v2422_v27 = vsub.f32 %v8768_v49, %v2193_v30  ;;  %v8910_v37 = vpack.c.bf16 %v2835_v32, %v2832_v36 }
 0x446   : > { %v8912_v46 = vpack.c.bf16 %v2424_v26, %v2423_v43 }
 0x447   : > { %v2481_v40 = vpack.c.bf16 %v2422_v27, %v2421_v44 }
 0x449   : > { %v6812_v38 = vpop.f32.mrb[84].mxu0  ;;  %v6940_v28 = vpop.f32.mrb[16].mxu1  ;;  %6315 = vmatmul.mubr.msk.bf16.gmra.mrb[144].mxu0 %vm580_vm0, %v2479_v6  ;;  %6347 = vmatmul.mubr.msk.bf16.gmra.mrb[84].mxu1 %vm580_vm0, %v2479_v6 }
 0x44a   : > { %v2427_v47 = vsub.f32 %v8778_v50, %v6812_v38  ;;  %v2206_v48 = vpop.f32.mrb[85].mxu0  ;;  %v2848_v34 = vpop.f32.mrb[17].mxu1  ;;  %3317 = vmatprep.mubr.bf16.mxu0 %v10628_v29  ;;  %3670 = vmatprep.mubr.bf16.mxu1 %v10628_v29 }
 0x44b   : > { %v2425_v49 = vsub.f32 %v8780_v51, %v2206_v48  ;;  %v6813_v24 = vpop.f32.mrb[86].mxu0  ;;  %v6941_v9 = vpop.f32.mrb[18].mxu1 }
 0x44c   : > { %v2428_v31 = vsub.f32 %v8782_v52, %v6813_v24  ;;  %v8921_v43 = vpack.c.bf16 %v6941_v9, %v6940_v28  ;;  %v2209_v33 = vpop.f32.mrb[87].mxu0  ;;  %v2851_v36 = vpop.f32.mrb[19].mxu1 }
 0x44d   : > { %v2426_v6 = vsub.f32 %v8784_v53, %v2209_v33  ;;  %v8924_v44 = vpack.c.bf16 %v2851_v36, %v2848_v34 }
 0x44e   : > { %v8926_v50 = vpack.c.bf16 %v2428_v31, %v2427_v47 }
 0x44f   : > { %v8928_v45 = vpack.c.bf16 %v2426_v6, %v2425_v49 }
 0x451   : > { %v6816_v54 = vpop.f32.mrb[88].mxu0  ;;  %v6944_v26 = vpop.f32.mrb[20].mxu1  ;;  %6316 = vmatmul.mubr.msk.bf16.gmra.mrb[148].mxu0 %vm580_vm0, %v2480_v42  ;;  %6348 = vmatmul.mubr.msk.bf16.gmra.mrb[88].mxu1 %vm580_vm0, %v2480_v42 }
 0x452   : > { %v2431_v51 = vsub.f32 %v8793_v55, %v6816_v54  ;;  %v2222_v52 = vpop.f32.mrb[89].mxu0  ;;  %v2864_v30 = vpop.f32.mrb[21].mxu1  ;;  %3327 = vmatprep.mubr.bf16.mxu0 %v10628_v29  ;;  %3680 = vmatprep.mubr.bf16.mxu1 %v10628_v29 }
 0x453   : > { %v2429_v53 = vsub.f32 %v8795_v56, %v2222_v52  ;;  %v6817_v32 = vpop.f32.mrb[90].mxu0  ;;  %v6945_v27 = vpop.f32.mrb[22].mxu1 }
 0x454   : > { %v2432_v38 = vsub.f32 %v8797_v57, %v6817_v32  ;;  %v8937_v28 = vpack.c.bf16 %v6945_v27, %v6944_v26  ;;  %v2225_v47 = vpop.f32.mrb[91].mxu0  ;;  %v2867_v48 = vpop.f32.mrb[23].mxu1 }
 0x455   : > { %v2430_v42 = vsub.f32 %v8799_v58, %v2225_v47  ;;  %v8940_v34 = vpack.c.bf16 %v2867_v48, %v2864_v30 }
 0x456   : > { %v8942_v55 = vpack.c.bf16 %v2432_v38, %v2431_v51 }
 0x457   : > { %v8944_v49 = vpack.c.bf16 %v2430_v42, %v2429_v53 }
 0x459   : > { %v6820_v24 = vpop.f32.mrb[92].mxu0  ;;  %v6948_v9 = vpop.f32.mrb[24].mxu1  ;;  %6317 = vmatmul.mubr.msk.bf16.gmra.mrb[152].mxu0 %vm580_vm0, %v2481_v40  ;;  %6349 = vmatmul.mubr.msk.bf16.gmra.mrb[92].mxu1 %vm580_vm0, %v2481_v40 }
 0x45a   : > { %v2435_v56 = vsub.f32 %v8805_v59, %v6820_v24  ;;  %v2238_v57 = vpop.f32.mrb[93].mxu0  ;;  %v2880_v31 = vpop.f32.mrb[25].mxu1  ;;  %3337 = vmatprep.mubr.bf16.mxu0 %v10628_v29  ;;  %3690 = vmatprep.mubr.bf16.mxu1 %v10628_v29 }
 0x45b   : > { %v2433_v58 = vsub.f32 %v8807_v60, %v2238_v57  ;;  %v6821_v33 = vpop.f32.mrb[94].mxu0  ;;  %v6949_v36 = vpop.f32.mrb[26].mxu1 }
 0x45c   : > { %v2436_v6 = vsub.f32 %v8809_v61, %v6821_v33  ;;  %v8953_v54 = vpack.c.bf16 %v6949_v36, %v6948_v9  ;;  %v2241_v26 = vpop.f32.mrb[95].mxu0  ;;  %v2883_v51 = vpop.f32.mrb[27].mxu1 }
 0x45d   : > { %v2434_v40 = vsub.f32 %v8811_v62, %v2241_v26  ;;  %v8956_v52 = vpack.c.bf16 %v2883_v51, %v2880_v31 }
 0x45e   : > { %v8958_v59 = vpack.c.bf16 %v2436_v6, %v2435_v56 }
 0x45f   : > { %v8960_v30 = vpack.c.bf16 %v2434_v40, %v2433_v58 }
 0x461   : > { %v6824_v53 = vpop.f32.mrb[96].mxu0  ;;  %v6952_v32 = vpop.f32.mrb[28].mxu1  ;;  %6318 = vmatmul.mubr.msk.bf16.gmra.mrb[156].mxu0 %vm580_vm0, %v8912_v46  ;;  %6350 = vmatmul.mubr.msk.bf16.gmra.mrb[96].mxu1 %vm580_vm0, %v8912_v46 }
 0x462   : > { %v2439_v60 = vsub.f32 %v8816_v63, %v6824_v53  ;;  %v2254_v61 = vpop.f32.mrb[97].mxu0  ;;  %v2896_v27 = vpop.f32.mrb[29].mxu1  ;;  %3347 = vmatprep.mubr.bf16.mxu0 %v10628_v29  ;;  %3700 = vmatprep.mubr.bf16.mxu1 %v10628_v29 }
 0x463   : > { %v2437_v62 = vsub.f32 %v8818_v0, %v2254_v61  ;;  %v6825_v38 = vpop.f32.mrb[98].mxu0  ;;  %v6953_v47 = vpop.f32.mrb[30].mxu1 }
 0x464   : > { %v2440_v48 = vsub.f32 %v8820_v1, %v6825_v38  ;;  %v8971_v42 = vpack.c.bf16 %v6953_v47, %v6952_v32  ;;  %v2257_v24 = vpop.f32.mrb[99].mxu0  ;;  %v2899_v9 = vpop.f32.mrb[31].mxu1 }
 0x465   : > { %v2438_v46 = vsub.f32 %v8822_v35, %v2257_v24  ;;  %v8974_v56 = vpack.c.bf16 %v2899_v9, %v2896_v27 }
 0x466   : > { %v8976_v63 = vpack.c.bf16 %v2440_v48, %v2439_v60 }
 0x467   : > { %v8978_v57 = vpack.c.bf16 %v2438_v46, %v2437_v62 }
 0x469   : > { %v6828_v31 = vpop.f32.mrb[100].mxu0  ;;  %v6956_v58 = vpop.f32.mrb[32].mxu1  ;;  %6319 = vmatmul.mubr.msk.bf16.gmra.mrb[160].mxu0 %vm580_vm0, %v8928_v45  ;;  %6351 = vmatmul.mubr.msk.bf16.gmra.mrb[100].mxu1 %vm580_vm0, %v8928_v45 }
 0x46a   : > { %v2443_v0 = vsub.f32 %v8824_v2, %v6828_v31  ;;  %v2270_v1 = vpop.f32.mrb[101].mxu0  ;;  %v2912_v33 = vpop.f32.mrb[33].mxu1  ;;  %3357 = vmatprep.mubr.bf16.mxu0 %v10628_v29  ;;  %3710 = vmatprep.mubr.bf16.mxu1 %v10628_v29 }
 0x46b   : > { %v2441_v35 = vsub.f32 %v8826_v3, %v2270_v1  ;;  %v6829_v36 = vpop.f32.mrb[102].mxu0  ;;  %v6957_v6 = vpop.f32.mrb[34].mxu1 }
 0x46c   : > { %v2444_v26 = vsub.f32 %v8828_v4, %v6829_v36  ;;  %v8989_v51 = vpack.c.bf16 %v6957_v6, %v6956_v58  ;;  %v2273_v40 = vpop.f32.mrb[103].mxu0  ;;  %v2915_v53 = vpop.f32.mrb[35].mxu1 }
 0x46d   : > { %v2442_v45 = vsub.f32 %v8830_v5, %v2273_v40  ;;  %v8992_v32 = vpack.c.bf16 %v2915_v53, %v2912_v33 }
 0x46e   : > { %v8994_v2 = vpack.c.bf16 %v2444_v26, %v2443_v0 }
 0x46f   : > { %v8996_v60 = vpack.c.bf16 %v2442_v45, %v2441_v35 }
 0x471   : > { %v6832_v61 = vpop.f32.mrb[104].mxu0  ;;  %v6960_v27 = vpop.f32.mrb[36].mxu1  ;;  %6320 = vmatmul.mubr.msk.bf16.gmra.mrb[164].mxu0 %vm580_vm0, %v8926_v50  ;;  %6352 = vmatmul.mubr.msk.bf16.gmra.mrb[104].mxu1 %vm580_vm0, %v8926_v50 }
 0x472   : > { %v2447_v3 = vsub.f32 %v8832_v7, %v6832_v61  ;;  %v2286_v4 = vpop.f32.mrb[105].mxu0  ;;  %v2928_v62 = vpop.f32.mrb[37].mxu1  ;;  %3367 = vmatprep.mubr.bf16.mxu0 %v10628_v29  ;;  %3720 = vmatprep.mubr.bf16.mxu1 %v10628_v29 }
 0x473   : > { %v2445_v5 = vsub.f32 %v8834_v25, %v2286_v4  ;;  %v6833_v38 = vpop.f32.mrb[106].mxu0  ;;  %v6961_v47 = vpop.f32.mrb[38].mxu1 }
 0x474   : > { %v2448_v48 = vsub.f32 %v8836_v8, %v6833_v38  ;;  %v9007_v24 = vpack.c.bf16 %v6961_v47, %v6960_v27  ;;  %v2289_v9 = vpop.f32.mrb[107].mxu0  ;;  %v2931_v46 = vpop.f32.mrb[39].mxu1 }
 0x475   : > { %v2446_v50 = vsub.f32 %v8838_v10, %v2289_v9  ;;  %v9010_v31 = vpack.c.bf16 %v2931_v46, %v2928_v62 }
 0x476   : > { %v9012_v7 = vpack.c.bf16 %v2448_v48, %v2447_v3 }
 0x477   : > { %v9014_v58 = vpack.c.bf16 %v2446_v50, %v2445_v5 }
 0x479   : > { %v6836_v0 = vpop.f32.mrb[108].mxu0  ;;  %v6964_v1 = vpop.f32.mrb[40].mxu1  ;;  %6321 = vmatmul.mubr.msk.bf16.gmra.mrb[168].mxu0 %vm580_vm0, %v8944_v49  ;;  %6353 = vmatmul.mubr.msk.bf16.gmra.mrb[108].mxu1 %vm580_vm0, %v8944_v49 }
 0x47a   : > { %v2451_v25 = vsub.f32 %v8840_v11, %v6836_v0  ;;  %v2302_v8 = vpop.f32.mrb[109].mxu0  ;;  %v2944_v33 = vpop.f32.mrb[41].mxu1  ;;  %3377 = vmatprep.mubr.bf16.mxu0 %v10628_v29  ;;  %3730 = vmatprep.mubr.bf16.mxu1 %v10628_v29 }
 0x47b   : > { %v2449_v10 = vsub.f32 %v8842_v12, %v2302_v8  ;;  %v6837_v35 = vpop.f32.mrb[110].mxu0  ;;  %v6965_v36 = vpop.f32.mrb[42].mxu1 }
 0x47c   : > { %v2452_v6 = vsub.f32 %v8844_v13, %v6837_v35  ;;  %v9025_v26 = vpack.c.bf16 %v6965_v36, %v6964_v1  ;;  %v2305_v40 = vpop.f32.mrb[111].mxu0  ;;  %v2947_v53 = vpop.f32.mrb[43].mxu1 }
 0x47d   : > { %v2450_v49 = vsub.f32 %v8846_v14, %v2305_v40  ;;  %v9028_v45 = vpack.c.bf16 %v2947_v53, %v2944_v33 }
 0x47e   : > { %v9030_v11 = vpack.c.bf16 %v2452_v6, %v2451_v25 }
 0x47f   : > { %v9032_v61 = vpack.c.bf16 %v2450_v49, %v2449_v10 }
 0x481   : > { %v6840_v27 = vpop.f32.mrb[112].mxu0  ;;  %v6968_v3 = vpop.f32.mrb[44].mxu1  ;;  %6322 = vmatmul.mubr.msk.bf16.gmra.mrb[172].mxu0 %vm580_vm0, %v8942_v55  ;;  %6354 = vmatmul.mubr.msk.bf16.gmra.mrb[112].mxu1 %vm580_vm0, %v8942_v55 }
 0x482   : > { %v2455_v12 = vsub.f32 %v8848_v15, %v6840_v27  ;;  %v2318_v13 = vpop.f32.mrb[113].mxu0  ;;  %v2960_v4 = vpop.f32.mrb[45].mxu1  ;;  %3387 = vmatprep.mubr.bf16.mxu0 %v10628_v29  ;;  %3740 = vmatprep.mubr.bf16.mxu1 %v10628_v29 }
 0x483   : > { %v2453_v14 = vsub.f32 %v8850_v16, %v2318_v13  ;;  %v6841_v62 = vpop.f32.mrb[114].mxu0  ;;  %v6969_v5 = vpop.f32.mrb[46].mxu1 }
 0x484   : > { %v2456_v38 = vsub.f32 %v8852_v17, %v6841_v62  ;;  %v9043_v47 = vpack.c.bf16 %v6969_v5, %v6968_v3  ;;  %v2321_v48 = vpop.f32.mrb[115].mxu0  ;;  %v2963_v9 = vpop.f32.mrb[47].mxu1 }
 0x485   : > { %v2454_v55 = vsub.f32 %v8854_v18, %v2321_v48  ;;  %v9046_v46 = vpack.c.bf16 %v2963_v9, %v2960_v4  ;;  %v10631_v9 = vld [vmem:[#allocation33_spill] sm:$0xff] }
 0x486   : > { %v9048_v15 = vpack.c.bf16 %v2456_v38, %v2455_v12 }
 0x487   : > { %v9050_v50 = vpack.c.bf16 %v2454_v55, %v2453_v14  ;;  %v10630_v14 = vld [vmem:[#allocation32_spill] sm:$0xff] }
 0x489   : > { %v6844_v0 = vpop.f32.mrb[116].mxu0  ;;  %v6972_v1 = vpop.f32.mrb[48].mxu1  ;;  %6323 = vmatmul.mubr.msk.bf16.gmra.mrb[176].mxu0 %vm580_vm0, %v8960_v30  ;;  %6355 = vmatmul.mubr.msk.bf16.gmra.mrb[116].mxu1 %vm580_vm0, %v8960_v30 }
 0x48a   : > { %v2459_v16 = vsub.f32 %v8856_v19, %v6844_v0  ;;  %v2334_v17 = vpop.f32.mrb[117].mxu0  ;;  %v2976_v25 = vpop.f32.mrb[49].mxu1  ;;  %3397 = vmatprep.mubr.bf16.mxu0 %v10628_v29  ;;  %3750 = vmatprep.mubr.bf16.mxu1 %v10628_v29 }
 0x48b   : > { %v2457_v18 = vsub.f32 %v8858_v20, %v2334_v17  ;;  %v6845_v8 = vpop.f32.mrb[118].mxu0  ;;  %v6973_v33 = vpop.f32.mrb[50].mxu1  ;;  %v10632_v17 = vld [vmem:[#allocation34_spill] sm:$0xff] }
 0x48c   : > { %v2460_v10 = vsub.f32 %v8860_v21, %v6845_v8  ;;  %v9061_v35 = vpack.c.bf16 %v6973_v33, %v6972_v1  ;;  %v2337_v36 = vpop.f32.mrb[119].mxu0  ;;  %v2979_v6 = vpop.f32.mrb[51].mxu1  ;;  %v10633_v33 = vld [vmem:[#allocation35_spill] sm:$0xff] }
 0x48d   : > { %v2458_v30 = vsub.f32 %v8862_v22, %v2337_v36  ;;  %v9064_v40 = vpack.c.bf16 %v2979_v6, %v2976_v25  ;;  %v10629_v22 = vld [vmem:[#allocation31_spill] sm:$0xff] }
 0x48e   : > { %v9066_v19 = vpack.c.bf16 %v2460_v10, %v2459_v16 }
 0x48f   : > { %v9068_v53 = vpack.c.bf16 %v2458_v30, %v2457_v18  ;;  %v10634_v30 = vld [vmem:[#allocation36_spill] sm:$0xff] }
 0x491   : > { %v6848_v49 = vpop.f32.mrb[120].mxu0  ;;  %v6976_v27 = vpop.f32.mrb[52].mxu1  ;;  %6324 = vmatmul.mubr.msk.bf16.gmra.mrb[180].mxu0 %vm580_vm0, %v8958_v59  ;;  %6356 = vmatmul.mubr.msk.bf16.gmra.mrb[120].mxu1 %vm580_vm0, %v8958_v59 }
 0x492   : > { %v2463_v20 = vsub.f32 %v8864_v23, %v6848_v49  ;;  %v2350_v21 = vpop.f32.mrb[121].mxu0  ;;  %v2992_v3 = vpop.f32.mrb[53].mxu1  ;;  %3407 = vmatprep.mubr.bf16.mxu0 %v10628_v29  ;;  %3760 = vmatprep.mubr.bf16.mxu1 %v10628_v29 }
 0x493   : > { %v2461_v12 = vsub.f32 %v10629_v22, %v2350_v21  ;;  %v6849_v13 = vpop.f32.mrb[122].mxu0  ;;  %v6977_v4 = vpop.f32.mrb[54].mxu1 }
 0x494   : > { %v2464_v62 = vsub.f32 %v10630_v14, %v6849_v13  ;;  %v9079_v5 = vpack.c.bf16 %v6977_v4, %v6976_v27  ;;  %v2353_v38 = vpop.f32.mrb[123].mxu0  ;;  %v2995_v48 = vpop.f32.mrb[55].mxu1 }
 0x495   : > { %v2462_v59 = vsub.f32 %v10631_v9, %v2353_v38  ;;  %v9082_v55 = vpack.c.bf16 %v2995_v48, %v2992_v3  ;;  %v10635_v3 = vld [vmem:[#allocation37_spill] sm:$0xff] }
 0x496   : > { %v9084_v23 = vpack.c.bf16 %v2464_v62, %v2463_v20  ;;  %v10636_v62 = vld [vmem:[#allocation38_spill] sm:$0xff] }
 0x497   : > { %v9086_v0 = vpack.c.bf16 %v2462_v59, %v2461_v12  ;;  %v10637_v59 = vld [vmem:[#allocation39_spill] sm:$0xff] }
 0x499   : > { %v6852_v1 = vpop.f32.mrb[124].mxu0  ;;  %v6980_v16 = vpop.f32.mrb[56].mxu1  ;;  %6325 = vmatmul.mubr.msk.bf16.gmra.mrb[184].mxu0 %vm580_vm0, %v8978_v57  ;;  %6357 = vmatmul.mubr.msk.bf16.gmra.mrb[124].mxu1 %vm580_vm0, %v8978_v57 }
 0x49a   : > { %v2467_v25 = vsub.f32 %v10632_v17, %v6852_v1  ;;  %v2366_v18 = vpop.f32.mrb[125].mxu0  ;;  %v3008_v8 = vpop.f32.mrb[57].mxu1  ;;  %3417 = vmatprep.mubr.bf16.mxu0 %v10628_v29  ;;  %3770 = vmatprep.mubr.bf16.mxu1 %v10628_v29 }
 0x49b   : > { %v2465_v10 = vsub.f32 %v10633_v33, %v2366_v18  ;;  %v6853_v36 = vpop.f32.mrb[126].mxu0  ;;  %v6981_v6 = vpop.f32.mrb[58].mxu1 }
 0x49c   : > { %v2468_v49 = vsub.f32 %v10634_v30, %v6853_v36  ;;  %v9097_v27 = vpack.c.bf16 %v6981_v6, %v6980_v16  ;;  %v2369_v20 = vpop.f32.mrb[127].mxu0  ;;  %v3011_v21 = vpop.f32.mrb[59].mxu1 }
 0x49d   : > { %v2466_v57 = vsub.f32 %v10635_v3, %v2369_v20  ;;  %v9100_v22 = vpack.c.bf16 %v3011_v21, %v3008_v8 }
 0x49e   : > { %v9102_v12 = vpack.c.bf16 %v2468_v49, %v2467_v25 }
 0x49f   : > { %v9104_v13 = vpack.c.bf16 %v2466_v57, %v2465_v10  ;;  %v10638_v10 = vld [vmem:[#allocation40_spill] sm:$0xff] }
 0x4a1   : > { %v6856_v4 = vpop.f32.mrb[128].mxu0  ;;  %v6984_v14 = vpop.f32.mrb[60].mxu1  ;;  %6326 = vmatmul.mubr.msk.bf16.gmra.mrb[188].mxu0 %vm580_vm0, %v8976_v63  ;;  %6358 = vmatmul.mubr.msk.bf16.gmra.mrb[128].mxu1 %vm580_vm0, %v8976_v63 }
 0x4a2   : > { %v2471_v38 = vsub.f32 %v10636_v62, %v6856_v4  ;;  %v2382_v48 = vpop.f32.mrb[129].mxu0  ;;  %v3024_v9 = vpop.f32.mrb[61].mxu1  ;;  %3427 = vmatprep.mubr.bf16.mxu0 %v10628_v29  ;;  %3780 = vmatprep.mubr.bf16.mxu1 %v10628_v29  ;;  %v10640_v4 = vld [vmem:[#allocation28_spill] sm:$0xff] }
 0x4a3   : > { %v2469_v1 = vsub.f32 %v10637_v59, %v2382_v48  ;;  %v6857_v16 = vpop.f32.mrb[130].mxu0  ;;  %v6985_v17 = vpop.f32.mrb[62].mxu1  ;;  %v10641_v48 = vld [vmem:[#allocation29_spill] sm:$0xff] }
 0x4a4   : > { %v2472_v25 = vsub.f32 %v8884_v39, %v6857_v16  ;;  %v9115_v18 = vpack.c.bf16 %v6985_v17, %v6984_v14  ;;  %v2385_v8 = vpop.f32.mrb[131].mxu0  ;;  %v3027_v33 = vpop.f32.mrb[63].mxu1  ;;  %v10639_v39 = vld [vmem:[#allocation27_spill] sm:$0xff]  ;;  %v10642_v17 = vld [vmem:[#allocation30_spill] sm:$0xff] }
 0x4a5   : > { %v2470_v63 = vsub.f32 %v10638_v10, %v2385_v8  ;;  %v9118_v36 = vpack.c.bf16 %v3027_v33, %v3024_v9 }
 0x4a6   : > { %v9120_v6 = vpack.c.bf16 %v2472_v25, %v2471_v38 }
 0x4a7   : > { %v9122_v30 = vpack.c.bf16 %v2470_v63, %v2469_v1 }
 0x4a9   : > { %v6860_v49 = vpop.f32.mrb[132].mxu0  ;;  %v6988_v20 = vpop.f32.mrb[64].mxu1  ;;  %6327 = vmatmul.mubr.msk.bf16.gmra.mrb[192].mxu0 %vm580_vm0, %v8996_v60  ;;  %6359 = vmatmul.mubr.msk.bf16.gmra.mrb[132].mxu1 %vm580_vm0, %v8996_v60 }
 0x4aa   : > { %v2475_v21 = vsub.f32 %v10639_v39, %v6860_v49  ;;  %v2398_v3 = vpop.f32.mrb[133].mxu0  ;;  %v3040_v57 = vpop.f32.mrb[65].mxu1  ;;  %3437 = vmatprep.mubr.bf16.mxu0 %v10628_v29  ;;  %3790 = vmatprep.mubr.bf16.mxu1 %v10628_v29 }
 0x4ab   : > { %v2473_v14 = vsub.f32 %v10640_v4, %v2398_v3  ;;  %v6861_v62 = vpop.f32.mrb[134].mxu0  ;;  %v6989_v38 = vpop.f32.mrb[66].mxu1 }
 0x4ac   : > { %v2476_v9 = vsub.f32 %v10641_v48, %v6861_v62  ;;  %v9133_v59 = vpack.c.bf16 %v6989_v38, %v6988_v20  ;;  %v2401_v1 = vpop.f32.mrb[135].mxu0  ;;  %v3043_v16 = vpop.f32.mrb[67].mxu1 }
 0x4ad   : > { %v2474_v60 = vsub.f32 %v10642_v17, %v2401_v1  ;;  %v9136_v25 = vpack.c.bf16 %v3043_v16, %v3040_v57 }
 0x4ae   : > { %v9138_v8 = vpack.c.bf16 %v2476_v9, %v2475_v21 }
 0x4af   : > { %v9140_v33 = vpack.c.bf16 %v2474_v60, %v2473_v14 }
 0x4b1   : > { %v6992_v10 = vpop.f32.mrb[68].mxu1  ;;  %6328 = vmatmul.mubr.msk.bf16.gmra.mrb[196].mxu0 %vm580_vm0, %v8994_v2  ;;  %6360 = vmatmul.mubr.msk.bf16.gmra.mrb[136].mxu1 %vm580_vm0, %v8994_v2 }
 0x4b2   : > { %v3056_v63 = vpop.f32.mrb[69].mxu1  ;;  %3447 = vmatprep.mubr.bf16.mxu0 %v10628_v29  ;;  %3800 = vmatprep.mubr.bf16.mxu1 %v10628_v29 }
 0x4b3   : > { %v6993_v49 = vpop.f32.mrb[70].mxu1 }
 0x4b4   : > { %v9148_v20 = vpack.c.bf16 %v6993_v49, %v6992_v10  ;;  %v3059_v39 = vpop.f32.mrb[71].mxu1 }
 0x4b5   : > { %v9150_v21 = vpack.c.bf16 %v3059_v39, %v3056_v63 }
 0x4b6   : > { %10643 = vst [vmem:[#allocation31_spill] sm:$0xff] %v9148_v20 }
 0x4b9   : > { %v6996_v3 = vpop.f32.mrb[72].mxu1  ;;  %6329 = vmatmul.mubr.msk.bf16.gmra.mrb[200].mxu0 %vm580_vm0, %v9014_v58  ;;  %6361 = vmatmul.mubr.msk.bf16.gmra.mrb[140].mxu1 %vm580_vm0, %v9014_v58 }
 0x4ba   : > { %v3072_v57 = vpop.f32.mrb[73].mxu1  ;;  %3457 = vmatprep.mubr.bf16.mxu0 %v10628_v29  ;;  %3810 = vmatprep.mubr.bf16.mxu1 %v10628_v29 }
 0x4bb   : > { %v6997_v2 = vpop.f32.mrb[74].mxu1 }
 0x4bc   : > { %v9158_v4 = vpack.c.bf16 %v6997_v2, %v6996_v3  ;;  %v3075_v14 = vpop.f32.mrb[75].mxu1 }
 0x4bd   : > { %v9160_v62 = vpack.c.bf16 %v3075_v14, %v3072_v57 }
 0x4be   : > { %10644 = vst [vmem:[#allocation32_spill] sm:$0xff] %v9158_v4 }
 0x4bf   : > { %10645 = vst [vmem:[#allocation33_spill] sm:$0xff] %v9160_v62 }
 0x4c1   : > { %6330 = vmatmul.mubr.msk.bf16.gmra.mrb[204].mxu0 %vm580_vm0, %v9012_v7  ;;  %6362 = vmatmul.mubr.msk.bf16.gmra.mrb[144].mxu1 %vm580_vm0, %v9012_v7 }
 0x4c2   : > { %3467 = vmatprep.mubr.bf16.mxu0 %v10628_v29  ;;  %3820 = vmatprep.mubr.bf16.mxu1 %v10628_v29 }
 0x4c9   : > { %6331 = vmatmul.mubr.msk.bf16.gmra.mrb[208].mxu0 %vm580_vm0, %v9032_v61  ;;  %6363 = vmatmul.mubr.msk.bf16.gmra.mrb[148].mxu1 %vm580_vm0, %v9032_v61 }
 0x4ca   : > { %3477 = vmatprep.mubr.bf16.mxu0 %v10628_v29  ;;  %3830 = vmatprep.mubr.bf16.mxu1 %v10628_v29 }
 0x4d1   : > { %6332 = vmatmul.mubr.msk.bf16.gmra.mrb[212].mxu0 %vm580_vm0, %v9030_v11  ;;  %6364 = vmatmul.mubr.msk.bf16.gmra.mrb[152].mxu1 %vm580_vm0, %v9030_v11 }
 0x4d2   : > { %3487 = vmatprep.mubr.bf16.mxu0 %v10628_v29  ;;  %3840 = vmatprep.mubr.bf16.mxu1 %v10628_v29 }
 0x4d9   : > { %6333 = vmatmul.mubr.msk.bf16.gmra.mrb[216].mxu0 %vm580_vm0, %v9050_v50  ;;  %6365 = vmatmul.mubr.msk.bf16.gmra.mrb[156].mxu1 %vm580_vm0, %v9050_v50 }
 0x4da   : > { %3497 = vmatprep.mubr.bf16.mxu0 %v10628_v29  ;;  %3850 = vmatprep.mubr.bf16.mxu1 %v10628_v29 }
 0x4e1   : > { %6334 = vmatmul.mubr.msk.bf16.gmra.mrb[220].mxu0 %vm580_vm0, %v9048_v15  ;;  %6366 = vmatmul.mubr.msk.bf16.gmra.mrb[160].mxu1 %vm580_vm0, %v9048_v15 }
 0x4e2   : > { %3507 = vmatprep.mubr.bf16.mxu0 %v10628_v29  ;;  %3860 = vmatprep.mubr.bf16.mxu1 %v10628_v29 }
 0x4e9   : > { %6335 = vmatmul.mubr.msk.bf16.gmra.mrb[224].mxu0 %vm580_vm0, %v9068_v53  ;;  %6367 = vmatmul.mubr.msk.bf16.gmra.mrb[164].mxu1 %vm580_vm0, %v9068_v53 }
 0x4ea   : > { %3517 = vmatprep.mubr.bf16.mxu0 %v10628_v29  ;;  %3870 = vmatprep.mubr.bf16.mxu1 %v10628_v29 }
 0x4f1   : > { %6336 = vmatmul.mubr.msk.bf16.gmra.mrb[228].mxu0 %vm580_vm0, %v9066_v19  ;;  %6368 = vmatmul.mubr.msk.bf16.gmra.mrb[168].mxu1 %vm580_vm0, %v9066_v19 }
 0x4f2   : > { %3527 = vmatprep.mubr.bf16.mxu0 %v10628_v29  ;;  %3880 = vmatprep.mubr.bf16.mxu1 %v10628_v29 }
 0x4f9   : > { %6337 = vmatmul.mubr.msk.bf16.gmra.mrb[232].mxu0 %vm580_vm0, %v9086_v0  ;;  %6369 = vmatmul.mubr.msk.bf16.gmra.mrb[172].mxu1 %vm580_vm0, %v9086_v0 }
 0x4fa   : > { %3537 = vmatprep.mubr.bf16.mxu0 %v10628_v29  ;;  %3890 = vmatprep.mubr.bf16.mxu1 %v10628_v29 }
 0x501   : > { %6338 = vmatmul.mubr.msk.bf16.gmra.mrb[236].mxu0 %vm580_vm0, %v9084_v23  ;;  %6370 = vmatmul.mubr.msk.bf16.gmra.mrb[176].mxu1 %vm580_vm0, %v9084_v23 }
 0x502   : > { %3547 = vmatprep.mubr.bf16.mxu0 %v10628_v29  ;;  %3900 = vmatprep.mubr.bf16.mxu1 %v10628_v29 }
 0x509   : > { %6339 = vmatmul.mubr.msk.bf16.gmra.mrb[240].mxu0 %vm580_vm0, %v9104_v13  ;;  %6371 = vmatmul.mubr.msk.bf16.gmra.mrb[180].mxu1 %vm580_vm0, %v9104_v13 }
 0x50a   : > { %3557 = vmatprep.mubr.bf16.mxu0 %v10628_v29  ;;  %3910 = vmatprep.mubr.bf16.mxu1 %v10628_v29 }
 0x50c   : > { %v9222_v7 = vpop.f32.mrb[136].mxu0  ;;  %v9224_v58 = vpop.f32.mrb[76].mxu1 }
 0x50d   : > { %v9226_v11 = vpop.f32.mrb[137].mxu0  ;;  %v9228_v61 = vpop.f32.mrb[77].mxu1 }
 0x50e   : > { %v9230_v15 = vpop.f32.mrb[138].mxu0  ;;  %v9232_v50 = vpop.f32.mrb[78].mxu1 }
 0x50f   : > { %v9234_v19 = vpop.f32.mrb[139].mxu0  ;;  %v9236_v53 = vpop.f32.mrb[79].mxu1 }
 0x511   : > { %6340 = vmatmul.mubr.msk.bf16.gmra.mrb[244].mxu0 %vm580_vm0, %v9102_v12  ;;  %6372 = vmatmul.mubr.msk.bf16.gmra.mrb[184].mxu1 %vm580_vm0, %v9102_v12 }
 0x512   : > { %3567 = vmatprep.mubr.bf16.mxu0 %v10628_v29  ;;  %3920 = vmatprep.mubr.bf16.mxu1 %v10628_v29 }
 0x514   : > { %v9244_v23 = vpop.f32.mrb[140].mxu0  ;;  %v9246_v0 = vpop.f32.mrb[80].mxu1 }
 0x515   : > { %v9248_v13 = vpop.f32.mrb[141].mxu0  ;;  %v9250_v38 = vpop.f32.mrb[81].mxu1 }
 0x516   : > { %v9252_v48 = vpop.f32.mrb[142].mxu0  ;;  %v9254_v9 = vpop.f32.mrb[82].mxu1 }
 0x517   : > { %v9256_v1 = vpop.f32.mrb[143].mxu0  ;;  %v9258_v16 = vpop.f32.mrb[83].mxu1 }
 0x519   : > { %6341 = vmatmul.mubr.msk.bf16.gmra.mrb[248].mxu0 %vm580_vm0, %v9122_v30  ;;  %6373 = vmatmul.mubr.msk.bf16.gmra.mrb[188].mxu1 %vm580_vm0, %v9122_v30 }
 0x51a   : > { %3577 = vmatprep.mubr.bf16.mxu0 %v10628_v29  ;;  %3930 = vmatprep.mubr.bf16.mxu1 %v10628_v29 }
 0x51c   : > { %v9266_v12 = vpop.f32.mrb[144].mxu0  ;;  %v9268_v17 = vpop.f32.mrb[84].mxu1 }
 0x51d   : > { %v9270_v60 = vpop.f32.mrb[145].mxu0  ;;  %v9272_v10 = vpop.f32.mrb[85].mxu1 }
 0x51e   : > { %v9274_v63 = vpop.f32.mrb[146].mxu0  ;;  %v9276_v49 = vpop.f32.mrb[86].mxu1 }
 0x51f   : > { %v9278_v39 = vpop.f32.mrb[147].mxu0  ;;  %v9280_v3 = vpop.f32.mrb[87].mxu1 }
 0x520   : > { %10646 = vst [vmem:[#allocation34_spill] sm:$0xff] %v9280_v3 }
 0x521   : > { %6342 = vmatmul.mubr.msk.bf16.gmra.mrb[252].mxu0 %vm580_vm0, %v9120_v6  ;;  %6374 = vmatmul.mubr.msk.bf16.gmra.mrb[192].mxu1 %vm580_vm0, %v9120_v6 }
 0x522   : > { %3587 = vmatprep.mubr.bf16.mxu0 %v10628_v29  ;;  %3940 = vmatprep.mubr.bf16.mxu1 %v10628_v29 }
 0x524   : > { %v9288_v30 = vpop.f32.mrb[148].mxu0  ;;  %v9290_v57 = vpop.f32.mrb[88].mxu1 }
 0x525   : > { %10647 = vst [vmem:[#allocation35_spill] sm:$0xff] %v9290_v57  ;;  %v9292_v2 = vpop.f32.mrb[149].mxu0  ;;  %v9294_v14 = vpop.f32.mrb[89].mxu1 }
 0x526   : > { %10648 = vst [vmem:[#allocation36_spill] sm:$0xff] %v9292_v2  ;;  %10649 = vst [vmem:[#allocation37_spill] sm:$0xff] %v9294_v14  ;;  %v9296_v4 = vpop.f32.mrb[150].mxu0  ;;  %v9298_v62 = vpop.f32.mrb[90].mxu1 }
 0x527   : > { %10650 = vst [vmem:[#allocation38_spill] sm:$0xff] %v9296_v4  ;;  %10651 = vst [vmem:[#allocation39_spill] sm:$0xff] %v9298_v62  ;;  %v9300_v20 = vpop.f32.mrb[151].mxu0  ;;  %v9302_v3 = vpop.f32.mrb[91].mxu1 }
 0x528   : > { %10652 = vst [vmem:[#allocation40_spill] sm:$0xff] %v9300_v20  ;;  %10653 = vst [vmem:[#allocation27_spill] sm:$0xff] %v9302_v3 }
 0x529   : > { %6343 = vmatmul.mubr.msk.bf16.gmra.mrb[0].mxu0 %vm580_vm0, %v9140_v33  ;;  %6375 = vmatmul.mubr.msk.bf16.gmra.mrb[196].mxu1 %vm580_vm0, %v9140_v33 }
 0x52a   : > { %3597 = vmatprep.mubr.bf16.mxu0 %v10628_v29  ;;  %3950 = vmatprep.mubr.bf16.mxu1 %v10628_v29 }
 0x52c   : > { %v9310_v6 = vpop.f32.mrb[152].mxu0  ;;  %v9312_v14 = vpop.f32.mrb[92].mxu1 }
 0x52d   : > { %10654 = vst [vmem:[#allocation28_spill] sm:$0xff] %v9312_v14  ;;  %v9314_v4 = vpop.f32.mrb[153].mxu0  ;;  %v9316_v62 = vpop.f32.mrb[93].mxu1 }
 0x52e   : > { %10655 = vst [vmem:[#allocation29_spill] sm:$0xff] %v9314_v4  ;;  %10656 = vst [vmem:[#allocation30_spill] sm:$0xff] %v9316_v62  ;;  %v9318_v20 = vpop.f32.mrb[154].mxu0  ;;  %v9320_v3 = vpop.f32.mrb[94].mxu1 }
 0x52f   : > { %10657 = vst [vmem:[#allocation41_spill] sm:$0xff] %v9318_v20  ;;  %10658 = vst [vmem:[#allocation42_spill] sm:$0xff] %v9320_v3  ;;  %v9322_v2 = vpop.f32.mrb[155].mxu0  ;;  %v9324_v57 = vpop.f32.mrb[95].mxu1 }
 0x530   : > { %10659 = vst [vmem:[#allocation43_spill] sm:$0xff] %v9322_v2  ;;  %10660 = vst [vmem:[#allocation44_spill] sm:$0xff] %v9324_v57 }
 0x531   : > { %6344 = vmatmul.mubr.msk.bf16.gmra.mrb[4].mxu0 %vm580_vm0, %v9138_v8  ;;  %6376 = vmatmul.mubr.msk.bf16.gmra.mrb[200].mxu1 %vm580_vm0, %v9138_v8 }
 0x532   : > { %4129 = vmatprep.mubr.bf16.mxu0 %v10628_v29  ;;  %4482 = vmatprep.mubr.bf16.mxu1 %v10628_v29 }
 0x534   : > { %v9332_v33 = vpop.f32.mrb[156].mxu0  ;;  %v9334_v62 = vpop.f32.mrb[96].mxu1 }
 0x535   : > { %10661 = vst [vmem:[#allocation45_spill] sm:$0xff] %v9334_v62  ;;  %v9336_v20 = vpop.f32.mrb[157].mxu0  ;;  %v9338_v3 = vpop.f32.mrb[97].mxu1 }
 0x536   : > { %10662 = vst [vmem:[#allocation46_spill] sm:$0xff] %v9336_v20  ;;  %10663 = vst [vmem:[#allocation47_spill] sm:$0xff] %v9338_v3  ;;  %v9340_v2 = vpop.f32.mrb[158].mxu0  ;;  %v9342_v57 = vpop.f32.mrb[98].mxu1 }
 0x537   : > { %10664 = vst [vmem:[#allocation48_spill] sm:$0xff] %v9340_v2  ;;  %10665 = vst [vmem:[#allocation49_spill] sm:$0xff] %v9342_v57  ;;  %v9344_v4 = vpop.f32.mrb[159].mxu0  ;;  %v9346_v14 = vpop.f32.mrb[99].mxu1 }
 0x538   : > { %10666 = vst [vmem:[#allocation50_spill] sm:$0xff] %v9344_v4  ;;  %10667 = vst [vmem:[#allocation51_spill] sm:$0xff] %v9346_v14 }
 0x539   : > { %6385 = vmatmul.mubr.msk.bf16.vlgmr.msra.gmra.mrb[8].mxu0 %vm580_vm0, %v8910_v37  ;;  %6417 = vmatmul.mubr.msk.bf16.vlgmr.msra.gmra.mrb[204].mxu1 %vm580_vm0, %v8910_v37 }
 0x53a   : > { %4139 = vmatprep.mubr.bf16.mxu0 %v10628_v29  ;;  %4492 = vmatprep.mubr.bf16.mxu1 %v10628_v29 }
 0x53c   : > { %v9354_v8 = vpop.f32.mrb[160].mxu0  ;;  %v9356_v3 = vpop.f32.mrb[100].mxu1 }
 0x53d   : > { %10668 = vst [vmem:[#allocation52_spill] sm:$0xff] %v9356_v3  ;;  %v9358_v2 = vpop.f32.mrb[161].mxu0  ;;  %v9360_v57 = vpop.f32.mrb[101].mxu1 }
 0x53e   : > { %10669 = vst [vmem:[#allocation53_spill] sm:$0xff] %v9358_v2  ;;  %10670 = vst [vmem:[#allocation54_spill] sm:$0xff] %v9360_v57  ;;  %v9362_v4 = vpop.f32.mrb[162].mxu0  ;;  %v9364_v14 = vpop.f32.mrb[102].mxu1 }
 0x53f   : > { %10671 = vst [vmem:[#allocation55_spill] sm:$0xff] %v9362_v4  ;;  %10672 = vst [vmem:[#allocation56_spill] sm:$0xff] %v9364_v14  ;;  %v9366_v20 = vpop.f32.mrb[163].mxu0  ;;  %v9368_v62 = vpop.f32.mrb[103].mxu1 }
 0x540   : > { %10673 = vst [vmem:[#allocation57_spill] sm:$0xff] %v9366_v20  ;;  %10674 = vst [vmem:[#allocation58_spill] sm:$0xff] %v9368_v62 }
 0x541   : > { %6386 = vmatmul.mubr.msk.bf16.gmra.mrb[12].mxu0 %vm580_vm0, %v8907_v41  ;;  %6418 = vmatmul.mubr.msk.bf16.gmra.mrb[208].mxu1 %vm580_vm0, %v8907_v41 }
 0x542   : > { %4149 = vmatprep.mubr.bf16.mxu0 %v10628_v29  ;;  %4502 = vmatprep.mubr.bf16.mxu1 %v10628_v29 }
 0x544   : > { %v9376_v37 = vpop.f32.mrb[164].mxu0  ;;  %v9378_v57 = vpop.f32.mrb[104].mxu1 }
 0x545   : > { %10675 = vst [vmem:[#allocation59_spill] sm:$0xff] %v9378_v57  ;;  %v9380_v4 = vpop.f32.mrb[165].mxu0  ;;  %v9382_v14 = vpop.f32.mrb[105].mxu1 }
 0x546   : > { %10676 = vst [vmem:[#allocation60_spill] sm:$0xff] %v9380_v4  ;;  %10677 = vst [vmem:[#allocation61_spill] sm:$0xff] %v9382_v14  ;;  %v9384_v20 = vpop.f32.mrb[166].mxu0  ;;  %v9386_v62 = vpop.f32.mrb[106].mxu1 }
 0x547   : > { %10678 = vst [vmem:[#allocation62_spill] sm:$0xff] %v9384_v20  ;;  %10679 = vst [vmem:[#allocation63_spill] sm:$0xff] %v9386_v62  ;;  %v9388_v2 = vpop.f32.mrb[167].mxu0  ;;  %v9390_v3 = vpop.f32.mrb[107].mxu1 }
 0x548   : > { %10680 = vst [vmem:[#allocation64_spill] sm:$0xff] %v9388_v2  ;;  %10681 = vst [vmem:[#allocation65_spill] sm:$0xff] %v9390_v3 }
 0x549   : > { %6387 = vmatmul.mubr.msk.bf16.gmra.mrb[16].mxu0 %vm580_vm0, %v8924_v44  ;;  %6419 = vmatmul.mubr.msk.bf16.gmra.mrb[212].mxu1 %vm580_vm0, %v8924_v44 }
 0x54a   : > { %4159 = vmatprep.mubr.bf16.mxu0 %v10628_v29  ;;  %4512 = vmatprep.mubr.bf16.mxu1 %v10628_v29 }
 0x54c   : > { %v9398_v41 = vpop.f32.mrb[168].mxu0  ;;  %v9400_v14 = vpop.f32.mrb[108].mxu1 }
 0x54d   : > { %10682 = vst [vmem:[#allocation66_spill] sm:$0xff] %v9400_v14  ;;  %v9402_v20 = vpop.f32.mrb[169].mxu0  ;;  %v9404_v62 = vpop.f32.mrb[109].mxu1 }
 0x54e   : > { %10683 = vst [vmem:[#allocation67_spill] sm:$0xff] %v9402_v20  ;;  %10684 = vst [vmem:[#allocation68_spill] sm:$0xff] %v9404_v62  ;;  %v9406_v2 = vpop.f32.mrb[170].mxu0  ;;  %v9408_v3 = vpop.f32.mrb[110].mxu1 }
 0x54f   : > { %10685 = vst [vmem:[#allocation69_spill] sm:$0xff] %v9406_v2  ;;  %10686 = vst [vmem:[#allocation70_spill] sm:$0xff] %v9408_v3  ;;  %v9410_v4 = vpop.f32.mrb[171].mxu0  ;;  %v9412_v57 = vpop.f32.mrb[111].mxu1 }
 0x550   : > { %10687 = vst [vmem:[#allocation71_spill] sm:$0xff] %v9410_v4  ;;  %10688 = vst [vmem:[#allocation72_spill] sm:$0xff] %v9412_v57 }
 0x551   : > { %6388 = vmatmul.mubr.msk.bf16.gmra.mrb[20].mxu0 %vm580_vm0, %v8921_v43  ;;  %6420 = vmatmul.mubr.msk.bf16.gmra.mrb[216].mxu1 %vm580_vm0, %v8921_v43 }
 0x552   : > { %4169 = vmatprep.mubr.bf16.mxu0 %v10628_v29  ;;  %4522 = vmatprep.mubr.bf16.mxu1 %v10628_v29 }
 0x554   : > { %v9420_v44 = vpop.f32.mrb[172].mxu0  ;;  %v9422_v62 = vpop.f32.mrb[112].mxu1 }
 0x555   : > { %10689 = vst [vmem:[#allocation73_spill] sm:$0xff] %v9422_v62  ;;  %v9424_v2 = vpop.f32.mrb[173].mxu0  ;;  %v9426_v3 = vpop.f32.mrb[113].mxu1 }
 0x556   : > { %10690 = vst [vmem:[#allocation74_spill] sm:$0xff] %v9424_v2  ;;  %10691 = vst [vmem:[#allocation75_spill] sm:$0xff] %v9426_v3  ;;  %v9428_v4 = vpop.f32.mrb[174].mxu0  ;;  %v9430_v57 = vpop.f32.mrb[114].mxu1 }
 0x557   : > { %10692 = vst [vmem:[#allocation76_spill] sm:$0xff] %v9428_v4  ;;  %10693 = vst [vmem:[#allocation77_spill] sm:$0xff] %v9430_v57  ;;  %v9432_v20 = vpop.f32.mrb[175].mxu0  ;;  %v9434_v14 = vpop.f32.mrb[115].mxu1 }
 0x558   : > { %10694 = vst [vmem:[#allocation78_spill] sm:$0xff] %v9432_v20  ;;  %10695 = vst [vmem:[#allocation79_spill] sm:$0xff] %v9434_v14 }
 0x559   : > { %6389 = vmatmul.mubr.msk.bf16.gmra.mrb[24].mxu0 %vm580_vm0, %v8940_v34  ;;  %6421 = vmatmul.mubr.msk.bf16.gmra.mrb[220].mxu1 %vm580_vm0, %v8940_v34 }
 0x55a   : > { %4179 = vmatprep.mubr.bf16.mxu0 %v10628_v29  ;;  %4532 = vmatprep.mubr.bf16.mxu1 %v10628_v29 }
 0x55c   : > { %v9442_v43 = vpop.f32.mrb[176].mxu0  ;;  %v9444_v3 = vpop.f32.mrb[116].mxu1 }
 0x55d   : > { %10696 = vst [vmem:[#allocation80_spill] sm:$0xff] %v9444_v3  ;;  %v9446_v4 = vpop.f32.mrb[177].mxu0  ;;  %v9448_v57 = vpop.f32.mrb[117].mxu1 }
 0x55e   : > { %10697 = vst [vmem:[#allocation81_spill] sm:$0xff] %v9446_v4  ;;  %10698 = vst [vmem:[#allocation82_spill] sm:$0xff] %v9448_v57  ;;  %v9450_v20 = vpop.f32.mrb[178].mxu0  ;;  %v9452_v14 = vpop.f32.mrb[118].mxu1 }
 0x55f   : > { %10699 = vst [vmem:[#allocation83_spill] sm:$0xff] %v9450_v20  ;;  %10700 = vst [vmem:[#allocation84_spill] sm:$0xff] %v9452_v14  ;;  %v9454_v2 = vpop.f32.mrb[179].mxu0  ;;  %v9456_v62 = vpop.f32.mrb[119].mxu1 }
 0x560   : > { %10701 = vst [vmem:[#allocation85_spill] sm:$0xff] %v9454_v2  ;;  %10702 = vst [vmem:[#allocation86_spill] sm:$0xff] %v9456_v62 }
 0x561   : > { %6390 = vmatmul.mubr.msk.bf16.gmra.mrb[28].mxu0 %vm580_vm0, %v8937_v28  ;;  %6422 = vmatmul.mubr.msk.bf16.gmra.mrb[224].mxu1 %vm580_vm0, %v8937_v28 }
 0x562   : > { %4189 = vmatprep.mubr.bf16.mxu0 %v10628_v29  ;;  %4542 = vmatprep.mubr.bf16.mxu1 %v10628_v29 }
 0x564   : > { %v9464_v34 = vpop.f32.mrb[180].mxu0  ;;  %v9466_v57 = vpop.f32.mrb[120].mxu1 }
 0x565   : > { %10703 = vst [vmem:[#allocation87_spill] sm:$0xff] %v9466_v57  ;;  %v9468_v20 = vpop.f32.mrb[181].mxu0  ;;  %v9470_v14 = vpop.f32.mrb[121].mxu1 }
 0x566   : > { %10704 = vst [vmem:[#allocation88_spill] sm:$0xff] %v9468_v20  ;;  %10705 = vst [vmem:[#allocation89_spill] sm:$0xff] %v9470_v14  ;;  %v9472_v2 = vpop.f32.mrb[182].mxu0  ;;  %v9474_v62 = vpop.f32.mrb[122].mxu1 }
 0x567   : > { %10706 = vst [vmem:[#allocation90_spill] sm:$0xff] %v9472_v2  ;;  %10707 = vst [vmem:[#allocation91_spill] sm:$0xff] %v9474_v62  ;;  %v9476_v4 = vpop.f32.mrb[183].mxu0  ;;  %v9478_v3 = vpop.f32.mrb[123].mxu1 }
 0x568   : > { %10708 = vst [vmem:[#allocation92_spill] sm:$0xff] %v9476_v4  ;;  %10709 = vst [vmem:[#allocation93_spill] sm:$0xff] %v9478_v3 }
 0x569   : > { %6391 = vmatmul.mubr.msk.bf16.gmra.mrb[32].mxu0 %vm580_vm0, %v8956_v52  ;;  %6423 = vmatmul.mubr.msk.bf16.gmra.mrb[228].mxu1 %vm580_vm0, %v8956_v52 }
 0x56a   : > { %4199 = vmatprep.mubr.bf16.mxu0 %v10628_v29  ;;  %4552 = vmatprep.mubr.bf16.mxu1 %v10628_v29 }
 0x56c   : > { %v9486_v28 = vpop.f32.mrb[184].mxu0  ;;  %v9488_v14 = vpop.f32.mrb[124].mxu1 }
 0x56d   : > { %10710 = vst [vmem:[#allocation94_spill] sm:$0xff] %v9488_v14  ;;  %v9490_v2 = vpop.f32.mrb[185].mxu0  ;;  %v9492_v62 = vpop.f32.mrb[125].mxu1 }
 0x56e   : > { %10711 = vst [vmem:[#allocation95_spill] sm:$0xff] %v9490_v2  ;;  %10712 = vst [vmem:[#allocation96_spill] sm:$0xff] %v9492_v62  ;;  %v9494_v4 = vpop.f32.mrb[186].mxu0  ;;  %v9496_v3 = vpop.f32.mrb[126].mxu1 }
 0x56f   : > { %10713 = vst [vmem:[#allocation97_spill] sm:$0xff] %v9494_v4  ;;  %10714 = vst [vmem:[#allocation98_spill] sm:$0xff] %v9496_v3  ;;  %v9498_v20 = vpop.f32.mrb[187].mxu0  ;;  %v9500_v57 = vpop.f32.mrb[127].mxu1 }
 0x570   : > { %10715 = vst [vmem:[#allocation99_spill] sm:$0xff] %v9498_v20  ;;  %10716 = vst [vmem:[#allocation100_spill] sm:$0xff] %v9500_v57 }
 0x571   : > { %6392 = vmatmul.mubr.msk.bf16.gmra.mrb[36].mxu0 %vm580_vm0, %v8953_v54  ;;  %6424 = vmatmul.mubr.msk.bf16.gmra.mrb[232].mxu1 %vm580_vm0, %v8953_v54 }
 0x572   : > { %4209 = vmatprep.mubr.bf16.mxu0 %v10628_v29  ;;  %4562 = vmatprep.mubr.bf16.mxu1 %v10628_v29 }
 0x574   : > { %v9508_v52 = vpop.f32.mrb[188].mxu0  ;;  %v9510_v62 = vpop.f32.mrb[128].mxu1 }
 0x575   : > { %10717 = vst [vmem:[#allocation101_spill] sm:$0xff] %v9510_v62  ;;  %v9512_v4 = vpop.f32.mrb[189].mxu0  ;;  %v9514_v3 = vpop.f32.mrb[129].mxu1 }
 0x576   : > { %10718 = vst [vmem:[#allocation102_spill] sm:$0xff] %v9512_v4  ;;  %10719 = vst [vmem:[#allocation103_spill] sm:$0xff] %v9514_v3  ;;  %v9516_v20 = vpop.f32.mrb[190].mxu0  ;;  %v9518_v57 = vpop.f32.mrb[130].mxu1 }
 0x577   : > { %10720 = vst [vmem:[#allocation104_spill] sm:$0xff] %v9516_v20  ;;  %10721 = vst [vmem:[#allocation105_spill] sm:$0xff] %v9518_v57  ;;  %v9520_v2 = vpop.f32.mrb[191].mxu0  ;;  %v9522_v14 = vpop.f32.mrb[131].mxu1 }
 0x578   : > { %10722 = vst [vmem:[#allocation106_spill] sm:$0xff] %v9520_v2  ;;  %10723 = vst [vmem:[#allocation107_spill] sm:$0xff] %v9522_v14 }
 0x579   : > { %6393 = vmatmul.mubr.msk.bf16.gmra.mrb[40].mxu0 %vm580_vm0, %v8974_v56  ;;  %6425 = vmatmul.mubr.msk.bf16.gmra.mrb[236].mxu1 %vm580_vm0, %v8974_v56 }
 0x57a   : > { %4219 = vmatprep.mubr.bf16.mxu0 %v10628_v29  ;;  %4572 = vmatprep.mubr.bf16.mxu1 %v10628_v29 }
 0x57c   : > { %v9530_v54 = vpop.f32.mrb[192].mxu0  ;;  %v9532_v3 = vpop.f32.mrb[132].mxu1 }
 0x57d   : > { %10724 = vst [vmem:[#allocation108_spill] sm:$0xff] %v9532_v3  ;;  %v9534_v20 = vpop.f32.mrb[193].mxu0  ;;  %v9536_v57 = vpop.f32.mrb[133].mxu1 }
 0x57e   : > { %10725 = vst [vmem:[#allocation109_spill] sm:$0xff] %v9534_v20  ;;  %10726 = vst [vmem:[#allocation110_spill] sm:$0xff] %v9536_v57  ;;  %v9538_v2 = vpop.f32.mrb[194].mxu0  ;;  %v9540_v14 = vpop.f32.mrb[134].mxu1 }
 0x57f   : > { %10727 = vst [vmem:[#allocation111_spill] sm:$0xff] %v9538_v2  ;;  %10728 = vst [vmem:[#allocation112_spill] sm:$0xff] %v9540_v14  ;;  %v9542_v4 = vpop.f32.mrb[195].mxu0  ;;  %v9544_v62 = vpop.f32.mrb[135].mxu1 }
 0x580   : > { %10729 = vst [vmem:[#allocation113_spill] sm:$0xff] %v9542_v4  ;;  %10730 = vst [vmem:[#allocation114_spill] sm:$0xff] %v9544_v62 }
 0x581   : > { %6394 = vmatmul.mubr.msk.bf16.gmra.mrb[44].mxu0 %vm580_vm0, %v8971_v42  ;;  %6426 = vmatmul.mubr.msk.bf16.gmra.mrb[240].mxu1 %vm580_vm0, %v8971_v42 }
 0x582   : > { %4229 = vmatprep.mubr.bf16.mxu0 %v10628_v29  ;;  %4582 = vmatprep.mubr.bf16.mxu1 %v10628_v29 }
 0x584   : > { %v9552_v56 = vpop.f32.mrb[196].mxu0  ;;  %v9554_v57 = vpop.f32.mrb[136].mxu1 }
 0x585   : > { %10731 = vst [vmem:[#allocation115_spill] sm:$0xff] %v9554_v57  ;;  %v9556_v2 = vpop.f32.mrb[197].mxu0  ;;  %v9558_v14 = vpop.f32.mrb[137].mxu1 }
 0x586   : > { %10732 = vst [vmem:[#allocation116_spill] sm:$0xff] %v9556_v2  ;;  %10733 = vst [vmem:[#allocation117_spill] sm:$0xff] %v9558_v14  ;;  %v9560_v4 = vpop.f32.mrb[198].mxu0  ;;  %v9562_v62 = vpop.f32.mrb[138].mxu1 }
 0x587   : > { %10734 = vst [vmem:[#allocation118_spill] sm:$0xff] %v9560_v4  ;;  %10735 = vst [vmem:[#allocation119_spill] sm:$0xff] %v9562_v62  ;;  %v9564_v20 = vpop.f32.mrb[199].mxu0  ;;  %v9566_v3 = vpop.f32.mrb[139].mxu1 }
 0x588   : > { %10736 = vst [vmem:[#allocation120_spill] sm:$0xff] %v9564_v20  ;;  %10737 = vst [vmem:[#allocation121_spill] sm:$0xff] %v9566_v3 }
 0x589   : > { %6395 = vmatmul.mubr.msk.bf16.gmra.mrb[48].mxu0 %vm580_vm0, %v8992_v32  ;;  %6427 = vmatmul.mubr.msk.bf16.gmra.mrb[244].mxu1 %vm580_vm0, %v8992_v32 }
 0x58a   : > { %4239 = vmatprep.mubr.bf16.mxu0 %v10628_v29  ;;  %4592 = vmatprep.mubr.bf16.mxu1 %v10628_v29 }
 0x58c   : > { %v9574_v42 = vpop.f32.mrb[200].mxu0  ;;  %v9576_v14 = vpop.f32.mrb[140].mxu1 }
 0x58d   : > { %10738 = vst [vmem:[#allocation122_spill] sm:$0xff] %v9576_v14  ;;  %v9578_v4 = vpop.f32.mrb[201].mxu0  ;;  %v9580_v62 = vpop.f32.mrb[141].mxu1 }
 0x58e   : > { %10739 = vst [vmem:[#allocation123_spill] sm:$0xff] %v9578_v4  ;;  %10740 = vst [vmem:[#allocation124_spill] sm:$0xff] %v9580_v62  ;;  %v9582_v20 = vpop.f32.mrb[202].mxu0  ;;  %v9584_v3 = vpop.f32.mrb[142].mxu1 }
 0x58f   : > { %10741 = vst [vmem:[#allocation125_spill] sm:$0xff] %v9582_v20  ;;  %10742 = vst [vmem:[#allocation126_spill] sm:$0xff] %v9584_v3  ;;  %v9586_v2 = vpop.f32.mrb[203].mxu0  ;;  %v9588_v57 = vpop.f32.mrb[143].mxu1 }
 0x590   : > { %10743 = vst [vmem:[#allocation127_spill] sm:$0xff] %v9586_v2  ;;  %10744 = vst [vmem:[#allocation128_spill] sm:$0xff] %v9588_v57 }
 0x591   : > { %6396 = vmatmul.mubr.msk.bf16.gmra.mrb[52].mxu0 %vm580_vm0, %v8989_v51  ;;  %6428 = vmatmul.mubr.msk.bf16.gmra.mrb[248].mxu1 %vm580_vm0, %v8989_v51 }
 0x592   : > { %4249 = vmatprep.mubr.bf16.mxu0 %v10628_v29  ;;  %4602 = vmatprep.mubr.bf16.mxu1 %v10628_v29 }
 0x594   : > { %v9596_v32 = vpop.f32.mrb[204].mxu0  ;;  %v9598_v62 = vpop.f32.mrb[144].mxu1 }
 0x595   : > { %10745 = vst [vmem:[#allocation129_spill] sm:$0xff] %v9598_v62  ;;  %v9600_v20 = vpop.f32.mrb[205].mxu0  ;;  %v9602_v3 = vpop.f32.mrb[145].mxu1 }
 0x596   : > { %10746 = vst [vmem:[#allocation130_spill] sm:$0xff] %v9600_v20  ;;  %10747 = vst [vmem:[#allocation131_spill] sm:$0xff] %v9602_v3  ;;  %v9604_v2 = vpop.f32.mrb[206].mxu0  ;;  %v9606_v57 = vpop.f32.mrb[146].mxu1 }
 0x597   : > { %10748 = vst [vmem:[#allocation132_spill] sm:$0xff] %v9604_v2  ;;  %10749 = vst [vmem:[#allocation133_spill] sm:$0xff] %v9606_v57  ;;  %v9608_v4 = vpop.f32.mrb[207].mxu0  ;;  %v9610_v14 = vpop.f32.mrb[147].mxu1 }
 0x598   : > { %10750 = vst [vmem:[#allocation134_spill] sm:$0xff] %v9608_v4  ;;  %10751 = vst [vmem:[#allocation135_spill] sm:$0xff] %v9610_v14 }
 0x599   : > { %6397 = vmatmul.mubr.msk.bf16.gmra.mrb[56].mxu0 %vm580_vm0, %v9010_v31  ;;  %6429 = vmatmul.mubr.msk.bf16.gmra.mrb[252].mxu1 %vm580_vm0, %v9010_v31 }
 0x59a   : > { %4259 = vmatprep.mubr.bf16.mxu0 %v10628_v29  ;;  %4612 = vmatprep.mubr.bf16.mxu1 %v10628_v29 }
 0x59c   : > { %v9618_v51 = vpop.f32.mrb[208].mxu0  ;;  %v9620_v3 = vpop.f32.mrb[148].mxu1 }
 0x59d   : > { %10752 = vst [vmem:[#allocation136_spill] sm:$0xff] %v9620_v3  ;;  %v9622_v2 = vpop.f32.mrb[209].mxu0  ;;  %v9624_v57 = vpop.f32.mrb[149].mxu1 }
 0x59e   : > { %10753 = vst [vmem:[#allocation137_spill] sm:$0xff] %v9622_v2  ;;  %10754 = vst [vmem:[#allocation138_spill] sm:$0xff] %v9624_v57  ;;  %v9626_v4 = vpop.f32.mrb[210].mxu0  ;;  %v9628_v14 = vpop.f32.mrb[150].mxu1 }
 0x59f   : > { %10755 = vst [vmem:[#allocation139_spill] sm:$0xff] %v9626_v4  ;;  %10756 = vst [vmem:[#allocation140_spill] sm:$0xff] %v9628_v14  ;;  %v9630_v20 = vpop.f32.mrb[211].mxu0  ;;  %v9632_v62 = vpop.f32.mrb[151].mxu1 }
 0x5a0   : > { %10757 = vst [vmem:[#allocation141_spill] sm:$0xff] %v9630_v20  ;;  %10758 = vst [vmem:[#allocation142_spill] sm:$0xff] %v9632_v62 }
 0x5a1   : > { %6398 = vmatmul.mubr.msk.bf16.gmra.mrb[60].mxu0 %vm580_vm0, %v9007_v24  ;;  %6430 = vmatmul.mubr.msk.bf16.gmra.mrb[0].mxu1 %vm580_vm0, %v9007_v24 }
 0x5a2   : > { %4269 = vmatprep.mubr.bf16.mxu0 %v10628_v29  ;;  %4622 = vmatprep.mubr.bf16.mxu1 %v10628_v29 }
 0x5a4   : > { %v9640_v31 = vpop.f32.mrb[212].mxu0  ;;  %v9642_v57 = vpop.f32.mrb[152].mxu1 }
 0x5a5   : > { %10759 = vst [vmem:[#allocation143_spill] sm:$0xff] %v9642_v57  ;;  %v9644_v4 = vpop.f32.mrb[213].mxu0  ;;  %v9646_v14 = vpop.f32.mrb[153].mxu1 }
 0x5a6   : > { %10760 = vst [vmem:[#allocation144_spill] sm:$0xff] %v9644_v4  ;;  %10761 = vst [vmem:[#allocation145_spill] sm:$0xff] %v9646_v14  ;;  %v9648_v20 = vpop.f32.mrb[214].mxu0  ;;  %v9650_v62 = vpop.f32.mrb[154].mxu1 }
 0x5a7   : > { %10762 = vst [vmem:[#allocation146_spill] sm:$0xff] %v9648_v20  ;;  %10763 = vst [vmem:[#allocation147_spill] sm:$0xff] %v9650_v62  ;;  %v9652_v2 = vpop.f32.mrb[215].mxu0  ;;  %v9654_v3 = vpop.f32.mrb[155].mxu1 }
 0x5a8   : > { %10764 = vst [vmem:[#allocation148_spill] sm:$0xff] %v9652_v2  ;;  %10765 = vst [vmem:[#allocation149_spill] sm:$0xff] %v9654_v3 }
 0x5a9   : > { %6399 = vmatmul.mubr.msk.bf16.gmra.mrb[64].mxu0 %vm580_vm0, %v9028_v45  ;;  %6431 = vmatmul.mubr.msk.bf16.gmra.mrb[4].mxu1 %vm580_vm0, %v9028_v45 }
 0x5aa   : > { %4279 = vmatprep.mubr.bf16.mxu0 %v10628_v29  ;;  %4632 = vmatprep.mubr.bf16.mxu1 %v10628_v29 }
 0x5ac   : > { %v9662_v24 = vpop.f32.mrb[216].mxu0  ;;  %v9664_v14 = vpop.f32.mrb[156].mxu1 }
 0x5ad   : > { %10766 = vst [vmem:[#allocation150_spill] sm:$0xff] %v9664_v14  ;;  %v9666_v20 = vpop.f32.mrb[217].mxu0  ;;  %v9668_v62 = vpop.f32.mrb[157].mxu1 }
 0x5ae   : > { %10767 = vst [vmem:[#allocation151_spill] sm:$0xff] %v9666_v20  ;;  %10768 = vst [vmem:[#allocation152_spill] sm:$0xff] %v9668_v62  ;;  %v9670_v2 = vpop.f32.mrb[218].mxu0  ;;  %v9672_v3 = vpop.f32.mrb[158].mxu1 }
 0x5af   : > { %10769 = vst [vmem:[#allocation153_spill] sm:$0xff] %v9670_v2  ;;  %10770 = vst [vmem:[#allocation154_spill] sm:$0xff] %v9672_v3  ;;  %v9674_v4 = vpop.f32.mrb[219].mxu0  ;;  %v9676_v57 = vpop.f32.mrb[159].mxu1 }
 0x5b0   : > { %10771 = vst [vmem:[#allocation155_spill] sm:$0xff] %v9674_v4  ;;  %10772 = vst [vmem:[#allocation156_spill] sm:$0xff] %v9676_v57 }
 0x5b1   : > { %6400 = vmatmul.mubr.msk.bf16.gmra.mrb[68].mxu0 %vm580_vm0, %v9025_v26  ;;  %6432 = vmatmul.mubr.msk.bf16.gmra.mrb[8].mxu1 %vm580_vm0, %v9025_v26 }
 0x5b2   : > { %4289 = vmatprep.mubr.bf16.mxu0 %v10628_v29  ;;  %4642 = vmatprep.mubr.bf16.mxu1 %v10628_v29 }
 0x5b4   : > { %v9684_v45 = vpop.f32.mrb[220].mxu0  ;;  %v9686_v62 = vpop.f32.mrb[160].mxu1 }
 0x5b5   : > { %10773 = vst [vmem:[#allocation157_spill] sm:$0xff] %v9686_v62  ;;  %v9688_v2 = vpop.f32.mrb[221].mxu0  ;;  %v9690_v3 = vpop.f32.mrb[161].mxu1 }
 0x5b6   : > { %10774 = vst [vmem:[#allocation158_spill] sm:$0xff] %v9688_v2  ;;  %10775 = vst [vmem:[#allocation159_spill] sm:$0xff] %v9690_v3  ;;  %v9692_v4 = vpop.f32.mrb[222].mxu0  ;;  %v9694_v57 = vpop.f32.mrb[162].mxu1 }
 0x5b7   : > { %10776 = vst [vmem:[#allocation160_spill] sm:$0xff] %v9692_v4  ;;  %10777 = vst [vmem:[#allocation161_spill] sm:$0xff] %v9694_v57  ;;  %v9696_v20 = vpop.f32.mrb[223].mxu0  ;;  %v9698_v14 = vpop.f32.mrb[163].mxu1 }
 0x5b8   : > { %10778 = vst [vmem:[#allocation162_spill] sm:$0xff] %v9696_v20  ;;  %10779 = vst [vmem:[#allocation163_spill] sm:$0xff] %v9698_v14 }
 0x5b9   : > { %6401 = vmatmul.mubr.msk.bf16.gmra.mrb[72].mxu0 %vm580_vm0, %v9046_v46  ;;  %6433 = vmatmul.mubr.msk.bf16.gmra.mrb[12].mxu1 %vm580_vm0, %v9046_v46 }
 0x5ba   : > { %4299 = vmatprep.mubr.bf16.mxu0 %v10628_v29  ;;  %4652 = vmatprep.mubr.bf16.mxu1 %v10628_v29 }
 0x5bc   : > { %v9706_v26 = vpop.f32.mrb[224].mxu0  ;;  %v9708_v3 = vpop.f32.mrb[164].mxu1 }
 0x5bd   : > { %10780 = vst [vmem:[#allocation164_spill] sm:$0xff] %v9708_v3  ;;  %v9710_v4 = vpop.f32.mrb[225].mxu0  ;;  %v9712_v57 = vpop.f32.mrb[165].mxu1 }
 0x5be   : > { %10781 = vst [vmem:[#allocation165_spill] sm:$0xff] %v9710_v4  ;;  %10782 = vst [vmem:[#allocation166_spill] sm:$0xff] %v9712_v57  ;;  %v9714_v20 = vpop.f32.mrb[226].mxu0  ;;  %v9716_v14 = vpop.f32.mrb[166].mxu1 }
 0x5bf   : > { %10783 = vst [vmem:[#allocation167_spill] sm:$0xff] %v9714_v20  ;;  %10784 = vst [vmem:[#allocation168_spill] sm:$0xff] %v9716_v14  ;;  %v9718_v2 = vpop.f32.mrb[227].mxu0  ;;  %v9720_v62 = vpop.f32.mrb[167].mxu1 }
 0x5c0   : > { %10785 = vst [vmem:[#allocation169_spill] sm:$0xff] %v9718_v2  ;;  %10786 = vst [vmem:[#allocation170_spill] sm:$0xff] %v9720_v62 }
 0x5c1   : > { %6402 = vmatmul.mubr.msk.bf16.gmra.mrb[76].mxu0 %vm580_vm0, %v9043_v47  ;;  %6434 = vmatmul.mubr.msk.bf16.gmra.mrb[16].mxu1 %vm580_vm0, %v9043_v47 }
 0x5c2   : > { %4309 = vmatprep.mubr.bf16.mxu0 %v10628_v29  ;;  %4662 = vmatprep.mubr.bf16.mxu1 %v10628_v29 }
 0x5c4   : > { %v9728_v46 = vpop.f32.mrb[228].mxu0  ;;  %v9730_v57 = vpop.f32.mrb[168].mxu1 }
 0x5c5   : > { %10787 = vst [vmem:[#allocation171_spill] sm:$0xff] %v9730_v57  ;;  %v9732_v20 = vpop.f32.mrb[229].mxu0  ;;  %v9734_v14 = vpop.f32.mrb[169].mxu1 }
 0x5c6   : > { %10788 = vst [vmem:[#allocation172_spill] sm:$0xff] %v9732_v20  ;;  %10789 = vst [vmem:[#allocation173_spill] sm:$0xff] %v9734_v14  ;;  %v9736_v2 = vpop.f32.mrb[230].mxu0  ;;  %v9738_v62 = vpop.f32.mrb[170].mxu1 }
 0x5c7   : > { %10790 = vst [vmem:[#allocation174_spill] sm:$0xff] %v9736_v2  ;;  %10791 = vst [vmem:[#allocation175_spill] sm:$0xff] %v9738_v62  ;;  %v9740_v4 = vpop.f32.mrb[231].mxu0  ;;  %v9742_v3 = vpop.f32.mrb[171].mxu1 }
 0x5c8   : > { %10792 = vst [vmem:[#allocation176_spill] sm:$0xff] %v9740_v4  ;;  %10793 = vst [vmem:[#allocation177_spill] sm:$0xff] %v9742_v3 }
 0x5c9   : > { %6403 = vmatmul.mubr.msk.bf16.gmra.mrb[80].mxu0 %vm580_vm0, %v9064_v40  ;;  %6435 = vmatmul.mubr.msk.bf16.gmra.mrb[20].mxu1 %vm580_vm0, %v9064_v40 }
 0x5ca   : > { %4319 = vmatprep.mubr.bf16.mxu0 %v10628_v29  ;;  %4672 = vmatprep.mubr.bf16.mxu1 %v10628_v29 }
 0x5cc   : > { %v9750_v47 = vpop.f32.mrb[232].mxu0  ;;  %v9752_v14 = vpop.f32.mrb[172].mxu1 }
 0x5cd   : > { %10794 = vst [vmem:[#allocation178_spill] sm:$0xff] %v9752_v14  ;;  %v9754_v2 = vpop.f32.mrb[233].mxu0  ;;  %v9756_v62 = vpop.f32.mrb[173].mxu1 }
 0x5ce   : > { %10795 = vst [vmem:[#allocation179_spill] sm:$0xff] %v9754_v2  ;;  %10796 = vst [vmem:[#allocation180_spill] sm:$0xff] %v9756_v62  ;;  %v9758_v4 = vpop.f32.mrb[234].mxu0  ;;  %v9760_v3 = vpop.f32.mrb[174].mxu1 }
 0x5cf   : > { %10797 = vst [vmem:[#allocation181_spill] sm:$0xff] %v9758_v4  ;;  %10798 = vst [vmem:[#allocation182_spill] sm:$0xff] %v9760_v3  ;;  %v9762_v20 = vpop.f32.mrb[235].mxu0  ;;  %v9764_v57 = vpop.f32.mrb[175].mxu1 }
 0x5d0   : > { %10799 = vst [vmem:[#allocation183_spill] sm:$0xff] %v9762_v20  ;;  %10800 = vst [vmem:[#allocation184_spill] sm:$0xff] %v9764_v57 }
 0x5d1   : > { %6404 = vmatmul.mubr.msk.bf16.gmra.mrb[84].mxu0 %vm580_vm0, %v9061_v35  ;;  %6436 = vmatmul.mubr.msk.bf16.gmra.mrb[24].mxu1 %vm580_vm0, %v9061_v35 }
 0x5d2   : > { %4329 = vmatprep.mubr.bf16.mxu0 %v10628_v29  ;;  %4682 = vmatprep.mubr.bf16.mxu1 %v10628_v29 }
 0x5d4   : > { %v9772_v40 = vpop.f32.mrb[236].mxu0  ;;  %v9774_v62 = vpop.f32.mrb[176].mxu1 }
 0x5d5   : > { %10801 = vst [vmem:[#allocation185_spill] sm:$0xff] %v9774_v62  ;;  %v9776_v4 = vpop.f32.mrb[237].mxu0  ;;  %v9778_v3 = vpop.f32.mrb[177].mxu1 }
 0x5d6   : > { %10802 = vst [vmem:[#allocation186_spill] sm:$0xff] %v9776_v4  ;;  %10803 = vst [vmem:[#allocation187_spill] sm:$0xff] %v9778_v3  ;;  %v9780_v20 = vpop.f32.mrb[238].mxu0  ;;  %v9782_v57 = vpop.f32.mrb[178].mxu1 }
 0x5d7   : > { %10804 = vst [vmem:[#allocation188_spill] sm:$0xff] %v9780_v20  ;;  %10805 = vst [vmem:[#allocation189_spill] sm:$0xff] %v9782_v57  ;;  %v9784_v2 = vpop.f32.mrb[239].mxu0  ;;  %v9786_v14 = vpop.f32.mrb[179].mxu1 }
 0x5d8   : > { %10806 = vst [vmem:[#allocation190_spill] sm:$0xff] %v9784_v2  ;;  %10807 = vst [vmem:[#allocation191_spill] sm:$0xff] %v9786_v14 }
 0x5d9   : > { %6405 = vmatmul.mubr.msk.bf16.gmra.mrb[88].mxu0 %vm580_vm0, %v9082_v55  ;;  %6437 = vmatmul.mubr.msk.bf16.gmra.mrb[28].mxu1 %vm580_vm0, %v9082_v55 }
 0x5da   : > { %4339 = vmatprep.mubr.bf16.mxu0 %v10628_v29  ;;  %4692 = vmatprep.mubr.bf16.mxu1 %v10628_v29 }
 0x5dc   : > { %v9794_v35 = vpop.f32.mrb[240].mxu0  ;;  %v9796_v3 = vpop.f32.mrb[180].mxu1 }
 0x5dd   : > { %10808 = vst [vmem:[#allocation192_spill] sm:$0xff] %v9796_v3  ;;  %v9798_v20 = vpop.f32.mrb[241].mxu0  ;;  %v9800_v57 = vpop.f32.mrb[181].mxu1 }
 0x5de   : > { %10809 = vst [vmem:[#allocation193_spill] sm:$0xff] %v9798_v20  ;;  %10810 = vst [vmem:[#allocation194_spill] sm:$0xff] %v9800_v57  ;;  %v9802_v2 = vpop.f32.mrb[242].mxu0  ;;  %v9804_v14 = vpop.f32.mrb[182].mxu1 }
 0x5df   : > { %10811 = vst [vmem:[#allocation195_spill] sm:$0xff] %v9802_v2  ;;  %10812 = vst [vmem:[#allocation196_spill] sm:$0xff] %v9804_v14  ;;  %v9806_v4 = vpop.f32.mrb[243].mxu0  ;;  %v9808_v62 = vpop.f32.mrb[183].mxu1 }
 0x5e0   : > { %10813 = vst [vmem:[#allocation197_spill] sm:$0xff] %v9806_v4  ;;  %10814 = vst [vmem:[#allocation198_spill] sm:$0xff] %v9808_v62 }
 0x5e1   : > { %6406 = vmatmul.mubr.msk.bf16.gmra.mrb[92].mxu0 %vm580_vm0, %v9079_v5  ;;  %6438 = vmatmul.mubr.msk.bf16.gmra.mrb[32].mxu1 %vm580_vm0, %v9079_v5 }
 0x5e2   : > { %4349 = vmatprep.mubr.bf16.mxu0 %v10628_v29  ;;  %4702 = vmatprep.mubr.bf16.mxu1 %v10628_v29 }
 0x5e4   : > { %v9816_v55 = vpop.f32.mrb[244].mxu0  ;;  %v9818_v57 = vpop.f32.mrb[184].mxu1 }
 0x5e5   : > { %10815 = vst [vmem:[#allocation199_spill] sm:$0xff] %v9818_v57  ;;  %v9820_v2 = vpop.f32.mrb[245].mxu0  ;;  %v9822_v14 = vpop.f32.mrb[185].mxu1 }
 0x5e6   : > { %10816 = vst [vmem:[#allocation200_spill] sm:$0xff] %v9820_v2  ;;  %10817 = vst [vmem:[#allocation201_spill] sm:$0xff] %v9822_v14  ;;  %v9824_v4 = vpop.f32.mrb[246].mxu0  ;;  %v9826_v62 = vpop.f32.mrb[186].mxu1 }
 0x5e7   : > { %10818 = vst [vmem:[#allocation202_spill] sm:$0xff] %v9824_v4  ;;  %10819 = vst [vmem:[#allocation203_spill] sm:$0xff] %v9826_v62  ;;  %v9828_v20 = vpop.f32.mrb[247].mxu0  ;;  %v9830_v3 = vpop.f32.mrb[187].mxu1 }
 0x5e8   : > { %10820 = vst [vmem:[#allocation204_spill] sm:$0xff] %v9828_v20  ;;  %10821 = vst [vmem:[#allocation205_spill] sm:$0xff] %v9830_v3 }
 0x5e9   : > { %6407 = vmatmul.mubr.msk.bf16.gmra.mrb[96].mxu0 %vm580_vm0, %v9100_v22  ;;  %6439 = vmatmul.mubr.msk.bf16.gmra.mrb[36].mxu1 %vm580_vm0, %v9100_v22 }
 0x5ea   : > { %4359 = vmatprep.mubr.bf16.mxu0 %v10628_v29  ;;  %4712 = vmatprep.mubr.bf16.mxu1 %v10628_v29 }
 0x5ec   : > { %v9838_v5 = vpop.f32.mrb[248].mxu0  ;;  %v9840_v14 = vpop.f32.mrb[188].mxu1 }
 0x5ed   : > { %10822 = vst [vmem:[#allocation206_spill] sm:$0xff] %v9838_v5  ;;  %10823 = vst [vmem:[#allocation207_spill] sm:$0xff] %v9840_v14  ;;  %v9842_v4 = vpop.f32.mrb[249].mxu0  ;;  %v9844_v62 = vpop.f32.mrb[189].mxu1 }
 0x5ee   : > { %10824 = vst [vmem:[#allocation208_spill] sm:$0xff] %v9842_v4  ;;  %10825 = vst [vmem:[#allocation209_spill] sm:$0xff] %v9844_v62  ;;  %v9846_v20 = vpop.f32.mrb[250].mxu0  ;;  %v9848_v3 = vpop.f32.mrb[190].mxu1 }
 0x5ef   : > { %10826 = vst [vmem:[#allocation210_spill] sm:$0xff] %v9846_v20  ;;  %10827 = vst [vmem:[#allocation211_spill] sm:$0xff] %v9848_v3  ;;  %v9850_v2 = vpop.f32.mrb[251].mxu0  ;;  %v9852_v57 = vpop.f32.mrb[191].mxu1 }
 0x5f0   : > { %10828 = vst [vmem:[#allocation212_spill] sm:$0xff] %v9850_v2  ;;  %10829 = vst [vmem:[#allocation213_spill] sm:$0xff] %v9852_v57 }
 0x5f1   : > { %6408 = vmatmul.mubr.msk.bf16.gmra.mrb[100].mxu0 %vm580_vm0, %v9097_v27  ;;  %6440 = vmatmul.mubr.msk.bf16.gmra.mrb[40].mxu1 %vm580_vm0, %v9097_v27 }
 0x5f2   : > { %4369 = vmatprep.mubr.bf16.mxu0 %v10628_v29  ;;  %4722 = vmatprep.mubr.bf16.mxu1 %v10628_v29 }
 0x5f4   : > { %v9860_v22 = vpop.f32.mrb[252].mxu0  ;;  %v9862_v62 = vpop.f32.mrb[192].mxu1 }
 0x5f5   : > { %10830 = vst [vmem:[#allocation214_spill] sm:$0xff] %v9860_v22  ;;  %10831 = vst [vmem:[#allocation215_spill] sm:$0xff] %v9862_v62  ;;  %v9864_v20 = vpop.f32.mrb[253].mxu0  ;;  %v9866_v3 = vpop.f32.mrb[193].mxu1 }
 0x5f6   : > { %10832 = vst [vmem:[#allocation216_spill] sm:$0xff] %v9864_v20  ;;  %10833 = vst [vmem:[#allocation217_spill] sm:$0xff] %v9866_v3  ;;  %v9868_v2 = vpop.f32.mrb[254].mxu0  ;;  %v9870_v57 = vpop.f32.mrb[194].mxu1 }
 0x5f7   : > { %10834 = vst [vmem:[#allocation218_spill] sm:$0xff] %v9868_v2  ;;  %10835 = vst [vmem:[#allocation219_spill] sm:$0xff] %v9870_v57  ;;  %v9872_v4 = vpop.f32.mrb[255].mxu0  ;;  %v9874_v14 = vpop.f32.mrb[195].mxu1 }
 0x5f8   : > { %10836 = vst [vmem:[#allocation220_spill] sm:$0xff] %v9872_v4  ;;  %10837 = vst [vmem:[#allocation221_spill] sm:$0xff] %v9874_v14 }
 0x5f9   : > { %6409 = vmatmul.mubr.msk.bf16.gmra.mrb[104].mxu0 %vm580_vm0, %v9118_v36  ;;  %6441 = vmatmul.mubr.msk.bf16.gmra.mrb[44].mxu1 %vm580_vm0, %v9118_v36 }
 0x5fa   : > { %4379 = vmatprep.mubr.bf16.mxu0 %v10628_v29  ;;  %4732 = vmatprep.mubr.bf16.mxu1 %v10628_v29 }
 0x5fc   : > { %v9882_v27 = vpop.f32.mrb[0].mxu0  ;;  %v9884_v3 = vpop.f32.mrb[196].mxu1 }
 0x5fd   : > { %10838 = vst [vmem:[#allocation222_spill] sm:$0xff] %v9882_v27  ;;  %10839 = vst [vmem:[#allocation223_spill] sm:$0xff] %v9884_v3  ;;  %v9886_v2 = vpop.f32.mrb[1].mxu0  ;;  %v9888_v57 = vpop.f32.mrb[197].mxu1 }
 0x5fe   : > { %10840 = vst [vmem:[#allocation224_spill] sm:$0xff] %v9886_v2  ;;  %10841 = vst [vmem:[#allocation225_spill] sm:$0xff] %v9888_v57  ;;  %v9890_v4 = vpop.f32.mrb[2].mxu0  ;;  %v9892_v14 = vpop.f32.mrb[198].mxu1 }
 0x5ff   : > { %10842 = vst [vmem:[#allocation226_spill] sm:$0xff] %v9890_v4  ;;  %10843 = vst [vmem:[#allocation227_spill] sm:$0xff] %v9892_v14  ;;  %v9894_v20 = vpop.f32.mrb[3].mxu0  ;;  %v9896_v36 = vpop.f32.mrb[199].mxu1 }
 0x600   : > { %10844 = vst [vmem:[#allocation228_spill] sm:$0xff] %v9894_v20  ;;  %10845 = vst [vmem:[#allocation229_spill] sm:$0xff] %v9896_v36 }
 0x601   : > { %6410 = vmatmul.mubr.msk.bf16.gmra.mrb[108].mxu0 %vm580_vm0, %v9115_v18  ;;  %6442 = vmatmul.mubr.msk.bf16.gmra.mrb[48].mxu1 %vm580_vm0, %v9115_v18 }
 0x602   : > { %4389 = vmatprep.mubr.bf16.mxu0 %v10628_v29  ;;  %4742 = vmatprep.mubr.bf16.mxu1 %v10628_v29 }
 0x604   : > { %v9904_v57 = vpop.f32.mrb[4].mxu0  ;;  %v9906_v4 = vpop.f32.mrb[200].mxu1 }
 0x605   : > { %10846 = vst [vmem:[#allocation230_spill] sm:$0xff] %v9904_v57  ;;  %10847 = vst [vmem:[#allocation231_spill] sm:$0xff] %v9906_v4  ;;  %v9908_v14 = vpop.f32.mrb[5].mxu0  ;;  %v9910_v20 = vpop.f32.mrb[201].mxu1 }
 0x606   : > { %10848 = vst [vmem:[#allocation232_spill] sm:$0xff] %v9908_v14  ;;  %10849 = vst [vmem:[#allocation233_spill] sm:$0xff] %v9910_v20  ;;  %v9912_v2 = vpop.f32.mrb[6].mxu0  ;;  %v9914_v36 = vpop.f32.mrb[202].mxu1 }
 0x607   : > { %10850 = vst [vmem:[#allocation234_spill] sm:$0xff] %v9912_v2  ;;  %10851 = vst [vmem:[#allocation235_spill] sm:$0xff] %v9914_v36  ;;  %v9916_v3 = vpop.f32.mrb[7].mxu0  ;;  %v9918_v27 = vpop.f32.mrb[203].mxu1 }
 0x608   : > { %10852 = vst [vmem:[#allocation236_spill] sm:$0xff] %v9916_v3  ;;  %10853 = vst [vmem:[#allocation237_spill] sm:$0xff] %v9918_v27 }
 0x609   : > { %6411 = vmatmul.mubr.msk.bf16.gmra.mrb[112].mxu0 %vm580_vm0, %v9136_v25  ;;  %6443 = vmatmul.mubr.msk.bf16.gmra.mrb[52].mxu1 %vm580_vm0, %v9136_v25 }
 0x60a   : > { %4399 = vmatprep.mubr.bf16.mxu0 %v10628_v29  ;;  %4752 = vmatprep.mubr.bf16.mxu1 %v10628_v29 }
 0x60c   : > { %v4131_v18 = vpop.f32.mrb[8].mxu0  ;;  %v4484_v20 = vpop.f32.mrb[204].mxu1 }
 0x60d   : > { %v4803_v2 = vsub.f32 %v9222_v7, %v4131_v18  ;;  %v4805_v36 = vsub.f32 %v9224_v58, %v4484_v20  ;;  %v4133_v3 = vpop.f32.mrb[9].mxu0  ;;  %v4486_v14 = vpop.f32.mrb[205].mxu1 }
 0x60e   : > { %v4804_v27 = vsub.f32 %v9226_v11, %v4133_v3  ;;  %v4806_v4 = vsub.f32 %v9228_v61, %v4486_v14  ;;  %v4135_v57 = vpop.f32.mrb[10].mxu0  ;;  %v4488_v62 = vpop.f32.mrb[206].mxu1 }
 0x60f   : > { %5059 = vst [vmem:[%s9931_s30] sm:$0xff] %v4803_v2  ;;  %5061 = vst [vmem:[%s9931_s30 + $0x10] sm:$0xff] %v4805_v36  ;;  %v4807_v25 = vsub.f32 %v9230_v15, %v4135_v57  ;;  %v4809_v20 = vsub.f32 %v9232_v50, %v4488_v62  ;;  %v4137_v7 = vpop.f32.mrb[11].mxu0  ;;  %v4490_v58 = vpop.f32.mrb[207].mxu1 }
 0x610   : > { %5060 = vst [vmem:[%s9931_s30 + $0x8] sm:$0xff] %v4804_v27  ;;  %5062 = vst [vmem:[%s9931_s30 + $0x18] sm:$0xff] %v4806_v4  ;;  %v4808_v11 = vsub.f32 %v9234_v19, %v4137_v7  ;;  %v4810_v61 = vsub.f32 %v9236_v53, %v4490_v58 }
 0x611   : > { %5063 = vst [vmem:[%s9931_s30 + $0x20] sm:$0xff] %v4807_v25  ;;  %v5315_v3 = vmin.f32 %v4803_v2, %v4807_v25  ;;  %v5579_v14 = vmax.f32 %v4803_v2, %v4807_v25  ;;  %5065 = vst [vmem:[%s9931_s30 + $0x30] sm:$0xff] %v4809_v20  ;;  %v5317_v18 = vmin.f32 %v4805_v36, %v4809_v20  ;;  %6412 = vmatmul.mubr.msk.bf16.gmra.mrb[116].mxu0 %vm580_vm0, %v9133_v59 }
 0x612   : > { %v5581_v22 = vmax.f32 %v4805_v36, %v4809_v20  ;;  %5064 = vst [vmem:[%s9931_s30 + $0x28] sm:$0xff] %v4808_v11  ;;  %v5316_v62 = vmin.f32 %v4804_v27, %v4808_v11  ;;  %v5580_v15 = vmax.f32 %v4804_v27, %v4808_v11  ;;  %5066 = vst [vmem:[%s9931_s30 + $0x38] sm:$0xff] %v4810_v61  ;;  %6444 = vmatmul.mubr.msk.bf16.gmra.mrb[56].mxu1 %vm580_vm0, %v9133_v59 }
 0x613   : > { %v5318_v50 = vmin.f32 %v4806_v4, %v4810_v61  ;;  %v5582_v57 = vmax.f32 %v4806_v4, %v4810_v61  ;;  %4409 = vmatprep.mubr.bf16.mxu0 %v10628_v29  ;;  %4762 = vmatprep.mubr.bf16.mxu1 %v10628_v29 }
 0x614   : > { %v4141_v19 = vpop.f32.mrb[12].mxu0  ;;  %v4494_v53 = vpop.f32.mrb[208].mxu1 }
 0x615   : > { %v4811_v2 = vsub.f32 %v9244_v23, %v4141_v19  ;;  %v4813_v36 = vsub.f32 %v9246_v0, %v4494_v53  ;;  %v4143_v27 = vpop.f32.mrb[13].mxu0  ;;  %v4496_v25 = vpop.f32.mrb[209].mxu1 }
 0x616   : > { %v4812_v4 = vsub.f32 %v9248_v13, %v4143_v27  ;;  %v4814_v20 = vsub.f32 %v9250_v38, %v4496_v25  ;;  %v4145_v59 = vpop.f32.mrb[14].mxu0  ;;  %v4498_v7 = vpop.f32.mrb[210].mxu1 }
 0x617   : > { %5067 = vst [vmem:[%s9931_s30 + $0x40] sm:$0xff] %v4811_v2  ;;  %v5319_v58 = vmin.f32 %v5315_v3, %v4811_v2  ;;  %v5583_v11 = vmax.f32 %v5579_v14, %v4811_v2  ;;  %5069 = vst [vmem:[%s9931_s30 + $0x50] sm:$0xff] %v4813_v36  ;;  %v5321_v61 = vmin.f32 %v5317_v18, %v4813_v36  ;;  %v4147_v23 = vpop.f32.mrb[15].mxu0  ;;  %v4500_v19 = vpop.f32.mrb[211].mxu1 }
 0x618   : > { %v5585_v5 = vmax.f32 %v5581_v22, %v4813_v36  ;;  %5068 = vst [vmem:[%s9931_s30 + $0x48] sm:$0xff] %v4812_v4  ;;  %v5320_v0 = vmin.f32 %v5316_v62, %v4812_v4  ;;  %v5584_v53 = vmax.f32 %v5580_v15, %v4812_v4  ;;  %5070 = vst [vmem:[%s9931_s30 + $0x58] sm:$0xff] %v4814_v20 }
 0x619   : > { %v5322_v13 = vmin.f32 %v5318_v50, %v4814_v20  ;;  %v5586_v38 = vmax.f32 %v5582_v57, %v4814_v20  ;;  %v4815_v27 = vsub.f32 %v9252_v48, %v4145_v59  ;;  %v4817_v3 = vsub.f32 %v9254_v9, %v4498_v7  ;;  %6413 = vmatmul.mubr.msk.bf16.gmra.mrb[120].mxu0 %vm580_vm0, %v9150_v21 }
 0x61a   : > { %v4816_v14 = vsub.f32 %v9256_v1, %v4147_v23  ;;  %v4818_v22 = vsub.f32 %v9258_v16, %v4500_v19  ;;  %6445 = vmatmul.mubr.msk.bf16.gmra.mrb[60].mxu1 %vm580_vm0, %v9150_v21  ;;  %4419 = vmatprep.mubr.bf16.mxu0 %v10628_v29 }
 0x61b   : > { %5071 = vst [vmem:[%s9931_s30 + $0x60] sm:$0xff] %v4815_v27  ;;  %v5323_v18 = vmin.f32 %v5319_v58, %v4815_v27  ;;  %v5587_v62 = vmax.f32 %v5583_v11, %v4815_v27  ;;  %5073 = vst [vmem:[%s9931_s30 + $0x70] sm:$0xff] %v4817_v3  ;;  %v5325_v15 = vmin.f32 %v5321_v61, %v4817_v3  ;;  %4772 = vmatprep.mubr.bf16.mxu1 %v10628_v29  ;;  %v10854_v27 = vld [vmem:[#allocation34_spill] sm:$0xff] }
 0x61c   : > { %v5589_v48 = vmax.f32 %v5585_v5, %v4817_v3  ;;  %5072 = vst [vmem:[%s9931_s30 + $0x68] sm:$0xff] %v4816_v14  ;;  %5074 = vst [vmem:[%s9931_s30 + $0x78] sm:$0xff] %v4818_v22  ;;  %v5324_v9 = vmin.f32 %v5320_v0, %v4816_v14  ;;  %v5588_v1 = vmax.f32 %v5584_v53, %v4816_v14  ;;  %v4151_v57 = vpop.f32.mrb[16].mxu0  ;;  %v4504_v21 = vpop.f32.mrb[212].mxu1  ;;  %v10855_v14 = vld [vmem:[#allocation31_spill] sm:$0xff] }
 0x61d   : > { %v5326_v16 = vmin.f32 %v5322_v13, %v4818_v22  ;;  %v5590_v50 = vmax.f32 %v5586_v38, %v4818_v22  ;;  %v4819_v2 = vsub.f32 %v9266_v12, %v4151_v57  ;;  %v4821_v36 = vsub.f32 %v9268_v17, %v4504_v21  ;;  %v4153_v25 = vpop.f32.mrb[17].mxu0  ;;  %v4506_v4 = vpop.f32.mrb[213].mxu1 }
 0x61e   : > { %v4820_v5 = vsub.f32 %v9270_v60, %v4153_v25  ;;  %v4822_v20 = vsub.f32 %v9272_v10, %v4506_v4  ;;  %v4155_v59 = vpop.f32.mrb[18].mxu0  ;;  %v4508_v7 = vpop.f32.mrb[214].mxu1  ;;  %v10858_v4 = vld [vmem:[#allocation37_spill] sm:$0xff] }
 0x61f   : > { %5075 = vst [vmem:[%s9931_s30 + $0x80] sm:$0xff] %v4819_v2  ;;  %v5327_v58 = vmin.f32 %v5323_v18, %v4819_v2  ;;  %v5591_v11 = vmax.f32 %v5587_v62, %v4819_v2  ;;  %5077 = vst [vmem:[%s9931_s30 + $0x90] sm:$0xff] %v4821_v36  ;;  %v5329_v61 = vmin.f32 %v5325_v15, %v4821_v36  ;;  %v4157_v12 = vpop.f32.mrb[19].mxu0  ;;  %v4510_v19 = vpop.f32.mrb[215].mxu1 }
 0x620   : > { %v5593_v23 = vmax.f32 %v5589_v48, %v4821_v36  ;;  %5076 = vst [vmem:[%s9931_s30 + $0x88] sm:$0xff] %v4820_v5  ;;  %v5328_v17 = vmin.f32 %v5324_v9, %v4820_v5  ;;  %v5592_v0 = vmax.f32 %v5588_v1, %v4820_v5  ;;  %5078 = vst [vmem:[%s9931_s30 + $0x98] sm:$0xff] %v4822_v20  ;;  %v10857_v36 = vld [vmem:[#allocation36_spill] sm:$0xff] }
 0x621   : > { %v5330_v60 = vmin.f32 %v5326_v16, %v4822_v20  ;;  %v5594_v10 = vmax.f32 %v5590_v50, %v4822_v20  ;;  %v4823_v53 = vsub.f32 %v9274_v63, %v4155_v59  ;;  %v4825_v13 = vsub.f32 %v9276_v49, %v4508_v7  ;;  %6414 = vmatmul.mubr.msk.bf16.gmra.mrb[124].mxu0 %vm580_vm0, %v10855_v14  ;;  %v10856_v50 = vld [vmem:[#allocation35_spill] sm:$0xff] }
 0x622   : > { %v4824_v38 = vsub.f32 %v9278_v39, %v4157_v12  ;;  %v4826_v3 = vsub.f32 %v10854_v27, %v4510_v19  ;;  %6446 = vmatmul.mubr.msk.bf16.gmra.mrb[64].mxu1 %vm580_vm0, %v10855_v14  ;;  %4429 = vmatprep.mubr.bf16.mxu0 %v10628_v29 }
 0x623   : > { %5079 = vst [vmem:[%s9931_s30 + $0xa0] sm:$0xff] %v4823_v53  ;;  %v5331_v22 = vmin.f32 %v5327_v58, %v4823_v53  ;;  %v5595_v18 = vmax.f32 %v5591_v11, %v4823_v53  ;;  %5081 = vst [vmem:[%s9931_s30 + $0xb0] sm:$0xff] %v4825_v13  ;;  %v5333_v62 = vmin.f32 %v5329_v61, %v4825_v13  ;;  %4782 = vmatprep.mubr.bf16.mxu1 %v10628_v29  ;;  %v10860_v53 = vld [vmem:[#allocation39_spill] sm:$0xff] }
 0x624   : > { %v5597_v63 = vmax.f32 %v5593_v23, %v4825_v13  ;;  %5080 = vst [vmem:[%s9931_s30 + $0xa8] sm:$0xff] %v4824_v38  ;;  %5082 = vst [vmem:[%s9931_s30 + $0xb8] sm:$0xff] %v4826_v3  ;;  %v5332_v49 = vmin.f32 %v5328_v17, %v4824_v38  ;;  %v5596_v39 = vmax.f32 %v5592_v0, %v4824_v38  ;;  %v4161_v9 = vpop.f32.mrb[20].mxu0  ;;  %v4514_v1 = vpop.f32.mrb[216].mxu1  ;;  %v10861_v38 = vld [vmem:[#allocation40_spill] sm:$0xff] }
 0x625   : > { %v5334_v15 = vmin.f32 %v5330_v60, %v4826_v3  ;;  %v5598_v48 = vmax.f32 %v5594_v10, %v4826_v3  ;;  %v4827_v16 = vsub.f32 %v9288_v30, %v4161_v9  ;;  %v4829_v57 = vsub.f32 %v10856_v50, %v4514_v1  ;;  %v4163_v21 = vpop.f32.mrb[21].mxu0  ;;  %v4516_v2 = vpop.f32.mrb[217].mxu1  ;;  %v10859_v60 = vld [vmem:[#allocation38_spill] sm:$0xff]  ;;  %v10862_v3 = vld [vmem:[#allocation27_spill] sm:$0xff] }
 0x626   : > { %v4828_v25 = vsub.f32 %v10857_v36, %v4163_v21  ;;  %v4830_v5 = vsub.f32 %v10858_v4, %v4516_v2  ;;  %v4165_v20 = vpop.f32.mrb[22].mxu0  ;;  %v4518_v59 = vpop.f32.mrb[218].mxu1 }
 0x627   : > { %5083 = vst [vmem:[%s9931_s30 + $0xc0] sm:$0xff] %v4827_v16  ;;  %v5335_v7 = vmin.f32 %v5331_v22, %v4827_v16  ;;  %v5599_v58 = vmax.f32 %v5595_v18, %v4827_v16  ;;  %5085 = vst [vmem:[%s9931_s30 + $0xd0] sm:$0xff] %v4829_v57  ;;  %v5337_v11 = vmin.f32 %v5333_v62, %v4829_v57  ;;  %v4167_v30 = vpop.f32.mrb[23].mxu0  ;;  %v4520_v23 = vpop.f32.mrb[219].mxu1  ;;  %v10863_v22 = vld [vmem:[#allocation33_spill] sm:$0xff] }
 0x628   : > { %v5601_v61 = vmax.f32 %v5597_v63, %v4829_v57  ;;  %5084 = vst [vmem:[%s9931_s30 + $0xc8] sm:$0xff] %v4828_v25  ;;  %v5336_v12 = vmin.f32 %v5332_v49, %v4828_v25  ;;  %v5600_v19 = vmax.f32 %v5596_v39, %v4828_v25  ;;  %5086 = vst [vmem:[%s9931_s30 + $0xd8] sm:$0xff] %v4830_v5  ;;  %v10864_v57 = vld [vmem:[#allocation28_spill] sm:$0xff]  ;;  %v10865_v25 = vld [vmem:[#allocation29_spill] sm:$0xff] }
 0x629   : > { %v5338_v17 = vmin.f32 %v5334_v15, %v4830_v5  ;;  %v5602_v0 = vmax.f32 %v5598_v48, %v4830_v5  ;;  %v4831_v10 = vsub.f32 %v10859_v60, %v4165_v20  ;;  %v4833_v13 = vsub.f32 %v10860_v53, %v4518_v59  ;;  %6415 = vmatmul.mubr.msk.bf16.gmra.mrb[128].mxu0 %vm580_vm0, %v10863_v22  ;;  %v10866_v5 = vld [vmem:[#allocation30_spill] sm:$0xff] }
 0x62a   : > { %v4832_v27 = vsub.f32 %v10861_v38, %v4167_v30  ;;  %v4834_v14 = vsub.f32 %v10862_v3, %v4520_v23  ;;  %6447 = vmatmul.mubr.msk.bf16.gmra.mrb[68].mxu1 %vm580_vm0, %v10863_v22  ;;  %4439 = vmatprep.mubr.bf16.mxu0 %v10628_v29 }
 0x62b   : > { %5087 = vst [vmem:[%s9931_s30 + $0xe0] sm:$0xff] %v4831_v10  ;;  %v5339_v18 = vmin.f32 %v5335_v7, %v4831_v10  ;;  %v5603_v62 = vmax.f32 %v5599_v58, %v4831_v10  ;;  %5089 = vst [vmem:[%s9931_s30 + $0xf0] sm:$0xff] %v4833_v13  ;;  %v5341_v63 = vmin.f32 %v5337_v11, %v4833_v13  ;;  %4792 = vmatprep.mubr.bf16.mxu1 %v10628_v29  ;;  %v10868_v10 = vld [vmem:[#allocation42_spill] sm:$0xff] }
 0x62c   : > { %v5605_v49 = vmax.f32 %v5601_v61, %v4833_v13  ;;  %5088 = vst [vmem:[%s9931_s30 + $0xe8] sm:$0xff] %v4832_v27  ;;  %5090 = vst [vmem:[%s9931_s30 + $0xf8] sm:$0xff] %v4834_v14  ;;  %v5340_v39 = vmin.f32 %v5336_v12, %v4832_v27  ;;  %v5604_v15 = vmax.f32 %v5600_v19, %v4832_v27  ;;  %v4171_v1 = vpop.f32.mrb[24].mxu0  ;;  %v4524_v16 = vpop.f32.mrb[220].mxu1  ;;  %v10869_v13 = vld [vmem:[#allocation43_spill] sm:$0xff]  ;;  %v10870_v27 = vld [vmem:[#allocation44_spill] sm:$0xff] }
 0x62d   : > { %v5342_v48 = vmin.f32 %v5338_v17, %v4834_v14  ;;  %v5606_v9 = vmax.f32 %v5602_v0, %v4834_v14  ;;  %v4835_v50 = vsub.f32 %v9310_v6, %v4171_v1  ;;  %v4837_v21 = vsub.f32 %v10864_v57, %v4524_v16  ;;  %v4173_v2 = vpop.f32.mrb[25].mxu0  ;;  %v4526_v36 = vpop.f32.mrb[221].mxu1  ;;  %v10867_v0 = vld [vmem:[#allocation41_spill] sm:$0xff]  ;;  %v10871_v14 = vld [vmem:[#allocation32_spill] sm:$0xff] }
 0x62e   : > { %v4836_v4 = vsub.f32 %v10865_v25, %v4173_v2  ;;  %v4838_v20 = vsub.f32 %v10866_v5, %v4526_v36  ;;  %v4175_v29 = vpop.f32.mrb[26].mxu0  ;;  %v4528_v59 = vpop.f32.mrb[222].mxu1  ;;  %v10873_v36 = vld [vmem:[#allocation46_spill] sm:$0xff] }
 0x62f   : > { %5091 = vst [vmem:[%s9931_s30 + $0x100] sm:$0xff] %v4835_v50  ;;  %v5343_v7 = vmin.f32 %v5339_v18, %v4835_v50  ;;  %v5607_v58 = vmax.f32 %v5603_v62, %v4835_v50  ;;  %5093 = vst [vmem:[%s9931_s30 + $0x110] sm:$0xff] %v4837_v21  ;;  %v5345_v11 = vmin.f32 %v5341_v63, %v4837_v21  ;;  %v4177_v6 = vpop.f32.mrb[27].mxu0  ;;  %v4530_v30 = vpop.f32.mrb[223].mxu1  ;;  %v10872_v50 = vld [vmem:[#allocation45_spill] sm:$0xff] }
 0x630   : > { %v5609_v61 = vmax.f32 %v5605_v49, %v4837_v21  ;;  %5092 = vst [vmem:[%s9931_s30 + $0x108] sm:$0xff] %v4836_v4  ;;  %v5344_v23 = vmin.f32 %v5340_v39, %v4836_v4  ;;  %v5608_v12 = vmax.f32 %v5604_v15, %v4836_v4  ;;  %5094 = vst [vmem:[%s9931_s30 + $0x118] sm:$0xff] %v4838_v20  ;;  %v10874_v4 = vld [vmem:[#allocation47_spill] sm:$0xff] }
 0x631   : > { %v5346_v19 = vmin.f32 %v5342_v48, %v4838_v20  ;;  %v5610_v17 = vmax.f32 %v5606_v9, %v4838_v20  ;;  %v4839_v60 = vsub.f32 %v10867_v0, %v4175_v29  ;;  %v4841_v53 = vsub.f32 %v10868_v10, %v4528_v59  ;;  %6416 = vmatmul.mubr.msk.bf16.gmra.mrb[132].mxu0 %vm580_vm0, %v10871_v14  ;;  %v10876_v0 = vld [vmem:[#allocation49_spill] sm:$0xff]  ;;  %v10877_v10 = vld [vmem:[#allocation50_spill] sm:$0xff] }
 0x632   : > { %v4840_v38 = vsub.f32 %v10869_v13, %v4177_v6  ;;  %v4842_v3 = vsub.f32 %v10870_v27, %v4530_v30  ;;  %6448 = vmatmul.mubr.msk.bf16.gmra.mrb[72].mxu1 %vm580_vm0, %v10871_v14  ;;  %v10878_v13 = vld [vmem:[#allocation51_spill] sm:$0xff] }
 0x633   : > { %5095 = vst [vmem:[%s9931_s30 + $0x120] sm:$0xff] %v4839_v60  ;;  %v5347_v22 = vmin.f32 %v5343_v7, %v4839_v60  ;;  %v5611_v18 = vmax.f32 %v5607_v58, %v4839_v60  ;;  %5097 = vst [vmem:[%s9931_s30 + $0x130] sm:$0xff] %v4841_v53  ;;  %v5349_v62 = vmin.f32 %v5345_v11, %v4841_v53 }
 0x634   : > { %v5613_v63 = vmax.f32 %v5609_v61, %v4841_v53  ;;  %5096 = vst [vmem:[%s9931_s30 + $0x128] sm:$0xff] %v4840_v38  ;;  %5098 = vst [vmem:[%s9931_s30 + $0x138] sm:$0xff] %v4842_v3  ;;  %v5348_v49 = vmin.f32 %v5344_v23, %v4840_v38  ;;  %v5612_v39 = vmax.f32 %v5608_v12, %v4840_v38  ;;  %v4181_v9 = vpop.f32.mrb[28].mxu0  ;;  %v4534_v1 = vpop.f32.mrb[224].mxu1 }
 0x635   : > { %v5350_v15 = vmin.f32 %v5346_v19, %v4842_v3  ;;  %v5614_v48 = vmax.f32 %v5610_v17, %v4842_v3  ;;  %v4843_v16 = vsub.f32 %v9332_v33, %v4181_v9  ;;  %v4845_v57 = vsub.f32 %v10872_v50, %v4534_v1  ;;  %v4183_v21 = vpop.f32.mrb[29].mxu0  ;;  %v4536_v2 = vpop.f32.mrb[225].mxu1  ;;  %v10875_v19 = vld [vmem:[#allocation48_spill] sm:$0xff] }
 0x636   : > { %v4844_v25 = vsub.f32 %v10873_v36, %v4183_v21  ;;  %v4846_v5 = vsub.f32 %v10874_v4, %v4536_v2  ;;  %v4185_v20 = vpop.f32.mrb[30].mxu0  ;;  %v4538_v29 = vpop.f32.mrb[226].mxu1  ;;  %v10879_v9 = vld [vmem:[#allocation52_spill] sm:$0xff]  ;;  %v10881_v2 = vld [vmem:[#allocation54_spill] sm:$0xff] }
 0x637   : > { %5099 = vst [vmem:[%s9931_s30 + $0x140] sm:$0xff] %v4843_v16  ;;  %v5351_v59 = vmin.f32 %v5347_v22, %v4843_v16  ;;  %v5615_v7 = vmax.f32 %v5611_v18, %v4843_v16  ;;  %5101 = vst [vmem:[%s9931_s30 + $0x150] sm:$0xff] %v4845_v57  ;;  %v5353_v58 = vmin.f32 %v5349_v62, %v4845_v57  ;;  %v4187_v33 = vpop.f32.mrb[31].mxu0  ;;  %v4540_v61 = vpop.f32.mrb[227].mxu1 }
 0x638   : > { %v5617_v11 = vmax.f32 %v5613_v63, %v4845_v57  ;;  %5100 = vst [vmem:[%s9931_s30 + $0x148] sm:$0xff] %v4844_v25  ;;  %v5352_v6 = vmin.f32 %v5348_v49, %v4844_v25  ;;  %v5616_v30 = vmax.f32 %v5612_v39, %v4844_v25  ;;  %5102 = vst [vmem:[%s9931_s30 + $0x158] sm:$0xff] %v4846_v5  ;;  %v10880_v57 = vld [vmem:[#allocation53_spill] sm:$0xff] }
 0x639   : > { %v5354_v23 = vmin.f32 %v5350_v15, %v4846_v5  ;;  %v5618_v12 = vmax.f32 %v5614_v48, %v4846_v5  ;;  %v4847_v17 = vsub.f32 %v10875_v19, %v4185_v20  ;;  %v4849_v60 = vsub.f32 %v10876_v0, %v4538_v29  ;;  %v10884_v19 = vld [vmem:[#allocation57_spill] sm:$0xff]  ;;  %v10885_v0 = vld [vmem:[#allocation58_spill] sm:$0xff] }
 0x63a   : > { %v4848_v53 = vsub.f32 %v10877_v10, %v4187_v33  ;;  %v4850_v38 = vsub.f32 %v10878_v13, %v4540_v61 }
 0x63b   : > { %5103 = vst [vmem:[%s9931_s30 + $0x160] sm:$0xff] %v4847_v17  ;;  %v5355_v27 = vmin.f32 %v5351_v59, %v4847_v17  ;;  %v5619_v3 = vmax.f32 %v5615_v7, %v4847_v17  ;;  %5105 = vst [vmem:[%s9931_s30 + $0x170] sm:$0xff] %v4849_v60  ;;  %v5357_v14 = vmin.f32 %v5353_v58, %v4849_v60 }
 0x63c   : > { %v5621_v22 = vmax.f32 %v5617_v11, %v4849_v60  ;;  %5104 = vst [vmem:[%s9931_s30 + $0x168] sm:$0xff] %v4848_v53  ;;  %5106 = vst [vmem:[%s9931_s30 + $0x178] sm:$0xff] %v4850_v38  ;;  %v5356_v18 = vmin.f32 %v5352_v6, %v4848_v53  ;;  %v5620_v62 = vmax.f32 %v5616_v30, %v4848_v53  ;;  %v4191_v39 = vpop.f32.mrb[32].mxu0  ;;  %v4544_v15 = vpop.f32.mrb[228].mxu1  ;;  %v10882_v6 = vld [vmem:[#allocation55_spill] sm:$0xff] }
 0x63d   : > { %v5358_v63 = vmin.f32 %v5354_v23, %v4850_v38  ;;  %v5622_v49 = vmax.f32 %v5618_v12, %v4850_v38  ;;  %v4851_v48 = vsub.f32 %v9354_v8, %v4191_v39  ;;  %v4853_v1 = vsub.f32 %v10879_v9, %v4544_v15  ;;  %v4193_v16 = vpop.f32.mrb[33].mxu0  ;;  %v4546_v50 = vpop.f32.mrb[229].mxu1  ;;  %v10883_v23 = vld [vmem:[#allocation56_spill] sm:$0xff] }
 0x63e   : > { %v4852_v21 = vsub.f32 %v10880_v57, %v4193_v16  ;;  %v4854_v36 = vsub.f32 %v10881_v2, %v4546_v50  ;;  %v4195_v25 = vpop.f32.mrb[34].mxu0  ;;  %v4548_v4 = vpop.f32.mrb[230].mxu1  ;;  %v10887_v9 = vld [vmem:[#allocation60_spill] sm:$0xff]  ;;  %v10888_v16 = vld [vmem:[#allocation61_spill] sm:$0xff] }
 0x63f   : > { %5107 = vst [vmem:[%s9931_s30 + $0x180] sm:$0xff] %v4851_v48  ;;  %v5359_v5 = vmin.f32 %v5355_v27, %v4851_v48  ;;  %v5623_v20 = vmax.f32 %v5619_v3, %v4851_v48  ;;  %5109 = vst [vmem:[%s9931_s30 + $0x190] sm:$0xff] %v4853_v1  ;;  %v5361_v29 = vmin.f32 %v5357_v14, %v4853_v1  ;;  %v4197_v8 = vpop.f32.mrb[35].mxu0  ;;  %v4550_v7 = vpop.f32.mrb[231].mxu1 }
 0x640   : > { %v5625_v59 = vmax.f32 %v5621_v22, %v4853_v1  ;;  %5108 = vst [vmem:[%s9931_s30 + $0x188] sm:$0xff] %v4852_v21  ;;  %v5360_v58 = vmin.f32 %v5356_v18, %v4852_v21  ;;  %v5624_v11 = vmax.f32 %v5620_v62, %v4852_v21  ;;  %5110 = vst [vmem:[%s9931_s30 + $0x198] sm:$0xff] %v4854_v36 }
 0x641   : > { %v5362_v33 = vmin.f32 %v5358_v63, %v4854_v36  ;;  %v5626_v61 = vmax.f32 %v5622_v49, %v4854_v36  ;;  %v4855_v30 = vsub.f32 %v10882_v6, %v4195_v25  ;;  %v4857_v12 = vsub.f32 %v10883_v23, %v4548_v4  ;;  %v10886_v49 = vld [vmem:[#allocation59_spill] sm:$0xff] }
 0x642   : > { %v4856_v17 = vsub.f32 %v10884_v19, %v4197_v8  ;;  %v4858_v60 = vsub.f32 %v10885_v0, %v4550_v7  ;;  %v10889_v7 = vld [vmem:[#allocation62_spill] sm:$0xff] }
 0x643   : > { %5111 = vst [vmem:[%s9931_s30 + $0x1a0] sm:$0xff] %v4855_v30  ;;  %v5363_v10 = vmin.f32 %v5359_v5, %v4855_v30  ;;  %v5627_v53 = vmax.f32 %v5623_v20, %v4855_v30  ;;  %5113 = vst [vmem:[%s9931_s30 + $0x1b0] sm:$0xff] %v4857_v12  ;;  %v5365_v13 = vmin.f32 %v5361_v29, %v4857_v12  ;;  %v10892_v30 = vld [vmem:[#allocation65_spill] sm:$0xff] }
 0x644   : > { %v5629_v38 = vmax.f32 %v5625_v59, %v4857_v12  ;;  %5112 = vst [vmem:[%s9931_s30 + $0x1a8] sm:$0xff] %v4856_v17  ;;  %5114 = vst [vmem:[%s9931_s30 + $0x1b8] sm:$0xff] %v4858_v60  ;;  %v5364_v27 = vmin.f32 %v5360_v58, %v4856_v17  ;;  %v5628_v3 = vmax.f32 %v5624_v11, %v4856_v17  ;;  %v4201_v18 = vpop.f32.mrb[36].mxu0  ;;  %v4554_v62 = vpop.f32.mrb[232].mxu1  ;;  %v10890_v11 = vld [vmem:[#allocation63_spill] sm:$0xff] }
 0x645   : > { %v5366_v14 = vmin.f32 %v5362_v33, %v4858_v60  ;;  %v5630_v22 = vmax.f32 %v5626_v61, %v4858_v60  ;;  %v4859_v63 = vsub.f32 %v9376_v37, %v4201_v18  ;;  %v4861_v39 = vsub.f32 %v10886_v49, %v4554_v62  ;;  %v4203_v15 = vpop.f32.mrb[37].mxu0  ;;  %v4556_v48 = vpop.f32.mrb[233].mxu1  ;;  %v10891_v61 = vld [vmem:[#allocation64_spill] sm:$0xff] }
 0x646   : > { %v4860_v1 = vsub.f32 %v10887_v9, %v4203_v15  ;;  %v4862_v50 = vsub.f32 %v10888_v16, %v4556_v48  ;;  %v4205_v57 = vpop.f32.mrb[38].mxu0  ;;  %v4558_v21 = vpop.f32.mrb[234].mxu1 }
 0x647   : > { %5115 = vst [vmem:[%s9931_s30 + $0x1c0] sm:$0xff] %v4859_v63  ;;  %v5367_v2 = vmin.f32 %v5363_v10, %v4859_v63  ;;  %v5631_v36 = vmax.f32 %v5627_v53, %v4859_v63  ;;  %5117 = vst [vmem:[%s9931_s30 + $0x1d0] sm:$0xff] %v4861_v39  ;;  %v5369_v25 = vmin.f32 %v5365_v13, %v4861_v39  ;;  %v4207_v37 = vpop.f32.mrb[39].mxu0  ;;  %v4560_v5 = vpop.f32.mrb[235].mxu1  ;;  %v10894_v63 = vld [vmem:[#allocation67_spill] sm:$0xff] }
 0x648   : > { %v5633_v4 = vmax.f32 %v5629_v38, %v4861_v39  ;;  %5116 = vst [vmem:[%s9931_s30 + $0x1c8] sm:$0xff] %v4860_v1  ;;  %v5368_v20 = vmin.f32 %v5364_v27, %v4860_v1  ;;  %v5632_v29 = vmax.f32 %v5628_v3, %v4860_v1  ;;  %5118 = vst [vmem:[%s9931_s30 + $0x1d8] sm:$0xff] %v4862_v50  ;;  %v10895_v39 = vld [vmem:[#allocation68_spill] sm:$0xff] }
 0x649   : > { %v5370_v59 = vmin.f32 %v5366_v14, %v4862_v50  ;;  %v5634_v8 = vmax.f32 %v5630_v22, %v4862_v50  ;;  %v4863_v58 = vsub.f32 %v10889_v7, %v4205_v57  ;;  %v4865_v33 = vsub.f32 %v10890_v11, %v4558_v21  ;;  %v10893_v14 = vld [vmem:[#allocation66_spill] sm:$0xff]  ;;  %v10899_v7 = vld [vmem:[#allocation72_spill] sm:$0xff] }
 0x64a   : > { %v4864_v6 = vsub.f32 %v10891_v61, %v4207_v37  ;;  %v4866_v23 = vsub.f32 %v10892_v30, %v4560_v5  ;;  %v10896_v37 = vld [vmem:[#allocation69_spill] sm:$0xff] }
 0x64b   : > { %5119 = vst [vmem:[%s9931_s30 + $0x1e0] sm:$0xff] %v4863_v58  ;;  %v5371_v12 = vmin.f32 %v5367_v2, %v4863_v58  ;;  %v5635_v19 = vmax.f32 %v5631_v36, %v4863_v58  ;;  %5121 = vst [vmem:[%s9931_s30 + $0x1f0] sm:$0xff] %v4865_v33  ;;  %v5373_v17 = vmin.f32 %v5369_v25, %v4865_v33 }
 0x64c   : > { %v5637_v0 = vmax.f32 %v5633_v4, %v4865_v33  ;;  %5120 = vst [vmem:[%s9931_s30 + $0x1e8] sm:$0xff] %v4864_v6  ;;  %5122 = vst [vmem:[%s9931_s30 + $0x1f8] sm:$0xff] %v4866_v23  ;;  %v5372_v60 = vmin.f32 %v5368_v20, %v4864_v6  ;;  %v5636_v10 = vmax.f32 %v5632_v29, %v4864_v6  ;;  %v4211_v38 = vpop.f32.mrb[40].mxu0  ;;  %v4564_v27 = vpop.f32.mrb[236].mxu1  ;;  %v10897_v20 = vld [vmem:[#allocation70_spill] sm:$0xff] }
 0x64d   : > { %v5374_v53 = vmin.f32 %v5370_v59, %v4866_v23  ;;  %v5638_v13 = vmax.f32 %v5634_v8, %v4866_v23  ;;  %v4867_v3 = vsub.f32 %v9398_v41, %v4211_v38  ;;  %v4869_v22 = vsub.f32 %v10893_v14, %v4564_v27  ;;  %v4213_v18 = vpop.f32.mrb[41].mxu0  ;;  %v4566_v62 = vpop.f32.mrb[237].mxu1  ;;  %v10898_v59 = vld [vmem:[#allocation71_spill] sm:$0xff]  ;;  %v10901_v27 = vld [vmem:[#allocation74_spill] sm:$0xff] }
 0x64e   : > { %v4868_v49 = vsub.f32 %v10894_v63, %v4213_v18  ;;  %v4870_v15 = vsub.f32 %v10895_v39, %v4566_v62  ;;  %v4215_v48 = vpop.f32.mrb[42].mxu0  ;;  %v4568_v9 = vpop.f32.mrb[238].mxu1  ;;  %v10902_v14 = vld [vmem:[#allocation75_spill] sm:$0xff] }
 0x64f   : > { %5123 = vst [vmem:[%s9931_s30 + $0x200] sm:$0xff] %v4867_v3  ;;  %v5375_v1 = vmin.f32 %v5371_v12, %v4867_v3  ;;  %v5639_v16 = vmax.f32 %v5635_v19, %v4867_v3  ;;  %5125 = vst [vmem:[%s9931_s30 + $0x210] sm:$0xff] %v4869_v22  ;;  %v5377_v50 = vmin.f32 %v5373_v17, %v4869_v22  ;;  %v4217_v41 = vpop.f32.mrb[43].mxu0  ;;  %v4570_v21 = vpop.f32.mrb[239].mxu1 }
 0x650   : > { %v5641_v57 = vmax.f32 %v5637_v0, %v4869_v22  ;;  %5124 = vst [vmem:[%s9931_s30 + $0x208] sm:$0xff] %v4868_v49  ;;  %v5376_v2 = vmin.f32 %v5372_v60, %v4868_v49  ;;  %v5640_v36 = vmax.f32 %v5636_v10, %v4868_v49  ;;  %5126 = vst [vmem:[%s9931_s30 + $0x218] sm:$0xff] %v4870_v15  ;;  %v10900_v10 = vld [vmem:[#allocation73_spill] sm:$0xff] }
 0x651   : > { %v5378_v25 = vmin.f32 %v5374_v53, %v4870_v15  ;;  %v5642_v4 = vmax.f32 %v5638_v13, %v4870_v15  ;;  %v4871_v5 = vsub.f32 %v10896_v37, %v4215_v48  ;;  %v4873_v29 = vsub.f32 %v10897_v20, %v4568_v9 }
 0x652   : > { %v4872_v8 = vsub.f32 %v10898_v59, %v4217_v41  ;;  %v4874_v58 = vsub.f32 %v10899_v7, %v4570_v21  ;;  %v10904_v21 = vld [vmem:[#allocation77_spill] sm:$0xff] }
 0x653   : > { %5127 = vst [vmem:[%s9931_s30 + $0x220] sm:$0xff] %v4871_v5  ;;  %v5379_v11 = vmin.f32 %v5375_v1, %v4871_v5  ;;  %v5643_v33 = vmax.f32 %v5639_v16, %v4871_v5  ;;  %5129 = vst [vmem:[%s9931_s30 + $0x230] sm:$0xff] %v4873_v29  ;;  %v5381_v61 = vmin.f32 %v5377_v50, %v4873_v29 }
 0x654   : > { %v5645_v6 = vmax.f32 %v5641_v57, %v4873_v29  ;;  %5128 = vst [vmem:[%s9931_s30 + $0x228] sm:$0xff] %v4872_v8  ;;  %5130 = vst [vmem:[%s9931_s30 + $0x238] sm:$0xff] %v4874_v58  ;;  %v5380_v30 = vmin.f32 %v5376_v2, %v4872_v8  ;;  %v5644_v23 = vmax.f32 %v5640_v36, %v4872_v8  ;;  %v4221_v17 = vpop.f32.mrb[44].mxu0  ;;  %v4574_v0 = vpop.f32.mrb[240].mxu1  ;;  %v10903_v57 = vld [vmem:[#allocation76_spill] sm:$0xff]  ;;  %v10905_v36 = vld [vmem:[#allocation78_spill] sm:$0xff] }
 0x655   : > { %v5382_v12 = vmin.f32 %v5378_v25, %v4874_v58  ;;  %v5646_v19 = vmax.f32 %v5642_v4, %v4874_v58  ;;  %v4875_v60 = vsub.f32 %v9420_v44, %v4221_v17  ;;  %v4877_v53 = vsub.f32 %v10900_v10, %v4574_v0  ;;  %v4223_v13 = vpop.f32.mrb[45].mxu0  ;;  %v4576_v38 = vpop.f32.mrb[241].mxu1  ;;  %v10906_v4 = vld [vmem:[#allocation79_spill] sm:$0xff]  ;;  %v10908_v17 = vld [vmem:[#allocation81_spill] sm:$0xff] }
 0x656   : > { %v4876_v3 = vsub.f32 %v10901_v27, %v4223_v13  ;;  %v4878_v22 = vsub.f32 %v10902_v14, %v4576_v38  ;;  %v4225_v18 = vpop.f32.mrb[46].mxu0  ;;  %v4578_v62 = vpop.f32.mrb[242].mxu1 }
 0x657   : > { %5131 = vst [vmem:[%s9931_s30 + $0x240] sm:$0xff] %v4875_v60  ;;  %v5383_v63 = vmin.f32 %v5379_v11, %v4875_v60  ;;  %v5647_v49 = vmax.f32 %v5643_v33, %v4875_v60  ;;  %5133 = vst [vmem:[%s9931_s30 + $0x250] sm:$0xff] %v4877_v53  ;;  %v5385_v39 = vmin.f32 %v5381_v61, %v4877_v53  ;;  %v4227_v44 = vpop.f32.mrb[47].mxu0  ;;  %v4580_v48 = vpop.f32.mrb[243].mxu1  ;;  %v10909_v60 = vld [vmem:[#allocation82_spill] sm:$0xff] }
 0x658   : > { %v5649_v15 = vmax.f32 %v5645_v6, %v4877_v53  ;;  %5132 = vst [vmem:[%s9931_s30 + $0x248] sm:$0xff] %v4876_v3  ;;  %v5384_v9 = vmin.f32 %v5380_v30, %v4876_v3  ;;  %v5648_v1 = vmax.f32 %v5644_v23, %v4876_v3  ;;  %5134 = vst [vmem:[%s9931_s30 + $0x258] sm:$0xff] %v4878_v22  ;;  %v10907_v30 = vld [vmem:[#allocation80_spill] sm:$0xff] }
 0x659   : > { %v5386_v16 = vmin.f32 %v5382_v12, %v4878_v22  ;;  %v5650_v50 = vmax.f32 %v5646_v19, %v4878_v22  ;;  %v4879_v41 = vsub.f32 %v10903_v57, %v4225_v18  ;;  %v4881_v2 = vsub.f32 %v10904_v21, %v4578_v62 }
 0x65a   : > { %v4880_v25 = vsub.f32 %v10905_v36, %v4227_v44  ;;  %v4882_v37 = vsub.f32 %v10906_v4, %v4580_v48  ;;  %v10911_v44 = vld [vmem:[#allocation84_spill] sm:$0xff] }
 0x65b   : > { %5135 = vst [vmem:[%s9931_s30 + $0x260] sm:$0xff] %v4879_v41  ;;  %v5387_v5 = vmin.f32 %v5383_v63, %v4879_v41  ;;  %v5651_v20 = vmax.f32 %v5647_v49, %v4879_v41  ;;  %5137 = vst [vmem:[%s9931_s30 + $0x270] sm:$0xff] %v4881_v2  ;;  %v5389_v29 = vmin.f32 %v5385_v39, %v4881_v2  ;;  %v10910_v39 = vld [vmem:[#allocation83_spill] sm:$0xff] }
 0x65c   : > { %v5653_v59 = vmax.f32 %v5649_v15, %v4881_v2  ;;  %5136 = vst [vmem:[%s9931_s30 + $0x268] sm:$0xff] %v4880_v25  ;;  %5138 = vst [vmem:[%s9931_s30 + $0x278] sm:$0xff] %v4882_v37  ;;  %v5388_v8 = vmin.f32 %v5384_v9, %v4880_v25  ;;  %v5652_v7 = vmax.f32 %v5648_v1, %v4880_v25  ;;  %v4231_v33 = vpop.f32.mrb[48].mxu0  ;;  %v4584_v61 = vpop.f32.mrb[244].mxu1  ;;  %v10912_v9 = vld [vmem:[#allocation85_spill] sm:$0xff] }
 0x65d   : > { %v5390_v58 = vmin.f32 %v5386_v16, %v4882_v37  ;;  %v5654_v11 = vmax.f32 %v5650_v50, %v4882_v37  ;;  %v4883_v6 = vsub.f32 %v9442_v43, %v4231_v33  ;;  %v4885_v23 = vsub.f32 %v10907_v30, %v4584_v61  ;;  %v4233_v12 = vpop.f32.mrb[49].mxu0  ;;  %v4586_v19 = vpop.f32.mrb[245].mxu1  ;;  %v10913_v16 = vld [vmem:[#allocation86_spill] sm:$0xff]  ;;  %v10916_v61 = vld [vmem:[#allocation89_spill] sm:$0xff] }
 0x65e   : > { %v4884_v0 = vsub.f32 %v10908_v17, %v4233_v12  ;;  %v4886_v10 = vsub.f32 %v10909_v60, %v4586_v19  ;;  %v4235_v53 = vpop.f32.mrb[50].mxu0  ;;  %v4588_v13 = vpop.f32.mrb[246].mxu1 }
 0x65f   : > { %5139 = vst [vmem:[%s9931_s30 + $0x280] sm:$0xff] %v4883_v6  ;;  %v5391_v38 = vmin.f32 %v5387_v5, %v4883_v6  ;;  %v5655_v27 = vmax.f32 %v5651_v20, %v4883_v6  ;;  %5141 = vst [vmem:[%s9931_s30 + $0x290] sm:$0xff] %v4885_v23  ;;  %v5393_v3 = vmin.f32 %v5389_v29, %v4885_v23  ;;  %v4237_v43 = vpop.f32.mrb[51].mxu0  ;;  %v4590_v22 = vpop.f32.mrb[247].mxu1 }
 0x660   : > { %v5657_v14 = vmax.f32 %v5653_v59, %v4885_v23  ;;  %5140 = vst [vmem:[%s9931_s30 + $0x288] sm:$0xff] %v4884_v0  ;;  %v5392_v18 = vmin.f32 %v5388_v8, %v4884_v0  ;;  %v5656_v62 = vmax.f32 %v5652_v7, %v4884_v0  ;;  %5142 = vst [vmem:[%s9931_s30 + $0x298] sm:$0xff] %v4886_v10  ;;  %v10914_v59 = vld [vmem:[#allocation87_spill] sm:$0xff] }
 0x661   : > { %v5394_v63 = vmin.f32 %v5390_v58, %v4886_v10  ;;  %v5658_v49 = vmax.f32 %v5654_v11, %v4886_v10  ;;  %v4887_v15 = vsub.f32 %v10910_v39, %v4235_v53  ;;  %v4889_v48 = vsub.f32 %v10911_v44, %v4588_v13  ;;  %v10915_v11 = vld [vmem:[#allocation88_spill] sm:$0xff] }
 0x662   : > { %v4888_v1 = vsub.f32 %v10912_v9, %v4237_v43  ;;  %v4890_v50 = vsub.f32 %v10913_v16, %v4590_v22  ;;  %v10919_v22 = vld [vmem:[#allocation92_spill] sm:$0xff] }
 0x663   : > { %5143 = vst [vmem:[%s9931_s30 + $0x2a0] sm:$0xff] %v4887_v15  ;;  %v5395_v57 = vmin.f32 %v5391_v38, %v4887_v15  ;;  %v5659_v41 = vmax.f32 %v5655_v27, %v4887_v15  ;;  %5145 = vst [vmem:[%s9931_s30 + $0x2b0] sm:$0xff] %v4889_v48  ;;  %v5397_v21 = vmin.f32 %v5393_v3, %v4889_v48  ;;  %v10917_v27 = vld [vmem:[#allocation90_spill] sm:$0xff] }
 0x664   : > { %v5661_v2 = vmax.f32 %v5657_v14, %v4889_v48  ;;  %5144 = vst [vmem:[%s9931_s30 + $0x2a8] sm:$0xff] %v4888_v1  ;;  %5146 = vst [vmem:[%s9931_s30 + $0x2b8] sm:$0xff] %v4890_v50  ;;  %v5396_v36 = vmin.f32 %v5392_v18, %v4888_v1  ;;  %v5660_v25 = vmax.f32 %v5656_v62, %v4888_v1  ;;  %v4241_v5 = vpop.f32.mrb[52].mxu0  ;;  %v4594_v20 = vpop.f32.mrb[248].mxu1  ;;  %v10918_v14 = vld [vmem:[#allocation91_spill] sm:$0xff]  ;;  %v10920_v62 = vld [vmem:[#allocation93_spill] sm:$0xff] }
 0x665   : > { %v5398_v4 = vmin.f32 %v5394_v63, %v4890_v50  ;;  %v5662_v37 = vmax.f32 %v5658_v49, %v4890_v50  ;;  %v4891_v29 = vsub.f32 %v9464_v34, %v4241_v5  ;;  %v4893_v8 = vsub.f32 %v10914_v59, %v4594_v20  ;;  %v4243_v7 = vpop.f32.mrb[53].mxu0  ;;  %v4596_v58 = vpop.f32.mrb[249].mxu1  ;;  %v10923_v5 = vld [vmem:[#allocation96_spill] sm:$0xff] }
 0x666   : > { %v4892_v33 = vsub.f32 %v10915_v11, %v4243_v7  ;;  %v4894_v6 = vsub.f32 %v10916_v61, %v4596_v58  ;;  %v4245_v30 = vpop.f32.mrb[54].mxu0  ;;  %v4598_v23 = vpop.f32.mrb[250].mxu1 }
 0x667   : > { %5147 = vst [vmem:[%s9931_s30 + $0x2c0] sm:$0xff] %v4891_v29  ;;  %v5399_v12 = vmin.f32 %v5395_v57, %v4891_v29  ;;  %v5663_v19 = vmax.f32 %v5659_v41, %v4891_v29  ;;  %5149 = vst [vmem:[%s9931_s30 + $0x2d0] sm:$0xff] %v4893_v8  ;;  %v5401_v17 = vmin.f32 %v5397_v21, %v4893_v8  ;;  %v4247_v34 = vpop.f32.mrb[55].mxu0  ;;  %v4600_v60 = vpop.f32.mrb[251].mxu1  ;;  %v10921_v21 = vld [vmem:[#allocation94_spill] sm:$0xff] }
 0x668   : > { %v5665_v0 = vmax.f32 %v5661_v2, %v4893_v8  ;;  %5148 = vst [vmem:[%s9931_s30 + $0x2c8] sm:$0xff] %v4892_v33  ;;  %v5400_v10 = vmin.f32 %v5396_v36, %v4892_v33  ;;  %v5664_v53 = vmax.f32 %v5660_v25, %v4892_v33  ;;  %5150 = vst [vmem:[%s9931_s30 + $0x2d8] sm:$0xff] %v4894_v6 }
 0x669   : > { %v5402_v13 = vmin.f32 %v5398_v4, %v4894_v6  ;;  %v5666_v38 = vmax.f32 %v5662_v37, %v4894_v6  ;;  %v4895_v3 = vsub.f32 %v10917_v27, %v4245_v30  ;;  %v4897_v43 = vsub.f32 %v10918_v14, %v4598_v23  ;;  %v10922_v4 = vld [vmem:[#allocation95_spill] sm:$0xff] }
 0x66a   : > { %v4896_v18 = vsub.f32 %v10919_v22, %v4247_v34  ;;  %v4898_v63 = vsub.f32 %v10920_v62, %v4600_v60  ;;  %v10926_v34 = vld [vmem:[#allocation99_spill] sm:$0xff] }
 0x66b   : > { %5151 = vst [vmem:[%s9931_s30 + $0x2e0] sm:$0xff] %v4895_v3  ;;  %v5403_v49 = vmin.f32 %v5399_v12, %v4895_v3  ;;  %v5667_v39 = vmax.f32 %v5663_v19, %v4895_v3  ;;  %5153 = vst [vmem:[%s9931_s30 + $0x2f0] sm:$0xff] %v4897_v43  ;;  %v5405_v15 = vmin.f32 %v5401_v17, %v4897_v43  ;;  %v10924_v12 = vld [vmem:[#allocation97_spill] sm:$0xff]  ;;  %v10925_v17 = vld [vmem:[#allocation98_spill] sm:$0xff] }
 0x66c   : > { %v5669_v44 = vmax.f32 %v5665_v0, %v4897_v43  ;;  %5152 = vst [vmem:[%s9931_s30 + $0x2e8] sm:$0xff] %v4896_v18  ;;  %5154 = vst [vmem:[%s9931_s30 + $0x2f8] sm:$0xff] %v4898_v63  ;;  %v5404_v48 = vmin.f32 %v5400_v10, %v4896_v18  ;;  %v5668_v9 = vmax.f32 %v5664_v53, %v4896_v18  ;;  %v4251_v50 = vpop.f32.mrb[56].mxu0  ;;  %v4604_v57 = vpop.f32.mrb[252].mxu1  ;;  %v10927_v10 = vld [vmem:[#allocation100_spill] sm:$0xff] }
 0x66d   : > { %v5406_v1 = vmin.f32 %v5402_v13, %v4898_v63  ;;  %v5670_v16 = vmax.f32 %v5666_v38, %v4898_v63  ;;  %v4899_v41 = vsub.f32 %v9486_v28, %v4251_v50  ;;  %v4901_v2 = vsub.f32 %v10921_v21, %v4604_v57  ;;  %v4253_v36 = vpop.f32.mrb[57].mxu0  ;;  %v4606_v25 = vpop.f32.mrb[253].mxu1 }
 0x66e   : > { %v4900_v37 = vsub.f32 %v10922_v4, %v4253_v36  ;;  %v4902_v20 = vsub.f32 %v10923_v5, %v4606_v25  ;;  %v4255_v29 = vpop.f32.mrb[58].mxu0  ;;  %v4608_v59 = vpop.f32.mrb[254].mxu1 }
 0x66f   : > { %5155 = vst [vmem:[%s9931_s30 + $0x300] sm:$0xff] %v4899_v41  ;;  %v5407_v8 = vmin.f32 %v5403_v49, %v4899_v41  ;;  %v5671_v7 = vmax.f32 %v5667_v39, %v4899_v41  ;;  %5157 = vst [vmem:[%s9931_s30 + $0x310] sm:$0xff] %v4901_v2  ;;  %v5409_v58 = vmin.f32 %v5405_v15, %v4901_v2  ;;  %v4257_v28 = vpop.f32.mrb[59].mxu0  ;;  %v4610_v33 = vpop.f32.mrb[255].mxu1  ;;  %v10928_v39 = vld [vmem:[#allocation101_spill] sm:$0xff] }
 0x670   : > { %v5673_v11 = vmax.f32 %v5669_v44, %v4901_v2  ;;  %5156 = vst [vmem:[%s9931_s30 + $0x308] sm:$0xff] %v4900_v37  ;;  %v5408_v61 = vmin.f32 %v5404_v48, %v4900_v37  ;;  %v5672_v6 = vmax.f32 %v5668_v9, %v4900_v37  ;;  %5158 = vst [vmem:[%s9931_s30 + $0x318] sm:$0xff] %v4902_v20  ;;  %v10929_v9 = vld [vmem:[#allocation102_spill] sm:$0xff] }
 0x671   : > { %v5410_v30 = vmin.f32 %v5406_v1, %v4902_v20  ;;  %v5674_v23 = vmax.f32 %v5670_v16, %v4902_v20  ;;  %v4903_v19 = vsub.f32 %v10924_v12, %v4255_v29  ;;  %v4905_v0 = vsub.f32 %v10925_v17, %v4608_v59  ;;  %v10930_v16 = vld [vmem:[#allocation103_spill] sm:$0xff]  ;;  %v10931_v59 = vld [vmem:[#allocation104_spill] sm:$0xff] }
 0x672   : > { %v4904_v60 = vsub.f32 %v10926_v34, %v4257_v28  ;;  %v4906_v53 = vsub.f32 %v10927_v10, %v4610_v33  ;;  %v10934_v33 = vld [vmem:[#allocation107_spill] sm:$0xff] }
 0x673   : > { %5159 = vst [vmem:[%s9931_s30 + $0x320] sm:$0xff] %v4903_v19  ;;  %v5411_v13 = vmin.f32 %v5407_v8, %v4903_v19  ;;  %v5675_v38 = vmax.f32 %v5671_v7, %v4903_v19  ;;  %5161 = vst [vmem:[%s9931_s30 + $0x330] sm:$0xff] %v4905_v0  ;;  %v5413_v27 = vmin.f32 %v5409_v58, %v4905_v0  ;;  %v10932_v7 = vld [vmem:[#allocation105_spill] sm:$0xff] }
 0x674   : > { %v5677_v3 = vmax.f32 %v5673_v11, %v4905_v0  ;;  %5160 = vst [vmem:[%s9931_s30 + $0x328] sm:$0xff] %v4904_v60  ;;  %5162 = vst [vmem:[%s9931_s30 + $0x338] sm:$0xff] %v4906_v53  ;;  %v5412_v14 = vmin.f32 %v5408_v61, %v4904_v60  ;;  %v5676_v43 = vmax.f32 %v5672_v6, %v4904_v60  ;;  %v4261_v62 = vpop.f32.mrb[60].mxu0  ;;  %v4614_v63 = vpop.f32.mrb[0].mxu1  ;;  %v10933_v11 = vld [vmem:[#allocation106_spill] sm:$0xff] }
 0x675   : > { %v5414_v22 = vmin.f32 %v5410_v30, %v4906_v53  ;;  %v5678_v18 = vmax.f32 %v5674_v23, %v4906_v53  ;;  %v4907_v49 = vsub.f32 %v9508_v52, %v4261_v62  ;;  %v4909_v15 = vsub.f32 %v10928_v39, %v4614_v63  ;;  %v4263_v44 = vpop.f32.mrb[61].mxu0  ;;  %v4616_v48 = vpop.f32.mrb[1].mxu1 }
 0x676   : > { %v4908_v1 = vsub.f32 %v10929_v9, %v4263_v44  ;;  %v4910_v50 = vsub.f32 %v10930_v16, %v4616_v48  ;;  %v4265_v57 = vpop.f32.mrb[62].mxu0  ;;  %v4618_v41 = vpop.f32.mrb[2].mxu1 }
 0x677   : > { %5163 = vst [vmem:[%s9931_s30 + $0x340] sm:$0xff] %v4907_v49  ;;  %v5415_v21 = vmin.f32 %v5411_v13, %v4907_v49  ;;  %v5679_v2 = vmax.f32 %v5675_v38, %v4907_v49  ;;  %5165 = vst [vmem:[%s9931_s30 + $0x350] sm:$0xff] %v4909_v15  ;;  %v5417_v36 = vmin.f32 %v5413_v27, %v4909_v15  ;;  %v4267_v52 = vpop.f32.mrb[63].mxu0  ;;  %v4620_v4 = vpop.f32.mrb[3].mxu1  ;;  %v10935_v13 = vld [vmem:[#allocation108_spill] sm:$0xff] }
 0x678   : > { %v5681_v25 = vmax.f32 %v5677_v3, %v4909_v15  ;;  %5164 = vst [vmem:[%s9931_s30 + $0x348] sm:$0xff] %v4908_v1  ;;  %v5416_v37 = vmin.f32 %v5412_v14, %v4908_v1  ;;  %v5680_v5 = vmax.f32 %v5676_v43, %v4908_v1  ;;  %5166 = vst [vmem:[%s9931_s30 + $0x358] sm:$0xff] %v4910_v50  ;;  %v10936_v14 = vld [vmem:[#allocation109_spill] sm:$0xff] }
 0x679   : > { %v5418_v20 = vmin.f32 %v5414_v22, %v4910_v50  ;;  %v5682_v29 = vmax.f32 %v5678_v18, %v4910_v50  ;;  %v4911_v8 = vsub.f32 %v10931_v59, %v4265_v57  ;;  %v4913_v58 = vsub.f32 %v10932_v7, %v4618_v41  ;;  %v10937_v22 = vld [vmem:[#allocation110_spill] sm:$0xff]  ;;  %v10938_v57 = vld [vmem:[#allocation111_spill] sm:$0xff] }
 0x67a   : > { %v4912_v28 = vsub.f32 %v10933_v11, %v4267_v52  ;;  %v4914_v61 = vsub.f32 %v10934_v33, %v4620_v4  ;;  %v10941_v52 = vld [vmem:[#allocation114_spill] sm:$0xff] }
 0x67b   : > { %5167 = vst [vmem:[%s9931_s30 + $0x360] sm:$0xff] %v4911_v8  ;;  %v5419_v6 = vmin.f32 %v5415_v21, %v4911_v8  ;;  %v5683_v30 = vmax.f32 %v5679_v2, %v4911_v8  ;;  %5169 = vst [vmem:[%s9931_s30 + $0x370] sm:$0xff] %v4913_v58  ;;  %v5421_v23 = vmin.f32 %v5417_v36, %v4913_v58  ;;  %v10939_v21 = vld [vmem:[#allocation112_spill] sm:$0xff]  ;;  %v10940_v36 = vld [vmem:[#allocation113_spill] sm:$0xff] }
 0x67c   : > { %v5685_v12 = vmax.f32 %v5681_v25, %v4913_v58  ;;  %5168 = vst [vmem:[%s9931_s30 + $0x368] sm:$0xff] %v4912_v28  ;;  %5170 = vst [vmem:[%s9931_s30 + $0x378] sm:$0xff] %v4914_v61  ;;  %v5420_v19 = vmin.f32 %v5416_v37, %v4912_v28  ;;  %v5684_v17 = vmax.f32 %v5680_v5, %v4912_v28  ;;  %v4271_v60 = vpop.f32.mrb[64].mxu0  ;;  %v4624_v10 = vpop.f32.mrb[4].mxu1 }
 0x67d   : > { %v5422_v0 = vmin.f32 %v5418_v20, %v4914_v61  ;;  %v5686_v34 = vmax.f32 %v5682_v29, %v4914_v61  ;;  %v4915_v53 = vsub.f32 %v9530_v54, %v4271_v60  ;;  %v4917_v38 = vsub.f32 %v10935_v13, %v4624_v10  ;;  %v4273_v27 = vpop.f32.mrb[65].mxu0  ;;  %v4626_v3 = vpop.f32.mrb[5].mxu1  ;;  %v10942_v61 = vld [vmem:[#allocation115_spill] sm:$0xff] }
 0x67e   : > { %v4916_v43 = vsub.f32 %v10936_v14, %v4273_v27  ;;  %v4918_v18 = vsub.f32 %v10937_v22, %v4626_v3  ;;  %v4275_v62 = vpop.f32.mrb[66].mxu0  ;;  %v4628_v63 = vpop.f32.mrb[6].mxu1 }
 0x67f   : > { %5171 = vst [vmem:[%s9931_s30 + $0x380] sm:$0xff] %v4915_v53  ;;  %v5423_v49 = vmin.f32 %v5419_v6, %v4915_v53  ;;  %v5687_v39 = vmax.f32 %v5683_v30, %v4915_v53  ;;  %5173 = vst [vmem:[%s9931_s30 + $0x390] sm:$0xff] %v4917_v38  ;;  %v5425_v15 = vmin.f32 %v5421_v23, %v4917_v38  ;;  %v4277_v54 = vpop.f32.mrb[67].mxu0  ;;  %v4630_v48 = vpop.f32.mrb[7].mxu1 }
 0x680   : > { %v5689_v44 = vmax.f32 %v5685_v12, %v4917_v38  ;;  %5172 = vst [vmem:[%s9931_s30 + $0x388] sm:$0xff] %v4916_v43  ;;  %v5424_v9 = vmin.f32 %v5420_v19, %v4916_v43  ;;  %v5688_v1 = vmax.f32 %v5684_v17, %v4916_v43  ;;  %5174 = vst [vmem:[%s9931_s30 + $0x398] sm:$0xff] %v4918_v18  ;;  %v10943_v12 = vld [vmem:[#allocation116_spill] sm:$0xff]  ;;  %v10944_v17 = vld [vmem:[#allocation117_spill] sm:$0xff] }
 0x681   : > { %v5426_v16 = vmin.f32 %v5422_v0, %v4918_v18  ;;  %v5690_v50 = vmax.f32 %v5686_v34, %v4918_v18  ;;  %v4919_v41 = vsub.f32 %v10938_v57, %v4275_v62  ;;  %v4921_v2 = vsub.f32 %v10939_v21, %v4628_v63  ;;  %v10945_v18 = vld [vmem:[#allocation118_spill] sm:$0xff]  ;;  %v10946_v63 = vld [vmem:[#allocation119_spill] sm:$0xff] }
 0x682   : > { %v4920_v25 = vsub.f32 %v10940_v36, %v4277_v54  ;;  %v4922_v4 = vsub.f32 %v10941_v52, %v4630_v48  ;;  %v10949_v52 = vld [vmem:[#allocation122_spill] sm:$0xff] }
 0x683   : > { %5175 = vst [vmem:[%s9931_s30 + $0x3a0] sm:$0xff] %v4919_v41  ;;  %v5427_v37 = vmin.f32 %v5423_v49, %v4919_v41  ;;  %v5691_v5 = vmax.f32 %v5687_v39, %v4919_v41  ;;  %5177 = vst [vmem:[%s9931_s30 + $0x3b0] sm:$0xff] %v4921_v2  ;;  %v5429_v20 = vmin.f32 %v5425_v15, %v4921_v2  ;;  %v10947_v39 = vld [vmem:[#allocation120_spill] sm:$0xff] }
 0x684   : > { %v5693_v29 = vmax.f32 %v5689_v44, %v4921_v2  ;;  %5176 = vst [vmem:[%s9931_s30 + $0x3a8] sm:$0xff] %v4920_v25  ;;  %5178 = vst [vmem:[%s9931_s30 + $0x3b8] sm:$0xff] %v4922_v4  ;;  %v5428_v59 = vmin.f32 %v5424_v9, %v4920_v25  ;;  %v5692_v8 = vmax.f32 %v5688_v1, %v4920_v25  ;;  %v4281_v11 = vpop.f32.mrb[68].mxu0  ;;  %v4634_v28 = vpop.f32.mrb[8].mxu1  ;;  %v10948_v44 = vld [vmem:[#allocation121_spill] sm:$0xff] }
 0x685   : > { %v5430_v7 = vmin.f32 %v5426_v16, %v4922_v4  ;;  %v5694_v58 = vmax.f32 %v5690_v50, %v4922_v4  ;;  %v4923_v33 = vsub.f32 %v9552_v56, %v4281_v11  ;;  %v4925_v6 = vsub.f32 %v10942_v61, %v4634_v28  ;;  %v4283_v30 = vpop.f32.mrb[69].mxu0  ;;  %v4636_v23 = vpop.f32.mrb[9].mxu1 }
 0x686   : > { %v4924_v19 = vsub.f32 %v10943_v12, %v4283_v30  ;;  %v4926_v0 = vsub.f32 %v10944_v17, %v4636_v23  ;;  %v4285_v34 = vpop.f32.mrb[70].mxu0  ;;  %v4638_v60 = vpop.f32.mrb[10].mxu1  ;;  %v10952_v17 = vld [vmem:[#allocation125_spill] sm:$0xff] }
 0x687   : > { %5179 = vst [vmem:[%s9931_s30 + $0x3c0] sm:$0xff] %v4923_v33  ;;  %v5431_v10 = vmin.f32 %v5427_v37, %v4923_v33  ;;  %v5695_v53 = vmax.f32 %v5691_v5, %v4923_v33  ;;  %5181 = vst [vmem:[%s9931_s30 + $0x3d0] sm:$0xff] %v4925_v6  ;;  %v5433_v13 = vmin.f32 %v5429_v20, %v4925_v6  ;;  %v4287_v56 = vpop.f32.mrb[71].mxu0  ;;  %v4640_v27 = vpop.f32.mrb[11].mxu1  ;;  %v10950_v20 = vld [vmem:[#allocation123_spill] sm:$0xff] }
 0x688   : > { %v5697_v38 = vmax.f32 %v5693_v29, %v4925_v6  ;;  %5180 = vst [vmem:[%s9931_s30 + $0x3c8] sm:$0xff] %v4924_v19  ;;  %v5432_v3 = vmin.f32 %v5428_v59, %v4924_v19  ;;  %v5696_v14 = vmax.f32 %v5692_v8, %v4924_v19  ;;  %5182 = vst [vmem:[%s9931_s30 + $0x3d8] sm:$0xff] %v4926_v0  ;;  %v10951_v59 = vld [vmem:[#allocation124_spill] sm:$0xff] }
 0x689   : > { %v5434_v43 = vmin.f32 %v5430_v7, %v4926_v0  ;;  %v5698_v22 = vmax.f32 %v5694_v58, %v4926_v0  ;;  %v4927_v62 = vsub.f32 %v10945_v18, %v4285_v34  ;;  %v4929_v49 = vsub.f32 %v10946_v63, %v4638_v60  ;;  %v10953_v34 = vld [vmem:[#allocation126_spill] sm:$0xff] }
 0x68a   : > { %v4928_v15 = vsub.f32 %v10947_v39, %v4287_v56  ;;  %v4930_v54 = vsub.f32 %v10948_v44, %v4640_v27 }
 0x68b   : > { %5183 = vst [vmem:[%s9931_s30 + $0x3e0] sm:$0xff] %v4927_v62  ;;  %v5435_v48 = vmin.f32 %v5431_v10, %v4927_v62  ;;  %v5699_v9 = vmax.f32 %v5695_v53, %v4927_v62  ;;  %5185 = vst [vmem:[%s9931_s30 + $0x3f0] sm:$0xff] %v4929_v49  ;;  %v5437_v1 = vmin.f32 %v5433_v13, %v4929_v49  ;;  %v10954_v10 = vld [vmem:[#allocation127_spill] sm:$0xff]  ;;  %v10955_v13 = vld [vmem:[#allocation128_spill] sm:$0xff] }
 0x68c   : > { %v5701_v16 = vmax.f32 %v5697_v38, %v4929_v49  ;;  %5184 = vst [vmem:[%s9931_s30 + $0x3e8] sm:$0xff] %v4928_v15  ;;  %5186 = vst [vmem:[%s9931_s30 + $0x3f8] sm:$0xff] %v4930_v54  ;;  %v5436_v50 = vmin.f32 %v5432_v3, %v4928_v15  ;;  %v5700_v57 = vmax.f32 %v5696_v14, %v4928_v15  ;;  %v4291_v2 = vpop.f32.mrb[72].mxu0  ;;  %v4644_v36 = vpop.f32.mrb[12].mxu1  ;;  %v10956_v15 = vld [vmem:[#allocation129_spill] sm:$0xff] }
 0x68d   : > { %v5438_v41 = vmin.f32 %v5434_v43, %v4930_v54  ;;  %v5702_v21 = vmax.f32 %v5698_v22, %v4930_v54  ;;  %v4931_v25 = vsub.f32 %v9574_v42, %v4291_v2  ;;  %v4933_v4 = vsub.f32 %v10949_v52, %v4644_v36  ;;  %v4293_v37 = vpop.f32.mrb[73].mxu0  ;;  %v4646_v5 = vpop.f32.mrb[13].mxu1 }
 0x68e   : > { %v4932_v29 = vsub.f32 %v10950_v20, %v4293_v37  ;;  %v4934_v8 = vsub.f32 %v10951_v59, %v4646_v5  ;;  %v4295_v7 = vpop.f32.mrb[74].mxu0  ;;  %v4648_v58 = vpop.f32.mrb[14].mxu1 }
 0x68f   : > { %5187 = vst [vmem:[%s9931_s30 + $0x400] sm:$0xff] %v4931_v25  ;;  %v5439_v11 = vmin.f32 %v5435_v48, %v4931_v25  ;;  %v5703_v28 = vmax.f32 %v5699_v9, %v4931_v25  ;;  %5189 = vst [vmem:[%s9931_s30 + $0x410] sm:$0xff] %v4933_v4  ;;  %v5441_v33 = vmin.f32 %v5437_v1, %v4933_v4  ;;  %v4297_v42 = vpop.f32.mrb[75].mxu0  ;;  %v4650_v6 = vpop.f32.mrb[15].mxu1  ;;  %v10957_v9 = vld [vmem:[#allocation130_spill] sm:$0xff] }
 0x690   : > { %v5705_v61 = vmax.f32 %v5701_v16, %v4933_v4  ;;  %5188 = vst [vmem:[%s9931_s30 + $0x408] sm:$0xff] %v4932_v29  ;;  %v5440_v30 = vmin.f32 %v5436_v50, %v4932_v29  ;;  %v5704_v23 = vmax.f32 %v5700_v57, %v4932_v29  ;;  %5190 = vst [vmem:[%s9931_s30 + $0x418] sm:$0xff] %v4934_v8  ;;  %v10958_v16 = vld [vmem:[#allocation131_spill] sm:$0xff]  ;;  %v10959_v29 = vld [vmem:[#allocation132_spill] sm:$0xff] }
 0x691   : > { %v5442_v12 = vmin.f32 %v5438_v41, %v4934_v8  ;;  %v5706_v19 = vmax.f32 %v5702_v21, %v4934_v8  ;;  %v4935_v0 = vsub.f32 %v10952_v17, %v4295_v7  ;;  %v4937_v60 = vsub.f32 %v10953_v34, %v4648_v58  ;;  %v10960_v8 = vld [vmem:[#allocation133_spill] sm:$0xff]  ;;  %v10961_v58 = vld [vmem:[#allocation134_spill] sm:$0xff] }
 0x692   : > { %v4936_v53 = vsub.f32 %v10954_v10, %v4297_v42  ;;  %v4938_v38 = vsub.f32 %v10955_v13, %v4650_v6  ;;  %v10963_v10 = vld [vmem:[#allocation136_spill] sm:$0xff] }
 0x693   : > { %5191 = vst [vmem:[%s9931_s30 + $0x420] sm:$0xff] %v4935_v0  ;;  %v5443_v56 = vmin.f32 %v5439_v11, %v4935_v0  ;;  %v5707_v27 = vmax.f32 %v5703_v28, %v4935_v0  ;;  %5193 = vst [vmem:[%s9931_s30 + $0x430] sm:$0xff] %v4937_v60  ;;  %v5445_v3 = vmin.f32 %v5441_v33, %v4937_v60  ;;  %v10962_v28 = vld [vmem:[#allocation135_spill] sm:$0xff] }
 0x694   : > { %v5709_v14 = vmax.f32 %v5705_v61, %v4937_v60  ;;  %5192 = vst [vmem:[%s9931_s30 + $0x428] sm:$0xff] %v4936_v53  ;;  %5194 = vst [vmem:[%s9931_s30 + $0x438] sm:$0xff] %v4938_v38  ;;  %v5444_v43 = vmin.f32 %v5440_v30, %v4936_v53  ;;  %v5708_v22 = vmax.f32 %v5704_v23, %v4936_v53  ;;  %v4301_v63 = vpop.f32.mrb[76].mxu0  ;;  %v4654_v49 = vpop.f32.mrb[16].mxu1 }
 0x695   : > { %v5446_v18 = vmin.f32 %v5442_v12, %v4938_v38  ;;  %v5710_v62 = vmax.f32 %v5706_v19, %v4938_v38  ;;  %v4939_v39 = vsub.f32 %v9596_v32, %v4301_v63  ;;  %v4941_v44 = vsub.f32 %v10956_v15, %v4654_v49  ;;  %v4303_v54 = vpop.f32.mrb[77].mxu0  ;;  %v4656_v48 = vpop.f32.mrb[17].mxu1 }
 0x696   : > { %v4940_v1 = vsub.f32 %v10957_v9, %v4303_v54  ;;  %v4942_v50 = vsub.f32 %v10958_v16, %v4656_v48  ;;  %v4305_v57 = vpop.f32.mrb[78].mxu0  ;;  %v4658_v41 = vpop.f32.mrb[18].mxu1  ;;  %v10966_v9 = vld [vmem:[#allocation139_spill] sm:$0xff]  ;;  %v10967_v16 = vld [vmem:[#allocation140_spill] sm:$0xff] }
 0x697   : > { %5195 = vst [vmem:[%s9931_s30 + $0x440] sm:$0xff] %v4939_v39  ;;  %v5447_v21 = vmin.f32 %v5443_v56, %v4939_v39  ;;  %v5711_v2 = vmax.f32 %v5707_v27, %v4939_v39  ;;  %5197 = vst [vmem:[%s9931_s30 + $0x450] sm:$0xff] %v4941_v44  ;;  %v5449_v36 = vmin.f32 %v5445_v3, %v4941_v44  ;;  %v4307_v32 = vpop.f32.mrb[79].mxu0  ;;  %v4660_v52 = vpop.f32.mrb[19].mxu1  ;;  %v10964_v56 = vld [vmem:[#allocation137_spill] sm:$0xff]  ;;  %v10965_v3 = vld [vmem:[#allocation138_spill] sm:$0xff] }
 0x698   : > { %v5713_v25 = vmax.f32 %v5709_v14, %v4941_v44  ;;  %5196 = vst [vmem:[%s9931_s30 + $0x448] sm:$0xff] %v4940_v1  ;;  %v5448_v4 = vmin.f32 %v5444_v43, %v4940_v1  ;;  %v5712_v37 = vmax.f32 %v5708_v22, %v4940_v1  ;;  %5198 = vst [vmem:[%s9931_s30 + $0x458] sm:$0xff] %v4942_v50 }
 0x699   : > { %v5450_v5 = vmin.f32 %v5446_v18, %v4942_v50  ;;  %v5714_v20 = vmax.f32 %v5710_v62, %v4942_v50  ;;  %v4943_v59 = vsub.f32 %v10959_v29, %v4305_v57  ;;  %v4945_v7 = vsub.f32 %v10960_v8, %v4658_v41  ;;  %v10968_v57 = vld [vmem:[#allocation141_spill] sm:$0xff] }
 0x69a   : > { %v4944_v11 = vsub.f32 %v10961_v58, %v4307_v32  ;;  %v4946_v33 = vsub.f32 %v10962_v28, %v4660_v52 }
 0x69b   : > { %5199 = vst [vmem:[%s9931_s30 + $0x460] sm:$0xff] %v4943_v59  ;;  %v5451_v61 = vmin.f32 %v5447_v21, %v4943_v59  ;;  %v5715_v42 = vmax.f32 %v5711_v2, %v4943_v59  ;;  %5201 = vst [vmem:[%s9931_s30 + $0x470] sm:$0xff] %v4945_v7  ;;  %v5453_v6 = vmin.f32 %v5449_v36, %v4945_v7  ;;  %v10969_v21 = vld [vmem:[#allocation142_spill] sm:$0xff] }
 0x69c   : > { %v5717_v30 = vmax.f32 %v5713_v25, %v4945_v7  ;;  %5200 = vst [vmem:[%s9931_s30 + $0x468] sm:$0xff] %v4944_v11  ;;  %5202 = vst [vmem:[%s9931_s30 + $0x478] sm:$0xff] %v4946_v33  ;;  %v5452_v23 = vmin.f32 %v5448_v4, %v4944_v11  ;;  %v5716_v12 = vmax.f32 %v5712_v37, %v4944_v11  ;;  %v4311_v0 = vpop.f32.mrb[80].mxu0  ;;  %v4664_v34 = vpop.f32.mrb[20].mxu1  ;;  %v10970_v7 = vld [vmem:[#allocation143_spill] sm:$0xff] }
 0x69d   : > { %v5454_v19 = vmin.f32 %v5450_v5, %v4946_v33  ;;  %v5718_v17 = vmax.f32 %v5714_v20, %v4946_v33  ;;  %v4947_v60 = vsub.f32 %v9618_v51, %v4311_v0  ;;  %v4949_v53 = vsub.f32 %v10963_v10, %v4664_v34  ;;  %v4313_v13 = vpop.f32.mrb[81].mxu0  ;;  %v4666_v38 = vpop.f32.mrb[21].mxu1  ;;  %v10971_v33 = vld [vmem:[#allocation144_spill] sm:$0xff] }
 0x69e   : > { %v4948_v27 = vsub.f32 %v10964_v56, %v4313_v13  ;;  %v4950_v14 = vsub.f32 %v10965_v3, %v4666_v38  ;;  %v4315_v43 = vpop.f32.mrb[82].mxu0  ;;  %v4668_v22 = vpop.f32.mrb[22].mxu1  ;;  %v10973_v38 = vld [vmem:[#allocation146_spill] sm:$0xff] }
 0x69f   : > { %5203 = vst [vmem:[%s9931_s30 + $0x480] sm:$0xff] %v4947_v60  ;;  %v5455_v18 = vmin.f32 %v5451_v61, %v4947_v60  ;;  %v5719_v62 = vmax.f32 %v5715_v42, %v4947_v60  ;;  %5205 = vst [vmem:[%s9931_s30 + $0x490] sm:$0xff] %v4949_v53  ;;  %v5457_v63 = vmin.f32 %v5453_v6, %v4949_v53  ;;  %v4317_v51 = vpop.f32.mrb[83].mxu0  ;;  %v4670_v39 = vpop.f32.mrb[23].mxu1  ;;  %v10972_v42 = vld [vmem:[#allocation145_spill] sm:$0xff] }
 0x6a0   : > { %v5721_v49 = vmax.f32 %v5717_v30, %v4949_v53  ;;  %5204 = vst [vmem:[%s9931_s30 + $0x488] sm:$0xff] %v4948_v27  ;;  %v5456_v15 = vmin.f32 %v5452_v23, %v4948_v27  ;;  %v5720_v44 = vmax.f32 %v5716_v12, %v4948_v27  ;;  %5206 = vst [vmem:[%s9931_s30 + $0x498] sm:$0xff] %v4950_v14  ;;  %v10974_v27 = vld [vmem:[#allocation147_spill] sm:$0xff] }
 0x6a1   : > { %v5458_v54 = vmin.f32 %v5454_v19, %v4950_v14  ;;  %v5722_v48 = vmax.f32 %v5718_v17, %v4950_v14  ;;  %v4951_v1 = vsub.f32 %v10966_v9, %v4315_v43  ;;  %v4953_v50 = vsub.f32 %v10967_v16, %v4668_v22  ;;  %v10975_v14 = vld [vmem:[#allocation148_spill] sm:$0xff]  ;;  %v10976_v22 = vld [vmem:[#allocation149_spill] sm:$0xff]  ;;  %v10977_v16 = vld [vmem:[#allocation150_spill] sm:$0xff] }
 0x6a2   : > { %v4952_v41 = vsub.f32 %v10968_v57, %v4317_v51  ;;  %v4954_v2 = vsub.f32 %v10969_v21, %v4670_v39  ;;  %v10978_v21 = vld [vmem:[#allocation151_spill] sm:$0xff] }
 0x6a3   : > { %5207 = vst [vmem:[%s9931_s30 + $0x4a0] sm:$0xff] %v4951_v1  ;;  %v5459_v36 = vmin.f32 %v5455_v18, %v4951_v1  ;;  %v5723_v25 = vmax.f32 %v5719_v62, %v4951_v1  ;;  %5209 = vst [vmem:[%s9931_s30 + $0x4b0] sm:$0xff] %v4953_v50  ;;  %v5461_v32 = vmin.f32 %v5457_v63, %v4953_v50 }
 0x6a4   : > { %v5725_v52 = vmax.f32 %v5721_v49, %v4953_v50  ;;  %5208 = vst [vmem:[%s9931_s30 + $0x4a8] sm:$0xff] %v4952_v41  ;;  %5210 = vst [vmem:[%s9931_s30 + $0x4b8] sm:$0xff] %v4954_v2  ;;  %v5460_v4 = vmin.f32 %v5456_v15, %v4952_v41  ;;  %v5724_v37 = vmax.f32 %v5720_v44, %v4952_v41  ;;  %v4321_v29 = vpop.f32.mrb[84].mxu0  ;;  %v4674_v59 = vpop.f32.mrb[24].mxu1 }
 0x6a5   : > { %v5462_v5 = vmin.f32 %v5458_v54, %v4954_v2  ;;  %v5726_v20 = vmax.f32 %v5722_v48, %v4954_v2  ;;  %v4955_v8 = vsub.f32 %v9640_v31, %v4321_v29  ;;  %v4957_v58 = vsub.f32 %v10970_v7, %v4674_v59  ;;  %v4323_v11 = vpop.f32.mrb[85].mxu0  ;;  %v4676_v28 = vpop.f32.mrb[25].mxu1 }
 0x6a6   : > { %v4956_v61 = vsub.f32 %v10971_v33, %v4323_v11  ;;  %v4958_v6 = vsub.f32 %v10972_v42, %v4676_v28  ;;  %v4325_v30 = vpop.f32.mrb[86].mxu0  ;;  %v4678_v23 = vpop.f32.mrb[26].mxu1  ;;  %v10980_v11 = vld [vmem:[#allocation153_spill] sm:$0xff]  ;;  %v10981_v33 = vld [vmem:[#allocation154_spill] sm:$0xff]  ;;  %v10982_v42 = vld [vmem:[#allocation155_spill] sm:$0xff] }
 0x6a7   : > { %5211 = vst [vmem:[%s9931_s30 + $0x4c0] sm:$0xff] %v4955_v8  ;;  %v5463_v12 = vmin.f32 %v5459_v36, %v4955_v8  ;;  %v5727_v19 = vmax.f32 %v5723_v25, %v4955_v8  ;;  %5213 = vst [vmem:[%s9931_s30 + $0x4d0] sm:$0xff] %v4957_v58  ;;  %v5465_v17 = vmin.f32 %v5461_v32, %v4957_v58  ;;  %v4327_v31 = vpop.f32.mrb[87].mxu0  ;;  %v4680_v34 = vpop.f32.mrb[27].mxu1  ;;  %v10979_v36 = vld [vmem:[#allocation152_spill] sm:$0xff] }
 0x6a8   : > { %v5729_v0 = vmax.f32 %v5725_v52, %v4957_v58  ;;  %5212 = vst [vmem:[%s9931_s30 + $0x4c8] sm:$0xff] %v4956_v61  ;;  %v5464_v60 = vmin.f32 %v5460_v4, %v4956_v61  ;;  %v5728_v10 = vmax.f32 %v5724_v37, %v4956_v61  ;;  %5214 = vst [vmem:[%s9931_s30 + $0x4d8] sm:$0xff] %v4958_v6 }
 0x6a9   : > { %v5466_v53 = vmin.f32 %v5462_v5, %v4958_v6  ;;  %v5730_v13 = vmax.f32 %v5726_v20, %v4958_v6  ;;  %v4959_v56 = vsub.f32 %v10973_v38, %v4325_v30  ;;  %v4961_v3 = vsub.f32 %v10974_v27, %v4678_v23  ;;  %v10983_v30 = vld [vmem:[#allocation156_spill] sm:$0xff] }
 0x6aa   : > { %v4960_v43 = vsub.f32 %v10975_v14, %v4327_v31  ;;  %v4962_v18 = vsub.f32 %v10976_v22, %v4680_v34 }
 0x6ab   : > { %5215 = vst [vmem:[%s9931_s30 + $0x4e0] sm:$0xff] %v4959_v56  ;;  %v5467_v62 = vmin.f32 %v5463_v12, %v4959_v56  ;;  %v5731_v63 = vmax.f32 %v5727_v19, %v4959_v56  ;;  %5217 = vst [vmem:[%s9931_s30 + $0x4f0] sm:$0xff] %v4961_v3  ;;  %v5469_v49 = vmin.f32 %v5465_v17, %v4961_v3  ;;  %v10984_v56 = vld [vmem:[#allocation157_spill] sm:$0xff] }
 0x6ac   : > { %v5733_v51 = vmax.f32 %v5729_v0, %v4961_v3  ;;  %5216 = vst [vmem:[%s9931_s30 + $0x4e8] sm:$0xff] %v4960_v43  ;;  %5218 = vst [vmem:[%s9931_s30 + $0x4f8] sm:$0xff] %v4962_v18  ;;  %v5468_v39 = vmin.f32 %v5464_v60, %v4960_v43  ;;  %v5732_v15 = vmax.f32 %v5728_v10, %v4960_v43  ;;  %v4331_v48 = vpop.f32.mrb[88].mxu0  ;;  %v4684_v9 = vpop.f32.mrb[28].mxu1  ;;  %v10985_v43 = vld [vmem:[#allocation158_spill] sm:$0xff] }
 0x6ad   : > { %v5470_v44 = vmin.f32 %v5466_v53, %v4962_v18  ;;  %v5734_v54 = vmax.f32 %v5730_v13, %v4962_v18  ;;  %v4963_v1 = vsub.f32 %v9662_v24, %v4331_v48  ;;  %v4965_v50 = vsub.f32 %v10977_v16, %v4684_v9  ;;  %v4333_v57 = vpop.f32.mrb[89].mxu0  ;;  %v4686_v41 = vpop.f32.mrb[29].mxu1  ;;  %v10986_v18 = vld [vmem:[#allocation159_spill] sm:$0xff] }
 0x6ae   : > { %v4964_v2 = vsub.f32 %v10978_v21, %v4333_v57  ;;  %v4966_v25 = vsub.f32 %v10979_v36, %v4686_v41  ;;  %v4335_v32 = vpop.f32.mrb[90].mxu0  ;;  %v4688_v52 = vpop.f32.mrb[30].mxu1  ;;  %v10988_v41 = vld [vmem:[#allocation161_spill] sm:$0xff] }
 0x6af   : > { %5219 = vst [vmem:[%s9931_s30 + $0x500] sm:$0xff] %v4963_v1  ;;  %v5471_v4 = vmin.f32 %v5467_v62, %v4963_v1  ;;  %v5735_v37 = vmax.f32 %v5731_v63, %v4963_v1  ;;  %5221 = vst [vmem:[%s9931_s30 + $0x510] sm:$0xff] %v4965_v50  ;;  %v5473_v5 = vmin.f32 %v5469_v49, %v4965_v50  ;;  %v4337_v24 = vpop.f32.mrb[91].mxu0  ;;  %v4690_v29 = vpop.f32.mrb[31].mxu1 }
 0x6b0   : > { %v5737_v20 = vmax.f32 %v5733_v51, %v4965_v50  ;;  %5220 = vst [vmem:[%s9931_s30 + $0x508] sm:$0xff] %v4964_v2  ;;  %v5472_v59 = vmin.f32 %v5468_v39, %v4964_v2  ;;  %v5736_v8 = vmax.f32 %v5732_v15, %v4964_v2  ;;  %5222 = vst [vmem:[%s9931_s30 + $0x518] sm:$0xff] %v4966_v25  ;;  %v10987_v50 = vld [vmem:[#allocation160_spill] sm:$0xff]  ;;  %v10989_v2 = vld [vmem:[#allocation162_spill] sm:$0xff] }
 0x6b1   : > { %v5474_v7 = vmin.f32 %v5470_v44, %v4966_v25  ;;  %v5738_v58 = vmax.f32 %v5734_v54, %v4966_v25  ;;  %v4967_v28 = vsub.f32 %v10980_v11, %v4335_v32  ;;  %v4969_v61 = vsub.f32 %v10981_v33, %v4688_v52  ;;  %v10990_v25 = vld [vmem:[#allocation163_spill] sm:$0xff]  ;;  %v10991_v11 = vld [vmem:[#allocation164_spill] sm:$0xff] }
 0x6b2   : > { %v4968_v6 = vsub.f32 %v10982_v42, %v4337_v24  ;;  %v4970_v23 = vsub.f32 %v10983_v30, %v4690_v29  ;;  %v10992_v42 = vld [vmem:[#allocation165_spill] sm:$0xff]  ;;  %v10993_v30 = vld [vmem:[#allocation166_spill] sm:$0xff] }
 0x6b3   : > { %5223 = vst [vmem:[%s9931_s30 + $0x520] sm:$0xff] %v4967_v28  ;;  %v5475_v12 = vmin.f32 %v5471_v4, %v4967_v28  ;;  %v5739_v19 = vmax.f32 %v5735_v37, %v4967_v28  ;;  %5225 = vst [vmem:[%s9931_s30 + $0x530] sm:$0xff] %v4969_v61  ;;  %v5477_v17 = vmin.f32 %v5473_v5, %v4969_v61 }
 0x6b4   : > { %v5741_v0 = vmax.f32 %v5737_v20, %v4969_v61  ;;  %5224 = vst [vmem:[%s9931_s30 + $0x528] sm:$0xff] %v4968_v6  ;;  %5226 = vst [vmem:[%s9931_s30 + $0x538] sm:$0xff] %v4970_v23  ;;  %v5476_v31 = vmin.f32 %v5472_v59, %v4968_v6  ;;  %v5740_v34 = vmax.f32 %v5736_v8, %v4968_v6  ;;  %v4341_v53 = vpop.f32.mrb[92].mxu0  ;;  %v4694_v13 = vpop.f32.mrb[32].mxu1 }
 0x6b5   : > { %v5478_v60 = vmin.f32 %v5474_v7, %v4970_v23  ;;  %v5742_v10 = vmax.f32 %v5738_v58, %v4970_v23  ;;  %v4971_v38 = vsub.f32 %v9684_v45, %v4341_v53  ;;  %v4973_v27 = vsub.f32 %v10984_v56, %v4694_v13  ;;  %v4343_v3 = vpop.f32.mrb[93].mxu0  ;;  %v4696_v14 = vpop.f32.mrb[33].mxu1  ;;  %v10994_v56 = vld [vmem:[#allocation167_spill] sm:$0xff] }
 0x6b6   : > { %v4972_v22 = vsub.f32 %v10985_v43, %v4343_v3  ;;  %v4974_v62 = vsub.f32 %v10986_v18, %v4696_v14  ;;  %v4345_v63 = vpop.f32.mrb[94].mxu0  ;;  %v4698_v49 = vpop.f32.mrb[34].mxu1  ;;  %v10995_v3 = vld [vmem:[#allocation168_spill] sm:$0xff]  ;;  %v10996_v43 = vld [vmem:[#allocation169_spill] sm:$0xff]  ;;  %v10997_v18 = vld [vmem:[#allocation170_spill] sm:$0xff] }
 0x6b7   : > { %5227 = vst [vmem:[%s9931_s30 + $0x540] sm:$0xff] %v4971_v38  ;;  %v5479_v51 = vmin.f32 %v5475_v12, %v4971_v38  ;;  %v5743_v39 = vmax.f32 %v5739_v19, %v4971_v38  ;;  %5229 = vst [vmem:[%s9931_s30 + $0x550] sm:$0xff] %v4973_v27  ;;  %v5481_v15 = vmin.f32 %v5477_v17, %v4973_v27  ;;  %v4347_v45 = vpop.f32.mrb[95].mxu0  ;;  %v4700_v54 = vpop.f32.mrb[35].mxu1 }
 0x6b8   : > { %v5745_v44 = vmax.f32 %v5741_v0, %v4973_v27  ;;  %5228 = vst [vmem:[%s9931_s30 + $0x548] sm:$0xff] %v4972_v22  ;;  %v5480_v48 = vmin.f32 %v5476_v31, %v4972_v22  ;;  %v5744_v9 = vmax.f32 %v5740_v34, %v4972_v22  ;;  %5230 = vst [vmem:[%s9931_s30 + $0x558] sm:$0xff] %v4974_v62 }
 0x6b9   : > { %v5482_v1 = vmin.f32 %v5478_v60, %v4974_v62  ;;  %v5746_v16 = vmax.f32 %v5742_v10, %v4974_v62  ;;  %v4975_v57 = vsub.f32 %v10987_v50, %v4345_v63  ;;  %v4977_v21 = vsub.f32 %v10988_v41, %v4698_v49 }
 0x6ba   : > { %v4976_v36 = vsub.f32 %v10989_v2, %v4347_v45  ;;  %v4978_v32 = vsub.f32 %v10990_v25, %v4700_v54 }
 0x6bb   : > { %5231 = vst [vmem:[%s9931_s30 + $0x560] sm:$0xff] %v4975_v57  ;;  %v5483_v52 = vmin.f32 %v5479_v51, %v4975_v57  ;;  %v5747_v4 = vmax.f32 %v5743_v39, %v4975_v57  ;;  %5233 = vst [vmem:[%s9931_s30 + $0x570] sm:$0xff] %v4977_v21  ;;  %v5485_v37 = vmin.f32 %v5481_v15, %v4977_v21 }
 0x6bc   : > { %v5749_v5 = vmax.f32 %v5745_v44, %v4977_v21  ;;  %5232 = vst [vmem:[%s9931_s30 + $0x568] sm:$0xff] %v4976_v36  ;;  %5234 = vst [vmem:[%s9931_s30 + $0x578] sm:$0xff] %v4978_v32  ;;  %v5484_v20 = vmin.f32 %v5480_v48, %v4976_v36  ;;  %v5748_v24 = vmax.f32 %v5744_v9, %v4976_v36  ;;  %v4351_v8 = vpop.f32.mrb[96].mxu0  ;;  %v4704_v7 = vpop.f32.mrb[36].mxu1  ;;  %v10999_v21 = vld [vmem:[#allocation172_spill] sm:$0xff]  ;;  %v11000_v36 = vld [vmem:[#allocation173_spill] sm:$0xff] }
 0x6bd   : > { %v5486_v29 = vmin.f32 %v5482_v1, %v4978_v32  ;;  %v5750_v59 = vmax.f32 %v5746_v16, %v4978_v32  ;;  %v4979_v58 = vsub.f32 %v9706_v26, %v4351_v8  ;;  %v4981_v28 = vsub.f32 %v10991_v11, %v4704_v7  ;;  %v4353_v33 = vpop.f32.mrb[97].mxu0  ;;  %v4706_v61 = vpop.f32.mrb[37].mxu1  ;;  %v10998_v16 = vld [vmem:[#allocation171_spill] sm:$0xff] }
 0x6be   : > { %v4980_v6 = vsub.f32 %v10992_v42, %v4353_v33  ;;  %v4982_v23 = vsub.f32 %v10993_v30, %v4706_v61  ;;  %v4355_v12 = vpop.f32.mrb[98].mxu0  ;;  %v4708_v19 = vpop.f32.mrb[38].mxu1  ;;  %v11003_v61 = vld [vmem:[#allocation176_spill] sm:$0xff] }
 0x6bf   : > { %5235 = vst [vmem:[%s9931_s30 + $0x580] sm:$0xff] %v4979_v58  ;;  %v5487_v17 = vmin.f32 %v5483_v52, %v4979_v58  ;;  %v5751_v0 = vmax.f32 %v5747_v4, %v4979_v58  ;;  %5237 = vst [vmem:[%s9931_s30 + $0x590] sm:$0xff] %v4981_v28  ;;  %v5489_v31 = vmin.f32 %v5485_v37, %v4981_v28  ;;  %v4357_v26 = vpop.f32.mrb[99].mxu0  ;;  %v4710_v60 = vpop.f32.mrb[39].mxu1  ;;  %v11001_v58 = vld [vmem:[#allocation174_spill] sm:$0xff] }
 0x6c0   : > { %v5753_v34 = vmax.f32 %v5749_v5, %v4981_v28  ;;  %5236 = vst [vmem:[%s9931_s30 + $0x588] sm:$0xff] %v4980_v6  ;;  %v5488_v10 = vmin.f32 %v5484_v20, %v4980_v6  ;;  %v5752_v53 = vmax.f32 %v5748_v24, %v4980_v6  ;;  %5238 = vst [vmem:[%s9931_s30 + $0x598] sm:$0xff] %v4982_v23  ;;  %v11002_v28 = vld [vmem:[#allocation175_spill] sm:$0xff]  ;;  %v11004_v6 = vld [vmem:[#allocation177_spill] sm:$0xff] }
 0x6c1   : > { %v5490_v13 = vmin.f32 %v5486_v29, %v4982_v23  ;;  %v5754_v38 = vmax.f32 %v5750_v59, %v4982_v23  ;;  %v4983_v27 = vsub.f32 %v10994_v56, %v4355_v12  ;;  %v4985_v14 = vsub.f32 %v10995_v3, %v4708_v19  ;;  %v11006_v3 = vld [vmem:[#allocation179_spill] sm:$0xff] }
 0x6c2   : > { %v4984_v22 = vsub.f32 %v10996_v43, %v4357_v26  ;;  %v4986_v62 = vsub.f32 %v10997_v18, %v4710_v60  ;;  %v11007_v43 = vld [vmem:[#allocation180_spill] sm:$0xff] }
 0x6c3   : > { %5239 = vst [vmem:[%s9931_s30 + $0x5a0] sm:$0xff] %v4983_v27  ;;  %v5491_v63 = vmin.f32 %v5487_v17, %v4983_v27  ;;  %v5755_v49 = vmax.f32 %v5751_v0, %v4983_v27  ;;  %5241 = vst [vmem:[%s9931_s30 + $0x5b0] sm:$0xff] %v4985_v14  ;;  %v5493_v51 = vmin.f32 %v5489_v31, %v4985_v14 }
 0x6c4   : > { %v5757_v39 = vmax.f32 %v5753_v34, %v4985_v14  ;;  %5240 = vst [vmem:[%s9931_s30 + $0x5a8] sm:$0xff] %v4984_v22  ;;  %5242 = vst [vmem:[%s9931_s30 + $0x5b8] sm:$0xff] %v4986_v62  ;;  %v5492_v15 = vmin.f32 %v5488_v10, %v4984_v22  ;;  %v5756_v44 = vmax.f32 %v5752_v53, %v4984_v22  ;;  %v4361_v48 = vpop.f32.mrb[100].mxu0  ;;  %v4714_v9 = vpop.f32.mrb[40].mxu1 }
 0x6c5   : > { %v5494_v45 = vmin.f32 %v5490_v13, %v4986_v62  ;;  %v5758_v54 = vmax.f32 %v5754_v38, %v4986_v62  ;;  %v4987_v1 = vsub.f32 %v9728_v46, %v4361_v48  ;;  %v4989_v50 = vsub.f32 %v10998_v16, %v4714_v9  ;;  %v4363_v57 = vpop.f32.mrb[101].mxu0  ;;  %v4716_v41 = vpop.f32.mrb[41].mxu1  ;;  %v11005_v13 = vld [vmem:[#allocation178_spill] sm:$0xff]  ;;  %v11008_v9 = vld [vmem:[#allocation181_spill] sm:$0xff] }
 0x6c6   : > { %v4988_v2 = vsub.f32 %v10999_v21, %v4363_v57  ;;  %v4990_v25 = vsub.f32 %v11000_v36, %v4716_v41  ;;  %v4365_v32 = vpop.f32.mrb[102].mxu0  ;;  %v4718_v52 = vpop.f32.mrb[42].mxu1  ;;  %v11009_v16 = vld [vmem:[#allocation182_spill] sm:$0xff]  ;;  %v11010_v57 = vld [vmem:[#allocation183_spill] sm:$0xff]  ;;  %v11011_v21 = vld [vmem:[#allocation184_spill] sm:$0xff] }
 0x6c7   : > { %5243 = vst [vmem:[%s9931_s30 + $0x5c0] sm:$0xff] %v4987_v1  ;;  %v5495_v4 = vmin.f32 %v5491_v63, %v4987_v1  ;;  %v5759_v37 = vmax.f32 %v5755_v49, %v4987_v1  ;;  %5245 = vst [vmem:[%s9931_s30 + $0x5d0] sm:$0xff] %v4989_v50  ;;  %v5497_v5 = vmin.f32 %v5493_v51, %v4989_v50  ;;  %v4367_v46 = vpop.f32.mrb[103].mxu0  ;;  %v4720_v24 = vpop.f32.mrb[43].mxu1 }
 0x6c8   : > { %v5761_v20 = vmax.f32 %v5757_v39, %v4989_v50  ;;  %5244 = vst [vmem:[%s9931_s30 + $0x5c8] sm:$0xff] %v4988_v2  ;;  %v5496_v29 = vmin.f32 %v5492_v15, %v4988_v2  ;;  %v5760_v59 = vmax.f32 %v5756_v44, %v4988_v2  ;;  %5246 = vst [vmem:[%s9931_s30 + $0x5d8] sm:$0xff] %v4990_v25 }
 0x6c9   : > { %v5498_v8 = vmin.f32 %v5494_v45, %v4990_v25  ;;  %v5762_v7 = vmax.f32 %v5758_v54, %v4990_v25  ;;  %v4991_v11 = vsub.f32 %v11001_v58, %v4365_v32  ;;  %v4993_v33 = vsub.f32 %v11002_v28, %v4718_v52 }
 0x6ca   : > { %v4992_v42 = vsub.f32 %v11003_v61, %v4367_v46  ;;  %v4994_v30 = vsub.f32 %v11004_v6, %v4720_v24 }
 0x6cb   : > { %5247 = vst [vmem:[%s9931_s30 + $0x5e0] sm:$0xff] %v4991_v11  ;;  %v5499_v23 = vmin.f32 %v5495_v4, %v4991_v11  ;;  %v5763_v12 = vmax.f32 %v5759_v37, %v4991_v11  ;;  %5249 = vst [vmem:[%s9931_s30 + $0x5f0] sm:$0xff] %v4993_v33  ;;  %v5501_v19 = vmin.f32 %v5497_v5, %v4993_v33  ;;  %v11013_v11 = vld [vmem:[#allocation186_spill] sm:$0xff] }
 0x6cc   : > { %v5765_v17 = vmax.f32 %v5761_v20, %v4993_v33  ;;  %5248 = vst [vmem:[%s9931_s30 + $0x5e8] sm:$0xff] %v4992_v42  ;;  %5250 = vst [vmem:[%s9931_s30 + $0x5f8] sm:$0xff] %v4994_v30  ;;  %v5500_v0 = vmin.f32 %v5496_v29, %v4992_v42  ;;  %v5764_v31 = vmax.f32 %v5760_v59, %v4992_v42  ;;  %v4371_v60 = vpop.f32.mrb[104].mxu0  ;;  %v4724_v10 = vpop.f32.mrb[44].mxu1  ;;  %v11012_v59 = vld [vmem:[#allocation185_spill] sm:$0xff]  ;;  %v11014_v33 = vld [vmem:[#allocation187_spill] sm:$0xff] }
 0x6cd   : > { %v5502_v34 = vmin.f32 %v5498_v8, %v4994_v30  ;;  %v5766_v26 = vmax.f32 %v5762_v7, %v4994_v30  ;;  %v4995_v53 = vsub.f32 %v9750_v47, %v4371_v60  ;;  %v4997_v38 = vsub.f32 %v11005_v13, %v4724_v10  ;;  %v4373_v56 = vpop.f32.mrb[105].mxu0  ;;  %v4726_v27 = vpop.f32.mrb[45].mxu1  ;;  %v11015_v60 = vld [vmem:[#allocation188_spill] sm:$0xff] }
 0x6ce   : > { %v4996_v14 = vsub.f32 %v11006_v3, %v4373_v56  ;;  %v4998_v22 = vsub.f32 %v11007_v43, %v4726_v27  ;;  %v4375_v18 = vpop.f32.mrb[106].mxu0  ;;  %v4728_v62 = vpop.f32.mrb[46].mxu1  ;;  %v11018_v27 = vld [vmem:[#allocation191_spill] sm:$0xff] }
 0x6cf   : > { %5251 = vst [vmem:[%s9931_s30 + $0x600] sm:$0xff] %v4995_v53  ;;  %v5503_v63 = vmin.f32 %v5499_v23, %v4995_v53  ;;  %v5767_v49 = vmax.f32 %v5763_v12, %v4995_v53  ;;  %5253 = vst [vmem:[%s9931_s30 + $0x610] sm:$0xff] %v4997_v38  ;;  %v5505_v51 = vmin.f32 %v5501_v19, %v4997_v38  ;;  %v4377_v47 = vpop.f32.mrb[107].mxu0  ;;  %v4730_v15 = vpop.f32.mrb[47].mxu1  ;;  %v11016_v53 = vld [vmem:[#allocation189_spill] sm:$0xff] }
 0x6d0   : > { %v5769_v39 = vmax.f32 %v5765_v17, %v4997_v38  ;;  %5252 = vst [vmem:[%s9931_s30 + $0x608] sm:$0xff] %v4996_v14  ;;  %v5504_v44 = vmin.f32 %v5500_v0, %v4996_v14  ;;  %v5768_v45 = vmax.f32 %v5764_v31, %v4996_v14  ;;  %5254 = vst [vmem:[%s9931_s30 + $0x618] sm:$0xff] %v4998_v22  ;;  %v11017_v38 = vld [vmem:[#allocation190_spill] sm:$0xff] }
 0x6d1   : > { %v5506_v54 = vmin.f32 %v5502_v34, %v4998_v22  ;;  %v5770_v48 = vmax.f32 %v5766_v26, %v4998_v22  ;;  %v4999_v1 = vsub.f32 %v11008_v9, %v4375_v18  ;;  %v5001_v50 = vsub.f32 %v11009_v16, %v4728_v62  ;;  %v11020_v9 = vld [vmem:[#allocation193_spill] sm:$0xff]  ;;  %v11021_v16 = vld [vmem:[#allocation194_spill] sm:$0xff] }
 0x6d2   : > { %v5000_v41 = vsub.f32 %v11010_v57, %v4377_v47  ;;  %v5002_v2 = vsub.f32 %v11011_v21, %v4730_v15 }
 0x6d3   : > { %5255 = vst [vmem:[%s9931_s30 + $0x620] sm:$0xff] %v4999_v1  ;;  %v5507_v36 = vmin.f32 %v5503_v63, %v4999_v1  ;;  %v5771_v25 = vmax.f32 %v5767_v49, %v4999_v1  ;;  %5257 = vst [vmem:[%s9931_s30 + $0x630] sm:$0xff] %v5001_v50  ;;  %v5509_v32 = vmin.f32 %v5505_v51, %v5001_v50 }
 0x6d4   : > { %v5773_v52 = vmax.f32 %v5769_v39, %v5001_v50  ;;  %5256 = vst [vmem:[%s9931_s30 + $0x628] sm:$0xff] %v5000_v41  ;;  %5258 = vst [vmem:[%s9931_s30 + $0x638] sm:$0xff] %v5002_v2  ;;  %v5508_v4 = vmin.f32 %v5504_v44, %v5000_v41  ;;  %v5772_v37 = vmax.f32 %v5768_v45, %v5000_v41  ;;  %v4381_v46 = vpop.f32.mrb[108].mxu0  ;;  %v4734_v24 = vpop.f32.mrb[48].mxu1  ;;  %v11019_v44 = vld [vmem:[#allocation192_spill] sm:$0xff] }
 0x6d5   : > { %v5510_v5 = vmin.f32 %v5506_v54, %v5002_v2  ;;  %v5774_v20 = vmax.f32 %v5770_v48, %v5002_v2  ;;  %v5003_v29 = vsub.f32 %v9772_v40, %v4381_v46  ;;  %v5005_v8 = vsub.f32 %v11012_v59, %v4734_v24  ;;  %v4383_v7 = vpop.f32.mrb[109].mxu0  ;;  %v4736_v58 = vpop.f32.mrb[49].mxu1  ;;  %v11023_v24 = vld [vmem:[#allocation196_spill] sm:$0xff]  ;;  %v11024_v59 = vld [vmem:[#allocation197_spill] sm:$0xff] }
 0x6d6   : > { %v5004_v28 = vsub.f32 %v11013_v11, %v4383_v7  ;;  %v5006_v61 = vsub.f32 %v11014_v33, %v4736_v58  ;;  %v4385_v42 = vpop.f32.mrb[110].mxu0  ;;  %v4738_v6 = vpop.f32.mrb[50].mxu1  ;;  %v11025_v7 = vld [vmem:[#allocation198_spill] sm:$0xff] }
 0x6d7   : > { %5259 = vst [vmem:[%s9931_s30 + $0x640] sm:$0xff] %v5003_v29  ;;  %v5511_v30 = vmin.f32 %v5507_v36, %v5003_v29  ;;  %v5775_v23 = vmax.f32 %v5771_v25, %v5003_v29  ;;  %5261 = vst [vmem:[%s9931_s30 + $0x650] sm:$0xff] %v5005_v8  ;;  %v5513_v12 = vmin.f32 %v5509_v32, %v5005_v8  ;;  %v4387_v40 = vpop.f32.mrb[111].mxu0  ;;  %v4740_v17 = vpop.f32.mrb[51].mxu1 }
 0x6d8   : > { %v5777_v19 = vmax.f32 %v5773_v52, %v5005_v8  ;;  %5260 = vst [vmem:[%s9931_s30 + $0x648] sm:$0xff] %v5004_v28  ;;  %v5512_v0 = vmin.f32 %v5508_v4, %v5004_v28  ;;  %v5776_v31 = vmax.f32 %v5772_v37, %v5004_v28  ;;  %5262 = vst [vmem:[%s9931_s30 + $0x658] sm:$0xff] %v5006_v61 }
 0x6d9   : > { %v5514_v34 = vmin.f32 %v5510_v5, %v5006_v61  ;;  %v5778_v26 = vmax.f32 %v5774_v20, %v5006_v61  ;;  %v5007_v10 = vsub.f32 %v11015_v60, %v4385_v42  ;;  %v5009_v13 = vsub.f32 %v11016_v53, %v4738_v6  ;;  %v11022_v20 = vld [vmem:[#allocation195_spill] sm:$0xff] }
 0x6da   : > { %v5008_v56 = vsub.f32 %v11017_v38, %v4387_v40  ;;  %v5010_v3 = vsub.f32 %v11018_v27, %v4740_v17  ;;  %v11028_v38 = vld [vmem:[#allocation201_spill] sm:$0xff]  ;;  %v11029_v27 = vld [vmem:[#allocation202_spill] sm:$0xff] }
 0x6db   : > { %5263 = vst [vmem:[%s9931_s30 + $0x660] sm:$0xff] %v5007_v10  ;;  %v5515_v14 = vmin.f32 %v5511_v30, %v5007_v10  ;;  %v5779_v43 = vmax.f32 %v5775_v23, %v5007_v10  ;;  %5265 = vst [vmem:[%s9931_s30 + $0x670] sm:$0xff] %v5009_v13  ;;  %v5517_v22 = vmin.f32 %v5513_v12, %v5009_v13 }
 0x6dc   : > { %v5781_v18 = vmax.f32 %v5777_v19, %v5009_v13  ;;  %5264 = vst [vmem:[%s9931_s30 + $0x668] sm:$0xff] %v5008_v56  ;;  %5266 = vst [vmem:[%s9931_s30 + $0x678] sm:$0xff] %v5010_v3  ;;  %v5516_v62 = vmin.f32 %v5512_v0, %v5008_v56  ;;  %v5780_v63 = vmax.f32 %v5776_v31, %v5008_v56  ;;  %v4391_v39 = vpop.f32.mrb[112].mxu0  ;;  %v4744_v47 = vpop.f32.mrb[52].mxu1  ;;  %v11026_v0 = vld [vmem:[#allocation199_spill] sm:$0xff] }
 0x6dd   : > { %v5518_v49 = vmin.f32 %v5514_v34, %v5010_v3  ;;  %v5782_v51 = vmax.f32 %v5778_v26, %v5010_v3  ;;  %v5011_v15 = vsub.f32 %v9794_v35, %v4391_v39  ;;  %v5013_v45 = vsub.f32 %v11019_v44, %v4744_v47  ;;  %v4393_v54 = vpop.f32.mrb[113].mxu0  ;;  %v4746_v48 = vpop.f32.mrb[53].mxu1  ;;  %v11027_v34 = vld [vmem:[#allocation200_spill] sm:$0xff] }
 0x6de   : > { %v5012_v1 = vsub.f32 %v11020_v9, %v4393_v54  ;;  %v5014_v50 = vsub.f32 %v11021_v16, %v4746_v48  ;;  %v4395_v57 = vpop.f32.mrb[114].mxu0  ;;  %v4748_v41 = vpop.f32.mrb[54].mxu1  ;;  %v11032_v48 = vld [vmem:[#allocation205_spill] sm:$0xff] }
 0x6df   : > { %5267 = vst [vmem:[%s9931_s30 + $0x680] sm:$0xff] %v5011_v15  ;;  %v5519_v21 = vmin.f32 %v5515_v14, %v5011_v15  ;;  %v5783_v2 = vmax.f32 %v5779_v43, %v5011_v15  ;;  %5269 = vst [vmem:[%s9931_s30 + $0x690] sm:$0xff] %v5013_v45  ;;  %v5521_v36 = vmin.f32 %v5517_v22, %v5013_v45  ;;  %v4397_v35 = vpop.f32.mrb[115].mxu0  ;;  %v4750_v32 = vpop.f32.mrb[55].mxu1  ;;  %v11030_v15 = vld [vmem:[#allocation203_spill] sm:$0xff] }
 0x6e0   : > { %v5785_v25 = vmax.f32 %v5781_v18, %v5013_v45  ;;  %5268 = vst [vmem:[%s9931_s30 + $0x688] sm:$0xff] %v5012_v1  ;;  %v5520_v52 = vmin.f32 %v5516_v62, %v5012_v1  ;;  %v5784_v4 = vmax.f32 %v5780_v63, %v5012_v1  ;;  %5270 = vst [vmem:[%s9931_s30 + $0x698] sm:$0xff] %v5014_v50  ;;  %v11031_v45 = vld [vmem:[#allocation204_spill] sm:$0xff] }
 0x6e1   : > { %v5522_v37 = vmin.f32 %v5518_v49, %v5014_v50  ;;  %v5786_v5 = vmax.f32 %v5782_v51, %v5014_v50  ;;  %v5015_v46 = vsub.f32 %v11022_v20, %v4395_v57  ;;  %v5017_v29 = vsub.f32 %v11023_v24, %v4748_v41 }
 0x6e2   : > { %v5016_v8 = vsub.f32 %v11024_v59, %v4397_v35  ;;  %v5018_v58 = vsub.f32 %v11025_v7, %v4750_v32  ;;  %v11036_v59 = vld [vmem:[#allocation209_spill] sm:$0xff]  ;;  %v11037_v7 = vld [vmem:[#allocation210_spill] sm:$0xff] }
 0x6e3   : > { %5271 = vst [vmem:[%s9931_s30 + $0x6a0] sm:$0xff] %v5015_v46  ;;  %v5523_v11 = vmin.f32 %v5519_v21, %v5015_v46  ;;  %v5787_v28 = vmax.f32 %v5783_v2, %v5015_v46  ;;  %5273 = vst [vmem:[%s9931_s30 + $0x6b0] sm:$0xff] %v5017_v29  ;;  %v5525_v33 = vmin.f32 %v5521_v36, %v5017_v29  ;;  %v11033_v36 = vld [vmem:[#allocation206_spill] sm:$0xff] }
 0x6e4   : > { %v5789_v61 = vmax.f32 %v5785_v25, %v5017_v29  ;;  %5272 = vst [vmem:[%s9931_s30 + $0x6a8] sm:$0xff] %v5016_v8  ;;  %5274 = vst [vmem:[%s9931_s30 + $0x6b8] sm:$0xff] %v5018_v58  ;;  %v5524_v42 = vmin.f32 %v5520_v52, %v5016_v8  ;;  %v5788_v6 = vmax.f32 %v5784_v4, %v5016_v8  ;;  %v4401_v12 = vpop.f32.mrb[116].mxu0  ;;  %v11034_v52 = vld [vmem:[#allocation207_spill] sm:$0xff] }
 0x6e5   : > { %v5526_v30 = vmin.f32 %v5522_v37, %v5018_v58  ;;  %v5790_v23 = vmax.f32 %v5786_v5, %v5018_v58  ;;  %v5019_v19 = vsub.f32 %v9816_v55, %v4401_v12  ;;  %v4754_v40 = vpop.f32.mrb[56].mxu1  ;;  %v4403_v17 = vpop.f32.mrb[117].mxu0  ;;  %v11035_v37 = vld [vmem:[#allocation208_spill] sm:$0xff] }
 0x6e6   : > { %v5021_v31 = vsub.f32 %v11026_v0, %v4754_v40  ;;  %v5020_v26 = vsub.f32 %v11027_v34, %v4403_v17  ;;  %v4756_v60 = vpop.f32.mrb[57].mxu1  ;;  %v4405_v10 = vpop.f32.mrb[118].mxu0  ;;  %v11038_v17 = vld [vmem:[#allocation211_spill] sm:$0xff] }
 0x6e7   : > { %5275 = vst [vmem:[%s9931_s30 + $0x6c0] sm:$0xff] %v5019_v19  ;;  %v5527_v53 = vmin.f32 %v5523_v11, %v5019_v19  ;;  %v5791_v13 = vmax.f32 %v5787_v28, %v5019_v19  ;;  %v5022_v56 = vsub.f32 %v11028_v38, %v4756_v60  ;;  %v5023_v3 = vsub.f32 %v11029_v27, %v4405_v10  ;;  %v4758_v14 = vpop.f32.mrb[58].mxu1  ;;  %v4407_v55 = vpop.f32.mrb[119].mxu0 }
 0x6e8   : > { %5277 = vst [vmem:[%s9931_s30 + $0x6d0] sm:$0xff] %v5021_v31  ;;  %v5529_v43 = vmin.f32 %v5525_v33, %v5021_v31  ;;  %v5793_v22 = vmax.f32 %v5789_v61, %v5021_v31  ;;  %5276 = vst [vmem:[%s9931_s30 + $0x6c8] sm:$0xff] %v5020_v26  ;;  %v5528_v18 = vmin.f32 %v5524_v42, %v5020_v26  ;;  %v4760_v63 = vpop.f32.mrb[59].mxu1  ;;  %v11039_v31 = vld [vmem:[#allocation212_spill] sm:$0xff] }
 0x6e9   : > { %v5792_v62 = vmax.f32 %v5788_v6, %v5020_v26  ;;  %5278 = vst [vmem:[%s9931_s30 + $0x6d8] sm:$0xff] %v5022_v56  ;;  %v5530_v49 = vmin.f32 %v5526_v30, %v5022_v56  ;;  %v5794_v51 = vmax.f32 %v5790_v23, %v5022_v56  ;;  %5279 = vst [vmem:[%s9931_s30 + $0x6e0] sm:$0xff] %v5023_v3  ;;  %v11040_v26 = vld [vmem:[#allocation213_spill] sm:$0xff] }
 0x6ea   : > { %v5531_v39 = vmin.f32 %v5527_v53, %v5023_v3  ;;  %v5795_v47 = vmax.f32 %v5791_v13, %v5023_v3  ;;  %v5025_v44 = vsub.f32 %v11030_v15, %v4758_v14  ;;  %v5024_v54 = vsub.f32 %v11031_v45, %v4407_v55  ;;  %v11041_v14 = vld [vmem:[#allocation214_spill] sm:$0xff] }
 0x6eb   : > { %v5026_v9 = vsub.f32 %v11032_v48, %v4760_v63  ;;  %v11043_v63 = vld [vmem:[#allocation216_spill] sm:$0xff] }
 0x6ec   : > { %5281 = vst [vmem:[%s9931_s30 + $0x6f0] sm:$0xff] %v5025_v44  ;;  %v5533_v1 = vmin.f32 %v5529_v43, %v5025_v44  ;;  %v5797_v16 = vmax.f32 %v5793_v22, %v5025_v44  ;;  %5280 = vst [vmem:[%s9931_s30 + $0x6e8] sm:$0xff] %v5024_v54  ;;  %v5532_v50 = vmin.f32 %v5528_v18, %v5024_v54  ;;  %v4411_v41 = vpop.f32.mrb[120].mxu0  ;;  %v11042_v18 = vld [vmem:[#allocation215_spill] sm:$0xff]  ;;  %v11044_v44 = vld [vmem:[#allocation217_spill] sm:$0xff] }
 0x6ed   : > { %v5796_v57 = vmax.f32 %v5792_v62, %v5024_v54  ;;  %5282 = vst [vmem:[%s9931_s30 + $0x6f8] sm:$0xff] %v5026_v9  ;;  %v5534_v21 = vmin.f32 %v5530_v49, %v5026_v9  ;;  %v5798_v2 = vmax.f32 %v5794_v51, %v5026_v9  ;;  %v5027_v25 = vsub.f32 %v11033_v36, %v4411_v41  ;;  %v4764_v35 = vpop.f32.mrb[60].mxu1  ;;  %v4413_v32 = vpop.f32.mrb[121].mxu0  ;;  %v11045_v54 = vld [vmem:[#allocation218_spill] sm:$0xff] }
 0x6ee   : > { %v5029_v4 = vsub.f32 %v11034_v52, %v4764_v35  ;;  %v5028_v5 = vsub.f32 %v11035_v37, %v4413_v32  ;;  %v4766_v20 = vpop.f32.mrb[61].mxu1  ;;  %v4415_v46 = vpop.f32.mrb[122].mxu0  ;;  %v11046_v32 = vld [vmem:[#allocation219_spill] sm:$0xff] }
 0x6ef   : > { %5283 = vst [vmem:[%s9931_s30 + $0x700] sm:$0xff] %v5027_v25  ;;  %v5535_v24 = vmin.f32 %v5531_v39, %v5027_v25  ;;  %v5799_v29 = vmax.f32 %v5795_v47, %v5027_v25  ;;  %v5030_v8 = vsub.f32 %v11036_v59, %v4766_v20  ;;  %v5031_v58 = vsub.f32 %v11037_v7, %v4415_v46  ;;  %v4768_v11 = vpop.f32.mrb[62].mxu1  ;;  %v4417_v28 = vpop.f32.mrb[123].mxu0 }
 0x6f0   : > { %5285 = vst [vmem:[%s9931_s30 + $0x710] sm:$0xff] %v5029_v4  ;;  %v5537_v33 = vmin.f32 %v5533_v1, %v5029_v4  ;;  %v5801_v61 = vmax.f32 %v5797_v16, %v5029_v4  ;;  %5284 = vst [vmem:[%s9931_s30 + $0x708] sm:$0xff] %v5028_v5  ;;  %v5536_v42 = vmin.f32 %v5532_v50, %v5028_v5  ;;  %v4770_v30 = vpop.f32.mrb[63].mxu1  ;;  %v11047_v4 = vld [vmem:[#allocation220_spill] sm:$0xff] }
 0x6f1   : > { %v5800_v6 = vmax.f32 %v5796_v57, %v5028_v5  ;;  %5286 = vst [vmem:[%s9931_s30 + $0x718] sm:$0xff] %v5030_v8  ;;  %v5538_v23 = vmin.f32 %v5534_v21, %v5030_v8  ;;  %v5802_v12 = vmax.f32 %v5798_v2, %v5030_v8  ;;  %5287 = vst [vmem:[%s9931_s30 + $0x720] sm:$0xff] %v5031_v58  ;;  %v11048_v5 = vld [vmem:[#allocation221_spill] sm:$0xff] }
 0x6f2   : > { %v5539_v19 = vmin.f32 %v5535_v24, %v5031_v58  ;;  %v5803_v40 = vmax.f32 %v5799_v29, %v5031_v58  ;;  %v5033_v0 = vsub.f32 %v11038_v17, %v4768_v11  ;;  %v5032_v34 = vsub.f32 %v11039_v31, %v4417_v28  ;;  %v11049_v11 = vld [vmem:[#allocation222_spill] sm:$0xff] }
 0x6f3   : > { %v5034_v60 = vsub.f32 %v11040_v26, %v4770_v30  ;;  %v11051_v30 = vld [vmem:[#allocation224_spill] sm:$0xff] }
 0x6f4   : > { %5289 = vst [vmem:[%s9931_s30 + $0x730] sm:$0xff] %v5033_v0  ;;  %v5541_v10 = vmin.f32 %v5537_v33, %v5033_v0  ;;  %v5805_v53 = vmax.f32 %v5801_v61, %v5033_v0  ;;  %5288 = vst [vmem:[%s9931_s30 + $0x728] sm:$0xff] %v5032_v34  ;;  %v5540_v13 = vmin.f32 %v5536_v42, %v5032_v34  ;;  %v4421_v56 = vpop.f32.mrb[124].mxu0  ;;  %v11050_v42 = vld [vmem:[#allocation223_spill] sm:$0xff]  ;;  %v11052_v0 = vld [vmem:[#allocation225_spill] sm:$0xff] }
 0x6f5   : > { %v5804_v38 = vmax.f32 %v5800_v6, %v5032_v34  ;;  %5290 = vst [vmem:[%s9931_s30 + $0x738] sm:$0xff] %v5034_v60  ;;  %v5542_v27 = vmin.f32 %v5538_v23, %v5034_v60  ;;  %v5806_v3 = vmax.f32 %v5802_v12, %v5034_v60  ;;  %v5035_v55 = vsub.f32 %v11041_v14, %v4421_v56  ;;  %v4774_v43 = vpop.f32.mrb[64].mxu1  ;;  %v4423_v22 = vpop.f32.mrb[125].mxu0  ;;  %v11053_v34 = vld [vmem:[#allocation226_spill] sm:$0xff] }
 0x6f6   : > { %v5037_v62 = vsub.f32 %v11042_v18, %v4774_v43  ;;  %v5036_v49 = vsub.f32 %v11043_v63, %v4423_v22  ;;  %v4776_v51 = vpop.f32.mrb[65].mxu1  ;;  %v4425_v39 = vpop.f32.mrb[126].mxu0  ;;  %v11054_v22 = vld [vmem:[#allocation227_spill] sm:$0xff] }
 0x6f7   : > { %5291 = vst [vmem:[%s9931_s30 + $0x740] sm:$0xff] %v5035_v55  ;;  %v5543_v47 = vmin.f32 %v5539_v19, %v5035_v55  ;;  %v5807_v15 = vmax.f32 %v5803_v40, %v5035_v55  ;;  %v5038_v45 = vsub.f32 %v11044_v44, %v4776_v51  ;;  %v5039_v48 = vsub.f32 %v11045_v54, %v4425_v39  ;;  %v4778_v9 = vpop.f32.mrb[66].mxu1  ;;  %v4427_v1 = vpop.f32.mrb[127].mxu0 }
 0x6f8   : > { %5293 = vst [vmem:[%s9931_s30 + $0x750] sm:$0xff] %v5037_v62  ;;  %v5545_v16 = vmin.f32 %v5541_v10, %v5037_v62  ;;  %v5809_v50 = vmax.f32 %v5805_v53, %v5037_v62  ;;  %5292 = vst [vmem:[%s9931_s30 + $0x748] sm:$0xff] %v5036_v49  ;;  %v5544_v57 = vmin.f32 %v5540_v13, %v5036_v49  ;;  %v4780_v21 = vpop.f32.mrb[67].mxu1  ;;  %v11055_v62 = vld [vmem:[#allocation228_spill] sm:$0xff] }
 0x6f9   : > { %v5808_v41 = vmax.f32 %v5804_v38, %v5036_v49  ;;  %5294 = vst [vmem:[%s9931_s30 + $0x758] sm:$0xff] %v5038_v45  ;;  %v5546_v2 = vmin.f32 %v5542_v27, %v5038_v45  ;;  %v5810_v36 = vmax.f32 %v5806_v3, %v5038_v45  ;;  %5295 = vst [vmem:[%s9931_s30 + $0x760] sm:$0xff] %v5039_v48  ;;  %v11056_v49 = vld [vmem:[#allocation229_spill] sm:$0xff] }
 0x6fa   : > { %v5547_v25 = vmin.f32 %v5543_v47, %v5039_v48  ;;  %v5811_v35 = vmax.f32 %v5807_v15, %v5039_v48  ;;  %v5041_v52 = vsub.f32 %v11046_v32, %v4778_v9  ;;  %v5040_v37 = vsub.f32 %v11047_v4, %v4427_v1  ;;  %v11057_v9 = vld [vmem:[#allocation230_spill] sm:$0xff] }
 0x6fb   : > { %v5042_v20 = vsub.f32 %v11048_v5, %v4780_v21  ;;  %v11059_v21 = vld [vmem:[#allocation232_spill] sm:$0xff] }
 0x6fc   : > { %5297 = vst [vmem:[%s9931_s30 + $0x770] sm:$0xff] %v5041_v52  ;;  %v5549_v46 = vmin.f32 %v5545_v16, %v5041_v52  ;;  %v5813_v24 = vmax.f32 %v5809_v50, %v5041_v52  ;;  %5296 = vst [vmem:[%s9931_s30 + $0x768] sm:$0xff] %v5040_v37  ;;  %v5548_v29 = vmin.f32 %v5544_v57, %v5040_v37  ;;  %v4431_v8 = vpop.f32.mrb[128].mxu0  ;;  %v11058_v57 = vld [vmem:[#allocation231_spill] sm:$0xff]  ;;  %v11060_v52 = vld [vmem:[#allocation233_spill] sm:$0xff] }
 0x6fd   : > { %v5812_v59 = vmax.f32 %v5808_v41, %v5040_v37  ;;  %5298 = vst [vmem:[%s9931_s30 + $0x778] sm:$0xff] %v5042_v20  ;;  %v5550_v7 = vmin.f32 %v5546_v2, %v5042_v20  ;;  %v5814_v58 = vmax.f32 %v5810_v36, %v5042_v20  ;;  %v5043_v28 = vsub.f32 %v11049_v11, %v4431_v8  ;;  %v4784_v33 = vpop.f32.mrb[68].mxu1  ;;  %v4433_v61 = vpop.f32.mrb[129].mxu0  ;;  %v11061_v37 = vld [vmem:[#allocation234_spill] sm:$0xff] }
 0x6fe   : > { %v5045_v6 = vsub.f32 %v11050_v42, %v4784_v33  ;;  %v5044_v23 = vsub.f32 %v11051_v30, %v4433_v61  ;;  %v4786_v12 = vpop.f32.mrb[69].mxu1  ;;  %v4435_v19 = vpop.f32.mrb[130].mxu0  ;;  %v11062_v33 = vld [vmem:[#allocation235_spill] sm:$0xff]  ;;  %v11063_v42 = vld [vmem:[#allocation236_spill] sm:$0xff]  ;;  %v11064_v30 = vld [vmem:[#allocation237_spill] sm:$0xff] }
 0x6ff   : > { %5299 = vst [vmem:[%s9931_s30 + $0x780] sm:$0xff] %v5043_v28  ;;  %v5551_v40 = vmin.f32 %v5547_v25, %v5043_v28  ;;  %v5815_v17 = vmax.f32 %v5811_v35, %v5043_v28  ;;  %v5046_v31 = vsub.f32 %v11052_v0, %v4786_v12  ;;  %v5047_v26 = vsub.f32 %v11053_v34, %v4435_v19  ;;  %v4788_v60 = vpop.f32.mrb[70].mxu1  ;;  %v4437_v10 = vpop.f32.mrb[131].mxu0 }
 0x700   : > { %5301 = vst [vmem:[%s9931_s30 + $0x790] sm:$0xff] %v5045_v6  ;;  %v5553_v53 = vmin.f32 %v5549_v46, %v5045_v6  ;;  %v5817_v13 = vmax.f32 %v5813_v24, %v5045_v6  ;;  %5300 = vst [vmem:[%s9931_s30 + $0x788] sm:$0xff] %v5044_v23  ;;  %v5552_v38 = vmin.f32 %v5548_v29, %v5044_v23  ;;  %v4790_v27 = vpop.f32.mrb[71].mxu1 }
 0x701   : > { %v5816_v56 = vmax.f32 %v5812_v59, %v5044_v23  ;;  %5302 = vst [vmem:[%s9931_s30 + $0x798] sm:$0xff] %v5046_v31  ;;  %v5554_v3 = vmin.f32 %v5550_v7, %v5046_v31  ;;  %v5818_v14 = vmax.f32 %v5814_v58, %v5046_v31  ;;  %5303 = vst [vmem:[%s9931_s30 + $0x7a0] sm:$0xff] %v5047_v26 }
 0x702   : > { %v5555_v55 = vmin.f32 %v5551_v40, %v5047_v26  ;;  %v5819_v43 = vmax.f32 %v5815_v17, %v5047_v26  ;;  %v5049_v18 = vsub.f32 %v11054_v22, %v4788_v60  ;;  %v5048_v63 = vsub.f32 %v11055_v62, %v4437_v10 }
 0x703   : > { %v5050_v51 = vsub.f32 %v11056_v49, %v4790_v27 }
 0x704   : > { %5305 = vst [vmem:[%s9931_s30 + $0x7b0] sm:$0xff] %v5049_v18  ;;  %v5557_v39 = vmin.f32 %v5553_v53, %v5049_v18  ;;  %v5821_v47 = vmax.f32 %v5817_v13, %v5049_v18  ;;  %5304 = vst [vmem:[%s9931_s30 + $0x7a8] sm:$0xff] %v5048_v63  ;;  %v5556_v15 = vmin.f32 %v5552_v38, %v5048_v63  ;;  %v4441_v45 = vpop.f32.mrb[132].mxu0 }
 0x705   : > { %v5820_v44 = vmax.f32 %v5816_v56, %v5048_v63  ;;  %5306 = vst [vmem:[%s9931_s30 + $0x7b8] sm:$0xff] %v5050_v51  ;;  %v5558_v54 = vmin.f32 %v5554_v3, %v5050_v51  ;;  %v5822_v48 = vmax.f32 %v5818_v14, %v5050_v51  ;;  %v5051_v1 = vsub.f32 %v11057_v9, %v4441_v45  ;;  %v4794_v16 = vpop.f32.mrb[72].mxu1  ;;  %v4443_v50 = vpop.f32.mrb[133].mxu0 }
 0x706   : > { %v5053_v41 = vsub.f32 %v11058_v57, %v4794_v16  ;;  %v5052_v2 = vsub.f32 %v11059_v21, %v4443_v50  ;;  %v4796_v36 = vpop.f32.mrb[73].mxu1  ;;  %v4445_v25 = vpop.f32.mrb[134].mxu0 }
 0x707   : > { %5307 = vst [vmem:[%s9931_s30 + $0x7c0] sm:$0xff] %v5051_v1  ;;  %v5559_v35 = vmin.f32 %v5555_v55, %v5051_v1  ;;  %v5823_v32 = vmax.f32 %v5819_v43, %v5051_v1  ;;  %v5054_v4 = vsub.f32 %v11060_v52, %v4796_v36  ;;  %v5055_v5 = vsub.f32 %v11061_v37, %v4445_v25  ;;  %v4798_v20 = vpop.f32.mrb[74].mxu1  ;;  %v4447_v46 = vpop.f32.mrb[135].mxu0 }
 0x708   : > { %5309 = vst [vmem:[%s9931_s30 + $0x7d0] sm:$0xff] %v5053_v41  ;;  %v5561_v24 = vmin.f32 %v5557_v39, %v5053_v41  ;;  %v5825_v29 = vmax.f32 %v5821_v47, %v5053_v41  ;;  %5308 = vst [vmem:[%s9931_s30 + $0x7c8] sm:$0xff] %v5052_v2  ;;  %v5560_v59 = vmin.f32 %v5556_v15, %v5052_v2  ;;  %v4800_v7 = vpop.f32.mrb[75].mxu1 }
 0x709   : > { %v5824_v8 = vmax.f32 %v5820_v44, %v5052_v2  ;;  %5310 = vst [vmem:[%s9931_s30 + $0x7d8] sm:$0xff] %v5054_v4  ;;  %v5562_v58 = vmin.f32 %v5558_v54, %v5054_v4  ;;  %v5826_v11 = vmax.f32 %v5822_v48, %v5054_v4  ;;  %5311 = vst [vmem:[%s9931_s30 + $0x7e0] sm:$0xff] %v5055_v5 }
 0x70a   : > { %v5827_v28 = vmax.f32 %v5823_v32, %v5055_v5  ;;  %v5057_v61 = vsub.f32 %v11062_v33, %v4798_v20  ;;  %v5056_v6 = vsub.f32 %v11063_v42, %v4447_v46  ;;  %v5058_v23 = vsub.f32 %v11064_v30, %v4800_v7 }
 0x70b   : > { %v5563_v12 = vmin.f32 %v5559_v35, %v5055_v5 }
 0x70c   : > { %5313 = vst [vmem:[%s9931_s30 + $0x7f0] sm:$0xff] %v5057_v61  ;;  %v5829_v19 = vmax.f32 %v5825_v29, %v5057_v61  ;;  %v5565_v40 = vmin.f32 %v5561_v24, %v5057_v61  ;;  %5312 = vst [vmem:[%s9931_s30 + $0x7e8] sm:$0xff] %v5056_v6  ;;  %v5828_v17 = vmax.f32 %v5824_v8, %v5056_v6 }
 0x70d   : > { %5314 = vst [vmem:[%s9931_s30 + $0x7f8] sm:$0xff] %v5058_v23  ;;  %v5830_v0 = vmax.f32 %v5826_v11, %v5058_v23  ;;  %v5564_v31 = vmin.f32 %v5560_v59, %v5056_v6  ;;  %v5566_v34 = vmin.f32 %v5562_v58, %v5058_v23 }
 0x70e   : > { %v5831_v10 = vmax.f32 %v5827_v28, %v5828_v17 }
 0x70f   : > { %v5567_v26 = vmin.f32 %v5563_v12, %v5564_v31  ;;  %v5568_v60 = vmin.f32 %v5565_v40, %v5566_v34  ;;  %v5832_v53 = vmax.f32 %v5829_v19, %v5830_v0 }
 0x711   : > { %v5569_v13 = vmin.f32 %v5567_v26, %v5568_v60  ;;  %v5833_v38 = vmax.f32 %v5831_v10, %v5832_v53 }
 0x713   : > { %5570 = vmin.xlane.f32.xlu0 %v5569_v13 }
 0x717   : > { %5834 = vmax.xlane.f32.xlu0 %v5833_v38 }
 0x718   : > { %7616 = shalt.err (!%p7613_p10)
}
 0x719   : > { %s7617_s30 = scalar_lea.hbm %s10473_s17, 32768  ;;  %s7621_s1 = scalar_lea.hbm %s11065_s2, 65536 }
 0x71a   : > { %p7618_p11 = scmp.ne.s32.totalorder %s10473_s17, %s7617_s30  ;;  %p7622_p7 = scmp.lt.u32.totalorder %s10473_s17, %s11065_s2 }
 0x71b   : > { %p7623_p6 = scmp.lt.u32.totalorder %s7621_s1, %s7617_s30  ;;  %p7625_p12 = scmp.lt.u32.totalorder %s7617_s30, %s10473_s17 }
 0x71c   : > { %p7619_p3 = pnand %p7618_p11, %p11066_p1 }
 0x71d   : > { %p7624_p9 = por %p7623_p6, %p7622_p7 }
 0x71e   : > { %p7620_p5 = pneg %p7619_p3 }
 0x71f   : > { %p7626_p13 = por %p7625_p12, %p7624_p9 }
 0x721   : > { %p7627_p0 = pnand %p7626_p13, %p7620_p5 }
 0x723   : > { %7630 = shalt.err (!%p7627_p0)
}
 0x724   : > { %s7734_s8 = smov 512   ;;  %s7735_s7 = smov 32   ;;  %v5843_v15 = vlaneseq }
 0x725   : > { %7156 = dma.vmem_to_hbm [thread:$0]  (%p11066_p1), %s10476_s18, 32768, %s10473_s17, %s5851_s15, %s7734_s8, %s7734_s8, %s7735_s7  }
 0x726   : > { %s6088_s17 = sshll.u32 %s8134_s29, 3  ;;  %v5844_v44 = vshrl.u32 %v5843_v15, 7  ;;  %s6453_s18 = sshll.u32 %s7823_s27, 7 }
 0x727   : > { %s558_s30 = scalar_lea.vmem [#allocation18], %s6088_s17  ;;  %s11067_s19 = sld [smem:[#allocation243_spill]] }
 0x728   : > { %s5885_s20 = sshll.u32 %s558_s30, 4  ;;  %vm5845_vm1 = vcmp.lt.s32.totalorder %v5844_v44, 4  ;;  %s5856_s27 = scalar_lea.sflag [#allocation19], %s8134_s29  ;;  %s10509_s20 = int_to_ptr.vmem [resolvable:$true] %s5885_s20 }
 0x729   : > { %s7631_s7 = scalar_lea.vmem %s10509_s20, 128  ;;  %s7736_s17 = smov [#allocation18]  }
 0x72a   : > { %p7632_p2 = scmp.ne.s32.totalorder %s10509_s20, %s7631_s7 }
 0x72c   : > { %p7633_p8 = pnand %p7632_p2, %p11066_p1 }
 0x72d   : > { %s10507_s8 = scalar_lea.hbm %s11067_s19, %s6453_s18 }
 0x72e   : > { %p7634_p4 = pneg %p7633_p8 }
 0x7a0   : > { %v5571_v56 = vpop.xlane.xlu0 %5570 }
 0x7a1   : > { %v5572_v27 = vrot.slane %v5571_v56, 4 }
 0x7a3   : > { %v5573_v3 = vmin.f32 %v5571_v56, %v5572_v27 }
 0x7a4   : > { %v5835_v14 = vpop.xlane.xlu0 %5834 }
 0x7a5   : > { %v5574_v55 = vrot.slane %v5573_v3, 2  ;;  %v5836_v43 = vrot.slane %v5835_v14, 4 }
 0x7a7   : > { %v5837_v22 = vmax.f32 %v5835_v14, %v5836_v43  ;;  %v5575_v18 = vmin.f32 %v5573_v3, %v5574_v55 }
 0x7a9   : > { %v5838_v62 = vrot.slane %v5837_v22, 2  ;;  %v5576_v63 = vrot.slane %v5575_v18, 1 }
 0x7ab   : > { %v5839_v49 = vmax.f32 %v5837_v22, %v5838_v62  ;;  %v5577_v51 = vmin.f32 %v5575_v18, %v5576_v63 }
 0x7ad   : > { %7118 = vpush %v5577_v51  ;;  %v5840_v39 = vrot.slane %v5839_v49, 1 }
 0x7af   : > { %v5841_v47 = vmax.f32 %v5839_v49, %v5840_v39 }
 0x7b1   : > { %7120 = vpush %v5841_v47 }
 0x7de   : > { %s7119_s15 = spop %7118 }
 0x7df   : > { %v5846_v45 = vstv %s7119_s15  ;;  %s7635_s15 = sshll.u32 %s7736_s17, 4  ;;  %s7636_s15 = int_to_ptr.vmem [resolvable:$false] %s7635_s15 }
 0x7e0   : > { %p7638_p10 = scmp.lt.s32.totalorder %s10509_s20, %s7636_s15 }
 0x7e2   : > { %s7121_s13 = spop %7120 }
 0x7e3   : > { %v5847_v54 = vstv %s7121_s13  ;;  %s7637_s13 = scalar_lea.vmem %s7636_s15, 256 }
 0x7e4   : > { %v5848_v48 = vsel %vm5845_vm1, %v5846_v45, %v5847_v54  ;;  %p7639_p11 = scmp.lt.s32.totalorder %s7637_s13, %s7631_s7 }
 0x7e5   : > { %5849 = vst [vmem:[%s558_s30] sm:$0xff] %v5848_v48 }
 0x7e6   : > { %p7640_p3 = por %p7639_p11, %p7638_p10 }
 0x7e8   : > { %p7641_p5 = pnand %p7640_p3, %p7634_p4 }
 0x7ea   : > { %7644 = shalt.err (!%p7641_p5)
}
 0x7eb   : > { %s7645_s29 = scalar_lea.hbm %s10507_s8, 128  ;;  %s7649_s1 = scalar_lea.hbm %s11067_s19, 256 }
 0x7ec   : > { %p7646_p7 = scmp.ne.s32.totalorder %s10507_s8, %s7645_s29  ;;  %p7650_p12 = scmp.lt.u32.totalorder %s10507_s8, %s11067_s19 }
 0x7ed   : > { %p7651_p13 = scmp.lt.u32.totalorder %s7649_s1, %s7645_s29  ;;  %p7653_p2 = scmp.lt.u32.totalorder %s7645_s29, %s10507_s8 }
 0x7ee   : > { %p7647_p6 = pnand %p7646_p7, %p11066_p1 }
 0x7ef   : > { %p7652_p0 = por %p7651_p13, %p7650_p12 }
 0x7f0   : > { %p7648_p9 = pneg %p7647_p6 }
 0x7f1   : > { %p7654_p8 = por %p7653_p2, %p7652_p0 }
 0x7f3   : > { %p7655_p4 = pnand %p7654_p8, %p7648_p9 }
 0x7f5   : > { %7658 = shalt.err (!%p7655_p4)
}
 0x7f6   : > { %7157 = dma.vmem_to_hbm [thread:$0]  (%p11066_p1), %s10509_s20, 128, %s10507_s8, %s5856_s27  }
 0x7f7 PF: > { %s5897_s7 = sand.u32 1, %s7705_s21   ;;  %p11068_p10 = scmp.ne.s32.totalorder %s10601_s16, 0 }
 0x7f8   : > { %p11069_p11 = scmp.ge.s32.totalorder %s7717_s24, 2  ;;  %s5898_s15 = scalar_lea.sflag [#allocation4], %s5897_s7 }
 0x7fa   : > { %p7190_p3 = pnand %p11069_p11, %p11068_p10 }
 0x7fc   : > { %7696 = dma.done.wait (!%p7190_p3), %s5898_s15, 32768  }
 0x7fd   : > { %7698 = vsyncadd (!%p7190_p3), %s5898_s15, 4294934528  ;;  %s5907_s13 = scalar_lea.sflag [#allocation19], %s5897_s7 }
 0x7fe   : > { %7700 = dma.done.wait (!%p7190_p3), %s5907_s13, 128  }
 0x7ff   : > { %7702 = vsyncadd (!%p7190_p3), %s5907_s13, 4294967168  ;;  %p33_p1 = scmp.ge.s32.totalorder %s8052_s25, 4   ;;  %s11070_s21 = smov %s7709_s22 }
 0x800   : > { %s11071_s22 = smov %s7713_s23  ;;  %s11072_s23 = smov %s8063_s12 }
 0x801   : > { %s11073_s24 = smov %s8052_s25  ;;  %35 = sbr.rel (!%p33_p1) target bundleno = 18 (0x12), region = 158 }
 0x808   :  { %5912 = vsyncpa [#allocation3], 1 }
 0x809   :  { %5914 = vsyncpa [#allocation3 + $0x1], 1 }
 0x80a   :  { %5915 = vsyncpa [#allocation6], 1 }
 0x80b   :  { %5916 = vsyncpa [#allocation9], 1 }
 0x80c   :  { %5917 = vsyncpa [#allocation12], 1 }
 0x80d   :  { %5918 = vsyncpa [#allocation15], 1 }
 0x80e   :  { %5919 = vsyncpa [#allocation4], 1 }
 0x80f   :  { %5921 = vsyncpa [#allocation4 + $0x1], 1 }
 0x810   :  { %5922 = vsyncpa [#allocation19], 1 }
 0x811   :  { %5924 = vsyncpa [#allocation19 + $0x1], 1 }

</bundles_post_ra>
